<compile_context>
chip_gen: v7x
topology: tpu7x:2x2x1
jax: 0.10.0
libtpu: 0.0.40
codegen_flags: <defaults>
</compile_context>

<pallas_src>
import functools

import jax
import jax.numpy as jnp
from jax import lax
from jax.experimental import pallas as pl
from jax.experimental.pallas import tpu as pltpu


# bf16 MXU operands with f32 accumulation (v6e/v7x MXU peak is bf16).
# Set both to False for f32 bit-parity validation against a reference.
MXU_BF16 = True
APPROX_RECIP = True
LN_EPS = 1e-5


# ----------------------------- in-kernel helpers ----------------------------

def _mxu_dot(x, w):
    if MXU_BF16:
        x = x.astype(jnp.bfloat16)
        w = w.astype(jnp.bfloat16)     # no-op if weight already stored bf16
    return jnp.dot(x, w, preferred_element_type=jnp.float32)


def _mxu_dot_kT(q, k):
    # q @ k.T without materializing the transpose.
    if MXU_BF16:
        q = q.astype(jnp.bfloat16)
        k = k.astype(jnp.bfloat16)
    return lax.dot_general(q, k, (((1,), (1,)), ((), ())),
                           preferred_element_type=jnp.float32)


def _layer_norm(x, g, b, eps=LN_EPS):
    mean = jnp.mean(x, axis=-1, keepdims=True)
    xc = x - mean
    var = jnp.mean(xc * xc, axis=-1, keepdims=True)      # biased var, like torch
    return xc * lax.rsqrt(var + eps) * g + b


def _softmax_rows(s):
    m = jnp.max(s, axis=-1, keepdims=True)
    p = jnp.exp(s - m)
    denom = jnp.sum(p, axis=-1, keepdims=True)
    if APPROX_RECIP:
        return p * pl.reciprocal(denom, approx=True)      # EUP slot, ~free
    return p / denom


def _mha(q, k, v, wo, bo, *, nhead, gsz, lq, lk, lk_real):
    """Multi-head attention + output projection on stacked batch slabs.

    q: (gsz*lq, D) f32, already scaled by 1/sqrt(dh).
    k, v: (gsz*lk, D) f32.
    Heads are contiguous dh-wide lane slices of D.  Per batch element:
      * per-head QK^T scores stacked along sublanes -> ONE softmax over
        (nhead*lq, lk),
      * per-head P@V, lane-concat back to (lq, D).
    All batch elements' attention outputs are row-stacked and hit Wo with a
    single K=D matmul (== concat(heads) @ Wo).
    """
    d = q.shape[-1]
    dh = d // nhead
    need_mask = lk_real < lk
    att_rows = []
    for g in range(gsz):
        qg = q[g * lq:(g + 1) * lq]
        kg = k[g * lk:(g + 1) * lk]
        vg = v[g * lk:(g + 1) * lk]
        # per-head scores, stacked along sublanes
        if nhead > 1:
            s = jnp.concatenate(
                [_mxu_dot_kT(qg[:, h * dh:(h + 1) * dh],
                             kg[:, h * dh:(h + 1) * dh])
                 for h in range(nhead)], axis=0)          # (nhead*lq, lk)
        else:
            s = _mxu_dot_kT(qg, kg)
        if need_mask:                                     # mask padded keys
            col = lax.broadcasted_iota(jnp.int32, s.shape, 1)
            s = jnp.where(col < lk_real, s, jnp.float32(-1e30))
        p = _softmax_rows(s)                              # one vectorized softmax
        if nhead > 1:
            att = jnp.concatenate(
                [_mxu_dot(p[h * lq:(h + 1) * lq], vg[:, h * dh:(h + 1) * dh])
                 for h in range(nhead)], axis=-1)         # (lq, D) lane concat
        else:
            att = _mxu_dot(p, vg)
        att_rows.append(att)
    att_all = jnp.concatenate(att_rows, axis=0) if gsz > 1 else att_rows[0]
    return _mxu_dot(att_all, wo) + bo                     # single K=D projection


# ----------------------------- Pallas kernel --------------------------------

def _decoder_layer_kernel(
        tgt_ref, qpos_ref, mem_ref, mempos_ref,
        sa_wqk_ref, sa_bqk_ref, sa_wv_ref, sa_bv_ref, sa_wo_ref, sa_bo_ref,
        ca_wq_ref, ca_bq_ref, ca_wk_ref, ca_bk_ref, ca_wv_ref, ca_bv_ref,
        ca_wo_ref, ca_bo_ref,
        w1_ref, b1_ref, w2_ref, b2_ref,
        g1_ref, n1b_ref, g2_ref, n2b_ref, g3_ref, n3b_ref,
        *rest, nhead, gsz, lq, lk, lq_real, lk_real, emit_final_norm):
    if emit_final_norm:
        fng_ref, fnb_ref, out_ref, outn_ref = rest
    else:
        (out_ref,) = rest

    tgt = tgt_ref[...].astype(jnp.float32)          # (gsz*lq, D) residual path
    qpos = qpos_ref[...].astype(jnp.float32)        # (gsz*lq, D)
    mem = mem_ref[...]                               # (gsz*lk, D) bf16, MXU only
    mempos = mempos_ref[...]                         # (gsz*lk, D) bf16 (mem+pos)

    d = tgt.shape[-1]
    dh = d // nhead
    scale = 1.0 / (dh ** 0.5)

    # ---------------- self-attention (q = k = tgt + query_pos, v = tgt) -----
    q_in = tgt + qpos
    qk = _mxu_dot(q_in, sa_wqk_ref[...]) + sa_bqk_ref[...]   # fused Q|K proj
    q = qk[:, :d] * scale                                     # pre-scale once
    k = qk[:, d:]
    v = _mxu_dot(tgt, sa_wv_ref[...]) + sa_bv_ref[...]
    att = _mha(q, k, v, sa_wo_ref[...], sa_bo_ref[...],
               nhead=nhead, gsz=gsz, lq=lq, lk=lq, lk_real=lq_real)
    x = _layer_norm(tgt + att, g1_ref[...], n1b_ref[...])     # add & norm1

    # ---------------- cross-attention (q = x + qpos, k = mem+pos, v = mem) --
    q = (_mxu_dot(x + qpos, ca_wq_ref[...]) + ca_bq_ref[...]) * scale
    k = _mxu_dot(mempos, ca_wk_ref[...]) + ca_bk_ref[...]
    v = _mxu_dot(mem, ca_wv_ref[...]) + ca_bv_ref[...]
    att = _mha(q, k, v, ca_wo_ref[...], ca_bo_ref[...],
               nhead=nhead, gsz=gsz, lq=lq, lk=lk, lk_real=lk_real)
    x = _layer_norm(x + att, g2_ref[...], n2b_ref[...])       # add & norm2

    # ---------------- FFN (linear1 + relu + linear2), resident in VMEM ------
    h = jnp.maximum(_mxu_dot(x, w1_ref[...]) + b1_ref[...], 0.0)
    ff = _mxu_dot(h, w2_ref[...]) + b2_ref[...]
    x = _layer_norm(x + ff, g3_ref[...], n3b_ref[...])        # add & norm3

    out_ref[...] = x.astype(out_ref.dtype)
    if emit_final_norm:                                       # fused final norm
        outn_ref[...] = _layer_norm(x, fng_ref[...],
                                    fnb_ref[...]).astype(outn_ref.dtype)


# ----------------------------- wrappers (JAX) --------------------------------

def _round_up(x, m):
    return ((x + m - 1) // m) * m


def _pick_batch_block(b):
    """Batch elements per grid step: keep >=2 grid steps (v7x megacore),
    cap VMEM growth, and divide the batch exactly."""
    if b <= 1:
        return 1
    g = min(8, b // 2)
    while g > 1 and b % g:
        g -= 1
    return max(g, 1)


def decoder_layer(tgt2d, qpos2d, mem2d, mempos2d, lp, *, final_norm, nhead,
                  b, gsz, lq, lk, lq_real, lk_real, d):
    """One fused pallas_call for a full DETR decoder layer.

    Grid = batch blocks of `gsz` elements; activations are (gsz*L, D) slabs.
    """
    steps = b // gsz
    act = lambda i: (i, 0)       # one batch block per grid step
    same = lambda i: (0, 0)      # weights: constant block -> fetched once

    wkeys = ("sa_wqk", "sa_bqk", "sa_wv", "sa_bv", "sa_wo", "sa_bo",
             "ca_wq", "ca_bq", "ca_wk", "ca_bk", "ca_wv", "ca_bv",
             "ca_wo", "ca_bo",
             "w1", "b1", "w2", "b2",
             "norm1_g", "norm1_b", "norm2_g", "norm2_b", "norm3_g", "norm3_b")
    weights = [lp[k] for k in wkeys]
    if final_norm is not None:
        weights += [final_norm[0], final_norm[1]]

    in_specs = ([pl.BlockSpec((gsz * lq, d), act),
                 pl.BlockSpec((gsz * lq, d), act),
                 pl.BlockSpec((gsz * lk, d), act),
                 pl.BlockSpec((gsz * lk, d), act)]
                + [pl.BlockSpec(w.shape, same) for w in weights])

    out_spec = pl.BlockSpec((gsz * lq, d), act)
    if final_norm is not None:
        out_specs = (out_spec, out_spec)
        out_shape = (jax.ShapeDtypeStruct((b * lq, d), tgt2d.dtype),
                     jax.ShapeDtypeStruct((b * lq, d), tgt2d.dtype))
    else:
        out_specs = out_spec
        out_shape = jax.ShapeDtypeStruct((b * lq, d), tgt2d.dtype)

    kern = functools.partial(
        _decoder_layer_kernel, nhead=nhead, gsz=gsz, lq=lq, lk=lk,
        lq_real=lq_real, lk_real=lk_real,
        emit_final_norm=final_norm is not None)

    return pl.pallas_call(
        kern,
        grid=(steps,),
        in_specs=in_specs,
        out_specs=out_specs,
        out_shape=out_shape,
        compiler_params=pltpu.CompilerParams(
            dimension_semantics=("parallel",),     # lets v7x use both TCs
            vmem_limit_bytes=32 * 1024 * 1024),
    )(tgt2d, qpos2d, mem2d, mempos2d, *weights)


def transformer_decoder(tgt, memory, params, *, nhead, pos, query_pos,
                        return_intermediate=False, batch_block=None):
    """Mirrors TransformerDecoder.forward (norm present, eval mode)."""
    lq, b, d = tgt.shape
    lk = memory.shape[0]
    # Pad sequence dims to sublane multiples (8 for f32 slabs, 16 for bf16
    # memory slabs); padded KEY positions are masked inside the kernel.
    lq_p = _round_up(lq, 8)
    lk_p = _round_up(lk, 16)
    mem_dtype = jnp.bfloat16 if MXU_BF16 else jnp.float32

    def to_slab(x, l, l_pad, dtype):   # (L, B, D) -> batch-major (B*L_pad, D)
        x2 = x.transpose(1, 0, 2)
        if l_pad != l:
            x2 = jnp.pad(x2, ((0, 0), (0, l_pad - l), (0, 0)))
        return x2.reshape(b * l_pad, d).astype(dtype)

    tgt2d = to_slab(tgt, lq, lq_p, jnp.float32)          # residual path: f32
    qpos2d = to_slab(query_pos, lq, lq_p, jnp.float32)
    mem2d = to_slab(memory, lk, lk_p, mem_dtype)         # MXU-only: bf16
    mempos2d = to_slab(memory + pos, lk, lk_p, mem_dtype)  # layer-invariant

    gsz = batch_block if batch_block is not None else _pick_batch_block(b)
    assert b % gsz == 0, (b, gsz)

    final_norm = (params["norm_g"], params["norm_b"])
    n_layers = len(params["layers"])

    output = tgt2d
    normed = None
    intermediate = []
    for li, lp in enumerate(params["layers"]):
        want_norm = return_intermediate or (li == n_layers - 1)
        res = decoder_layer(output, qpos2d, mem2d, mempos2d, lp,
                            final_norm=final_norm if want_norm else None,
                            nhead=nhead, b=b, gsz=gsz,
                            lq=lq_p, lk=lk_p, lq_real=lq, lk_real=lk, d=d)
        if want_norm:
            output, normed = res
        else:
            output = res
        if return_intermediate:
            intermediate.append(normed)

    def to_3d(x2d):   # (B*Lq_pad, D) -> (Lq, B, D), trimming padded queries
        return x2d.reshape(b, lq_p, d)[:, :lq, :].transpose(1, 0, 2)

    if return_intermediate:
        # last intermediate is already norm(last output) == PyTorch pop/append
        return jnp.stack([to_3d(x) for x in intermediate])
    return to_3d(normed)[None]               # unsqueeze(0)


# ----------------------------- parameter init -------------------------------

_BF16_WEIGHT_KEYS = ("sa_wqk", "sa_wv", "sa_wo", "ca_wq", "ca_wk", "ca_wv",
                     "ca_wo", "w1", "w2")


def init_layer_params(key, d, dff):
    ks = jax.random.split(key, 9)
    s = 0.05
    zd = jnp.zeros((1, d), jnp.float32)
    p = dict(
        # self-attention: Q and K projections fused (same input tgt+query_pos)
        sa_wqk=jax.random.normal(ks[0], (d, 2 * d), jnp.float32) * s,
        sa_bqk=jnp.zeros((1, 2 * d), jnp.float32),
        sa_wv=jax.random.normal(ks[1], (d, d), jnp.float32) * s, sa_bv=zd,
        sa_wo=jax.random.normal(ks[2], (d, d), jnp.float32) * s, sa_bo=zd,
        # cross-attention
        ca_wq=jax.random.normal(ks[3], (d, d), jnp.float32) * s, ca_bq=zd,
        ca_wk=jax.random.normal(ks[4], (d, d), jnp.float32) * s, ca_bk=zd,
        ca_wv=jax.random.normal(ks[5], (d, d), jnp.float32) * s, ca_bv=zd,
        ca_wo=jax.random.normal(ks[6], (d, d), jnp.float32) * s, ca_bo=zd,
        # FFN
        w1=jax.random.normal(ks[7], (d, dff), jnp.float32) * s,
        b1=jnp.zeros((1, dff), jnp.float32),
        w2=jax.random.normal(ks[8], (dff, d), jnp.float32) * s, b2=zd,
        # LayerNorms (stay f32)
        norm1_g=jnp.ones((1, d), jnp.float32), norm1_b=zd,
        norm2_g=jnp.ones((1, d), jnp.float32), norm2_b=zd,
        norm3_g=jnp.ones((1, d), jnp.float32), norm3_b=zd,
    )
    if MXU_BF16:
        # Weights live in HBM as bf16 -> half the DMA traffic & VMEM residency.
        for k in _BF16_WEIGHT_KEYS:
            p[k] = p[k].astype(jnp.bfloat16)
    return p


def init_decoder_params(key, d, dff, num_layers):
    # _get_clones deep-copies a single initialized layer -> all layers have
    # identical values at init (fine for the forward pass).
    layer = init_layer_params(key, d, dff)
    return dict(
        layers=[layer for _ in range(num_layers)],
        norm_g=jnp.ones((1, d), jnp.float32),
        norm_b=jnp.zeros((1, d), jnp.float32),
    )


# ----------------------------------- main -----------------------------------

if __name__ == "__main__":
    # Small toy shapes. LQ=7 / LK=13 deliberately exercise the padding +
    # key-masking path (pad to 8 / 16); B=4 exercises >1 batch element per
    # grid step (gsz=2, 2 parallel grid steps).
    D, NHEAD, DFF, NUM_LAYERS = 32, 4, 64, 2
    LQ, LK, B = 7, 13, 4

    root = jax.random.PRNGKey(0)
    kp, k1, k2, k3, k4 = jax.random.split(root, 5)

    params = init_decoder_params(kp, D, DFF, NUM_LAYERS)
    tgt = jax.random.normal(k1, (LQ, B, D), jnp.float32)
    memory = jax.random.normal(k2, (LK, B, D), jnp.float32)
    query_pos = jax.random.normal(k3, (LQ, B, D), jnp.float32)
    pos = jax.random.normal(k4, (LK, B, D), jnp.float32)

    fwd = jax.jit(functools.partial(transformer_decoder, nhead=NHEAD,
                                    return_intermediate=False))
    out = fwd(tgt, memory, params, pos=pos, query_pos=query_pos)
    jax.block_until_ready(out)
    assert out.shape == (1, LQ, B, D), out.shape
    assert bool(jnp.all(jnp.isfinite(out))), "non-finite output"

    fwd_i = jax.jit(functools.partial(transformer_decoder, nhead=NHEAD,
                                      return_intermediate=True))
    out_i = fwd_i(tgt, memory, params, pos=pos, query_pos=query_pos)
    jax.block_until_ready(out_i)
    assert out_i.shape == (NUM_LAYERS, LQ, B, D), out_i.shape

    print("KERNEL_OK")
</pallas_src>

<mosaic_0001>
module attributes {stable_mosaic.version = 11 : i64} {
  func.func @_decoder_layer_kernel(%arg0: i32, %arg1: memref<16x32xf32, #tpu.memory_space<vmem>>, %arg2: memref<16x32xf32, #tpu.memory_space<vmem>>, %arg3: memref<32x32xbf16, #tpu.memory_space<vmem>>, %arg4: memref<32x32xbf16, #tpu.memory_space<vmem>>, %arg5: memref<32x64xbf16, #tpu.memory_space<vmem>>, %arg6: memref<1x64xf32, #tpu.memory_space<vmem>>, %arg7: memref<32x32xbf16, #tpu.memory_space<vmem>>, %arg8: memref<1x32xf32, #tpu.memory_space<vmem>>, %arg9: memref<32x32xbf16, #tpu.memory_space<vmem>>, %arg10: memref<1x32xf32, #tpu.memory_space<vmem>>, %arg11: memref<32x32xbf16, #tpu.memory_space<vmem>>, %arg12: memref<1x32xf32, #tpu.memory_space<vmem>>, %arg13: memref<32x32xbf16, #tpu.memory_space<vmem>>, %arg14: memref<1x32xf32, #tpu.memory_space<vmem>>, %arg15: memref<32x32xbf16, #tpu.memory_space<vmem>>, %arg16: memref<1x32xf32, #tpu.memory_space<vmem>>, %arg17: memref<32x32xbf16, #tpu.memory_space<vmem>>, %arg18: memref<1x32xf32, #tpu.memory_space<vmem>>, %arg19: memref<32x64xbf16, #tpu.memory_space<vmem>>, %arg20: memref<1x64xf32, #tpu.memory_space<vmem>>, %arg21: memref<64x32xbf16, #tpu.memory_space<vmem>>, %arg22: memref<1x32xf32, #tpu.memory_space<vmem>>, %arg23: memref<1x32xf32, #tpu.memory_space<vmem>>, %arg24: memref<1x32xf32, #tpu.memory_space<vmem>>, %arg25: memref<1x32xf32, #tpu.memory_space<vmem>>, %arg26: memref<1x32xf32, #tpu.memory_space<vmem>>, %arg27: memref<1x32xf32, #tpu.memory_space<vmem>>, %arg28: memref<1x32xf32, #tpu.memory_space<vmem>>, %arg29: memref<16x32xf32, #tpu.memory_space<vmem>>) attributes {dimension_semantics = [#tpu.dimension_semantics<parallel>], iteration_bounds = array<i64: 2>, scalar_prefetch = 0 : i64, scratch_operands = 0 : i64, tpu.core_type = #tpu.core_type<tc>, window_params = [{transform_indices = @transform_0, window_bounds = array<i64: 16, 32>}, {transform_indices = @transform_1, window_bounds = array<i64: 16, 32>}, {transform_indices = @transform_2, window_bounds = array<i64: 32, 32>}, {transform_indices = @transform_3, window_bounds = array<i64: 32, 32>}, {pipeline_mode = #tpu.pipeline_mode<synchronous>, transform_indices = @transform_4, window_bounds = array<i64: 32, 64>}, {pipeline_mode = #tpu.pipeline_mode<synchronous>, transform_indices = @transform_5, window_bounds = array<i64: 1, 64>}, {pipeline_mode = #tpu.pipeline_mode<synchronous>, transform_indices = @transform_6, window_bounds = array<i64: 32, 32>}, {pipeline_mode = #tpu.pipeline_mode<synchronous>, transform_indices = @transform_7, window_bounds = array<i64: 1, 32>}, {pipeline_mode = #tpu.pipeline_mode<synchronous>, transform_indices = @transform_8, window_bounds = array<i64: 32, 32>}, {pipeline_mode = #tpu.pipeline_mode<synchronous>, transform_indices = @transform_9, window_bounds = array<i64: 1, 32>}, {pipeline_mode = #tpu.pipeline_mode<synchronous>, transform_indices = @transform_10, window_bounds = array<i64: 32, 32>}, {pipeline_mode = #tpu.pipeline_mode<synchronous>, transform_indices = @transform_11, window_bounds = array<i64: 1, 32>}, {pipeline_mode = #tpu.pipeline_mode<synchronous>, transform_indices = @transform_12, window_bounds = array<i64: 32, 32>}, {pipeline_mode = #tpu.pipeline_mode<synchronous>, transform_indices = @transform_13, window_bounds = array<i64: 1, 32>}, {pipeline_mode = #tpu.pipeline_mode<synchronous>, transform_indices = @transform_14, window_bounds = array<i64: 32, 32>}, {pipeline_mode = #tpu.pipeline_mode<synchronous>, transform_indices = @transform_15, window_bounds = array<i64: 1, 32>}, {pipeline_mode = #tpu.pipeline_mode<synchronous>, transform_indices = @transform_16, window_bounds = array<i64: 32, 32>}, {pipeline_mode = #tpu.pipeline_mode<synchronous>, transform_indices = @transform_17, window_bounds = array<i64: 1, 32>}, {pipeline_mode = #tpu.pipeline_mode<synchronous>, transform_indices = @transform_18, window_bounds = array<i64: 32, 64>}, {pipeline_mode = #tpu.pipeline_mode<synchronous>, transform_indices = @transform_19, window_bounds = array<i64: 1, 64>}, {pipeline_mode = #tpu.pipeline_mode<synchronous>, transform_indices = @transform_20, window_bounds = array<i64: 64, 32>}, {pipeline_mode = #tpu.pipeline_mode<synchronous>, transform_indices = @transform_21, window_bounds = array<i64: 1, 32>}, {pipeline_mode = #tpu.pipeline_mode<synchronous>, transform_indices = @transform_22, window_bounds = array<i64: 1, 32>}, {pipeline_mode = #tpu.pipeline_mode<synchronous>, transform_indices = @transform_23, window_bounds = array<i64: 1, 32>}, {pipeline_mode = #tpu.pipeline_mode<synchronous>, transform_indices = @transform_24, window_bounds = array<i64: 1, 32>}, {pipeline_mode = #tpu.pipeline_mode<synchronous>, transform_indices = @transform_25, window_bounds = array<i64: 1, 32>}, {pipeline_mode = #tpu.pipeline_mode<synchronous>, transform_indices = @transform_26, window_bounds = array<i64: 1, 32>}, {pipeline_mode = #tpu.pipeline_mode<synchronous>, transform_indices = @transform_27, window_bounds = array<i64: 1, 32>}, {transform_indices = @transform_28, window_bounds = array<i64: 16, 32>}]} {
    %c0 = arith.constant 0 : index
    %c0_0 = arith.constant 0 : index
    %0 = vector.load %arg1[%c0, %c0_0] : memref<16x32xf32, #tpu.memory_space<vmem>>, vector<16x32xf32>
    %c0_1 = arith.constant 0 : index
    %c0_2 = arith.constant 0 : index
    %1 = vector.load %arg2[%c0_1, %c0_2] : memref<16x32xf32, #tpu.memory_space<vmem>>, vector<16x32xf32>
    %c0_3 = arith.constant 0 : index
    %c0_4 = arith.constant 0 : index
    %2 = vector.load %arg3[%c0_3, %c0_4] : memref<32x32xbf16, #tpu.memory_space<vmem>>, vector<32x32xbf16>
    %c0_5 = arith.constant 0 : index
    %c0_6 = arith.constant 0 : index
    %3 = vector.load %arg4[%c0_5, %c0_6] : memref<32x32xbf16, #tpu.memory_space<vmem>>, vector<32x32xbf16>
    %4 = arith.addf %0, %1 : vector<16x32xf32>
    %c0_7 = arith.constant 0 : index
    %c0_8 = arith.constant 0 : index
    %5 = vector.load %arg5[%c0_7, %c0_8] : memref<32x64xbf16, #tpu.memory_space<vmem>>, vector<32x64xbf16>
    %6 = arith.truncf %4 : vector<16x32xf32> to vector<16x32xbf16>
    %cst = arith.constant dense<0.000000e+00> : vector<16x64xf32>
    %7 = tpu.matmul %6, %5, %cst {dimension_numbers = #tpu.dot_dimension_numbers<[1], [0], [0], [1], [0, 0, 1, 1], [], []>} : vector<16x32xbf16>, vector<32x64xbf16>, vector<16x64xf32> -> vector<16x64xf32>
    %c0_9 = arith.constant 0 : index
    %c0_10 = arith.constant 0 : index
    %8 = vector.load %arg6[%c0_9, %c0_10] : memref<1x64xf32, #tpu.memory_space<vmem>>, vector<1x64xf32>
    %9 = vector.broadcast %8 : vector<1x64xf32> to vector<16x64xf32>
    %10 = arith.addf %7, %9 : vector<16x64xf32>
    %11 = vector.extract_strided_slice %10 {offsets = [0, 0], sizes = [16, 32], strides = [1, 1]} : vector<16x64xf32> to vector<16x32xf32>
    %cst_11 = arith.constant 0.353553385 : f32
    %12 = vector.broadcast %cst_11 : f32 to vector<16x32xf32>
    %13 = arith.mulf %11, %12 : vector<16x32xf32>
    %14 = vector.extract_strided_slice %10 {offsets = [0, 32], sizes = [16, 32], strides = [1, 1]} : vector<16x64xf32> to vector<16x32xf32>
    %c0_12 = arith.constant 0 : index
    %c0_13 = arith.constant 0 : index
    %15 = vector.load %arg7[%c0_12, %c0_13] : memref<32x32xbf16, #tpu.memory_space<vmem>>, vector<32x32xbf16>
    %16 = arith.truncf %0 : vector<16x32xf32> to vector<16x32xbf16>
    %cst_14 = arith.constant dense<0.000000e+00> : vector<16x32xf32>
    %17 = tpu.matmul %16, %15, %cst_14 {dimension_numbers = #tpu.dot_dimension_numbers<[1], [0], [0], [1], [0, 0, 1, 1], [], []>} : vector<16x32xbf16>, vector<32x32xbf16>, vector<16x32xf32> -> vector<16x32xf32>
    %c0_15 = arith.constant 0 : index
    %c0_16 = arith.constant 0 : index
    %18 = vector.load %arg8[%c0_15, %c0_16] : memref<1x32xf32, #tpu.memory_space<vmem>>, vector<1x32xf32>
    %19 = vector.broadcast %18 : vector<1x32xf32> to vector<16x32xf32>
    %20 = arith.addf %17, %19 : vector<16x32xf32>
    %c0_17 = arith.constant 0 : index
    %c0_18 = arith.constant 0 : index
    %21 = vector.load %arg9[%c0_17, %c0_18] : memref<32x32xbf16, #tpu.memory_space<vmem>>, vector<32x32xbf16>
    %c0_19 = arith.constant 0 : index
    %c0_20 = arith.constant 0 : index
    %22 = vector.load %arg10[%c0_19, %c0_20] : memref<1x32xf32, #tpu.memory_space<vmem>>, vector<1x32xf32>
    %23 = vector.extract_strided_slice %13 {offsets = [0, 0], sizes = [8, 32], strides = [1, 1]} : vector<16x32xf32> to vector<8x32xf32>
    %24 = vector.extract_strided_slice %14 {offsets = [0, 0], sizes = [8, 32], strides = [1, 1]} : vector<16x32xf32> to vector<8x32xf32>
    %25 = vector.extract_strided_slice %20 {offsets = [0, 0], sizes = [8, 32], strides = [1, 1]} : vector<16x32xf32> to vector<8x32xf32>
    %26 = vector.extract_strided_slice %23 {offsets = [0, 0], sizes = [8, 8], strides = [1, 1]} : vector<8x32xf32> to vector<8x8xf32>
    %27 = vector.extract_strided_slice %24 {offsets = [0, 0], sizes = [8, 8], strides = [1, 1]} : vector<8x32xf32> to vector<8x8xf32>
    %28 = arith.truncf %26 : vector<8x8xf32> to vector<8x8xbf16>
    %29 = arith.truncf %27 : vector<8x8xf32> to vector<8x8xbf16>
    %cst_21 = arith.constant dense<0.000000e+00> : vector<8x8xf32>
    %30 = tpu.matmul %28, %29, %cst_21 {dimension_numbers = #tpu.dot_dimension_numbers<[1], [1], [0], [0], [0, 0, 1, 0], [], []>} : vector<8x8xbf16>, vector<8x8xbf16>, vector<8x8xf32> -> vector<8x8xf32>
    %31 = vector.extract_strided_slice %23 {offsets = [0, 8], sizes = [8, 8], strides = [1, 1]} : vector<8x32xf32> to vector<8x8xf32>
    %32 = vector.extract_strided_slice %24 {offsets = [0, 8], sizes = [8, 8], strides = [1, 1]} : vector<8x32xf32> to vector<8x8xf32>
    %33 = arith.truncf %31 : vector<8x8xf32> to vector<8x8xbf16>
    %34 = arith.truncf %32 : vector<8x8xf32> to vector<8x8xbf16>
    %cst_22 = arith.constant dense<0.000000e+00> : vector<8x8xf32>
    %35 = tpu.matmul %33, %34, %cst_22 {dimension_numbers = #tpu.dot_dimension_numbers<[1], [1], [0], [0], [0, 0, 1, 0], [], []>} : vector<8x8xbf16>, vector<8x8xbf16>, vector<8x8xf32> -> vector<8x8xf32>
    %36 = vector.extract_strided_slice %23 {offsets = [0, 16], sizes = [8, 8], strides = [1, 1]} : vector<8x32xf32> to vector<8x8xf32>
    %37 = vector.extract_strided_slice %24 {offsets = [0, 16], sizes = [8, 8], strides = [1, 1]} : vector<8x32xf32> to vector<8x8xf32>
    %38 = arith.truncf %36 : vector<8x8xf32> to vector<8x8xbf16>
    %39 = arith.truncf %37 : vector<8x8xf32> to vector<8x8xbf16>
    %cst_23 = arith.constant dense<0.000000e+00> : vector<8x8xf32>
    %40 = tpu.matmul %38, %39, %cst_23 {dimension_numbers = #tpu.dot_dimension_numbers<[1], [1], [0], [0], [0, 0, 1, 0], [], []>} : vector<8x8xbf16>, vector<8x8xbf16>, vector<8x8xf32> -> vector<8x8xf32>
    %41 = vector.extract_strided_slice %23 {offsets = [0, 24], sizes = [8, 8], strides = [1, 1]} : vector<8x32xf32> to vector<8x8xf32>
    %42 = vector.extract_strided_slice %24 {offsets = [0, 24], sizes = [8, 8], strides = [1, 1]} : vector<8x32xf32> to vector<8x8xf32>
    %43 = arith.truncf %41 : vector<8x8xf32> to vector<8x8xbf16>
    %44 = arith.truncf %42 : vector<8x8xf32> to vector<8x8xbf16>
    %cst_24 = arith.constant dense<0.000000e+00> : vector<8x8xf32>
    %45 = tpu.matmul %43, %44, %cst_24 {dimension_numbers = #tpu.dot_dimension_numbers<[1], [1], [0], [0], [0, 0, 1, 0], [], []>} : vector<8x8xbf16>, vector<8x8xbf16>, vector<8x8xf32> -> vector<8x8xf32>
    %46 = tpu.concatenate %30, %35, %40, %45 in 0 : vector<8x8xf32>, vector<8x8xf32>, vector<8x8xf32>, vector<8x8xf32> -> vector<32x8xf32>
    %47 = tpu.iota {dimensions = array<i32: 1>} : vector<32x8xi32>
    %c7_i32 = arith.constant 7 : i32
    %48 = vector.broadcast %c7_i32 : i32 to vector<32x8xi32>
    %49 = arith.cmpi slt, %47, %48 : vector<32x8xi32>
    %cst_25 = arith.constant -1.000000e+30 : f32
    %50 = vector.broadcast %cst_25 : f32 to vector<32x8xf32>
    %51 = arith.select %49, %46, %50 : vector<32x8xi1>, vector<32x8xf32>
    %cst_26 = arith.constant dense<0xFF800000> : vector<32xf32>
    %52 = vector.multi_reduction <maximumf>, %51, %cst_26 [1] : vector<32x8xf32> to vector<32xf32>
    %53 = vector.shape_cast %52 : vector<32xf32> to vector<32x1xf32>
    %54 = vector.broadcast %53 : vector<32x1xf32> to vector<32x8xf32>
    %55 = arith.subf %51, %54 : vector<32x8xf32>
    %56 = math.exp %55 : vector<32x8xf32>
    %cst_27 = arith.constant dense<0.000000e+00> : vector<32xf32>
    %57 = vector.multi_reduction <add>, %56, %cst_27 [1] : vector<32x8xf32> to vector<32xf32>
    %58 = vector.shape_cast %57 : vector<32xf32> to vector<32x1xf32>
    %59 = tpu.reciprocal %58 {approx = true} : vector<32x1xf32> -> vector<32x1xf32>
    %60 = vector.broadcast %59 : vector<32x1xf32> to vector<32x8xf32>
    %61 = arith.mulf %56, %60 : vector<32x8xf32>
    %62 = vector.extract_strided_slice %61 {offsets = [0, 0], sizes = [8, 8], strides = [1, 1]} : vector<32x8xf32> to vector<8x8xf32>
    %63 = vector.extract_strided_slice %25 {offsets = [0, 0], sizes = [8, 8], strides = [1, 1]} : vector<8x32xf32> to vector<8x8xf32>
    %64 = arith.truncf %62 : vector<8x8xf32> to vector<8x8xbf16>
    %65 = arith.truncf %63 : vector<8x8xf32> to vector<8x8xbf16>
    %cst_28 = arith.constant dense<0.000000e+00> : vector<8x8xf32>
    %66 = tpu.matmul %64, %65, %cst_28 {dimension_numbers = #tpu.dot_dimension_numbers<[1], [0], [0], [1], [0, 0, 1, 1], [], []>} : vector<8x8xbf16>, vector<8x8xbf16>, vector<8x8xf32> -> vector<8x8xf32>
    %67 = vector.extract_strided_slice %61 {offsets = [8, 0], sizes = [8, 8], strides = [1, 1]} : vector<32x8xf32> to vector<8x8xf32>
    %68 = vector.extract_strided_slice %25 {offsets = [0, 8], sizes = [8, 8], strides = [1, 1]} : vector<8x32xf32> to vector<8x8xf32>
    %69 = arith.truncf %67 : vector<8x8xf32> to vector<8x8xbf16>
    %70 = arith.truncf %68 : vector<8x8xf32> to vector<8x8xbf16>
    %cst_29 = arith.constant dense<0.000000e+00> : vector<8x8xf32>
    %71 = tpu.matmul %69, %70, %cst_29 {dimension_numbers = #tpu.dot_dimension_numbers<[1], [0], [0], [1], [0, 0, 1, 1], [], []>} : vector<8x8xbf16>, vector<8x8xbf16>, vector<8x8xf32> -> vector<8x8xf32>
    %72 = vector.extract_strided_slice %61 {offsets = [16, 0], sizes = [8, 8], strides = [1, 1]} : vector<32x8xf32> to vector<8x8xf32>
    %73 = vector.extract_strided_slice %25 {offsets = [0, 16], sizes = [8, 8], strides = [1, 1]} : vector<8x32xf32> to vector<8x8xf32>
    %74 = arith.truncf %72 : vector<8x8xf32> to vector<8x8xbf16>
    %75 = arith.truncf %73 : vector<8x8xf32> to vector<8x8xbf16>
    %cst_30 = arith.constant dense<0.000000e+00> : vector<8x8xf32>
    %76 = tpu.matmul %74, %75, %cst_30 {dimension_numbers = #tpu.dot_dimension_numbers<[1], [0], [0], [1], [0, 0, 1, 1], [], []>} : vector<8x8xbf16>, vector<8x8xbf16>, vector<8x8xf32> -> vector<8x8xf32>
    %77 = vector.extract_strided_slice %61 {offsets = [24, 0], sizes = [8, 8], strides = [1, 1]} : vector<32x8xf32> to vector<8x8xf32>
    %78 = vector.extract_strided_slice %25 {offsets = [0, 24], sizes = [8, 8], strides = [1, 1]} : vector<8x32xf32> to vector<8x8xf32>
    %79 = arith.truncf %77 : vector<8x8xf32> to vector<8x8xbf16>
    %80 = arith.truncf %78 : vector<8x8xf32> to vector<8x8xbf16>
    %cst_31 = arith.constant dense<0.000000e+00> : vector<8x8xf32>
    %81 = tpu.matmul %79, %80, %cst_31 {dimension_numbers = #tpu.dot_dimension_numbers<[1], [0], [0], [1], [0, 0, 1, 1], [], []>} : vector<8x8xbf16>, vector<8x8xbf16>, vector<8x8xf32> -> vector<8x8xf32>
    %82 = tpu.concatenate %66, %71, %76, %81 in 1 : vector<8x8xf32>, vector<8x8xf32>, vector<8x8xf32>, vector<8x8xf32> -> vector<8x32xf32>
    %83 = vector.extract_strided_slice %13 {offsets = [8, 0], sizes = [8, 32], strides = [1, 1]} : vector<16x32xf32> to vector<8x32xf32>
    %84 = vector.extract_strided_slice %14 {offsets = [8, 0], sizes = [8, 32], strides = [1, 1]} : vector<16x32xf32> to vector<8x32xf32>
    %85 = vector.extract_strided_slice %20 {offsets = [8, 0], sizes = [8, 32], strides = [1, 1]} : vector<16x32xf32> to vector<8x32xf32>
    %86 = vector.extract_strided_slice %83 {offsets = [0, 0], sizes = [8, 8], strides = [1, 1]} : vector<8x32xf32> to vector<8x8xf32>
    %87 = vector.extract_strided_slice %84 {offsets = [0, 0], sizes = [8, 8], strides = [1, 1]} : vector<8x32xf32> to vector<8x8xf32>
    %88 = arith.truncf %86 : vector<8x8xf32> to vector<8x8xbf16>
    %89 = arith.truncf %87 : vector<8x8xf32> to vector<8x8xbf16>
    %cst_32 = arith.constant dense<0.000000e+00> : vector<8x8xf32>
    %90 = tpu.matmul %88, %89, %cst_32 {dimension_numbers = #tpu.dot_dimension_numbers<[1], [1], [0], [0], [0, 0, 1, 0], [], []>} : vector<8x8xbf16>, vector<8x8xbf16>, vector<8x8xf32> -> vector<8x8xf32>
    %91 = vector.extract_strided_slice %83 {offsets = [0, 8], sizes = [8, 8], strides = [1, 1]} : vector<8x32xf32> to vector<8x8xf32>
    %92 = vector.extract_strided_slice %84 {offsets = [0, 8], sizes = [8, 8], strides = [1, 1]} : vector<8x32xf32> to vector<8x8xf32>
    %93 = arith.truncf %91 : vector<8x8xf32> to vector<8x8xbf16>
    %94 = arith.truncf %92 : vector<8x8xf32> to vector<8x8xbf16>
    %cst_33 = arith.constant dense<0.000000e+00> : vector<8x8xf32>
    %95 = tpu.matmul %93, %94, %cst_33 {dimension_numbers = #tpu.dot_dimension_numbers<[1], [1], [0], [0], [0, 0, 1, 0], [], []>} : vector<8x8xbf16>, vector<8x8xbf16>, vector<8x8xf32> -> vector<8x8xf32>
    %96 = vector.extract_strided_slice %83 {offsets = [0, 16], sizes = [8, 8], strides = [1, 1]} : vector<8x32xf32> to vector<8x8xf32>
    %97 = vector.extract_strided_slice %84 {offsets = [0, 16], sizes = [8, 8], strides = [1, 1]} : vector<8x32xf32> to vector<8x8xf32>
    %98 = arith.truncf %96 : vector<8x8xf32> to vector<8x8xbf16>
    %99 = arith.truncf %97 : vector<8x8xf32> to vector<8x8xbf16>
    %cst_34 = arith.constant dense<0.000000e+00> : vector<8x8xf32>
    %100 = tpu.matmul %98, %99, %cst_34 {dimension_numbers = #tpu.dot_dimension_numbers<[1], [1], [0], [0], [0, 0, 1, 0], [], []>} : vector<8x8xbf16>, vector<8x8xbf16>, vector<8x8xf32> -> vector<8x8xf32>
    %101 = vector.extract_strided_slice %83 {offsets = [0, 24], sizes = [8, 8], strides = [1, 1]} : vector<8x32xf32> to vector<8x8xf32>
    %102 = vector.extract_strided_slice %84 {offsets = [0, 24], sizes = [8, 8], strides = [1, 1]} : vector<8x32xf32> to vector<8x8xf32>
    %103 = arith.truncf %101 : vector<8x8xf32> to vector<8x8xbf16>
    %104 = arith.truncf %102 : vector<8x8xf32> to vector<8x8xbf16>
    %cst_35 = arith.constant dense<0.000000e+00> : vector<8x8xf32>
    %105 = tpu.matmul %103, %104, %cst_35 {dimension_numbers = #tpu.dot_dimension_numbers<[1], [1], [0], [0], [0, 0, 1, 0], [], []>} : vector<8x8xbf16>, vector<8x8xbf16>, vector<8x8xf32> -> vector<8x8xf32>
    %106 = tpu.concatenate %90, %95, %100, %105 in 0 : vector<8x8xf32>, vector<8x8xf32>, vector<8x8xf32>, vector<8x8xf32> -> vector<32x8xf32>
    %107 = tpu.iota {dimensions = array<i32: 1>} : vector<32x8xi32>
    %c7_i32_36 = arith.constant 7 : i32
    %108 = vector.broadcast %c7_i32_36 : i32 to vector<32x8xi32>
    %109 = arith.cmpi slt, %107, %108 : vector<32x8xi32>
    %cst_37 = arith.constant -1.000000e+30 : f32
    %110 = vector.broadcast %cst_37 : f32 to vector<32x8xf32>
    %111 = arith.select %109, %106, %110 : vector<32x8xi1>, vector<32x8xf32>
    %cst_38 = arith.constant dense<0xFF800000> : vector<32xf32>
    %112 = vector.multi_reduction <maximumf>, %111, %cst_38 [1] : vector<32x8xf32> to vector<32xf32>
    %113 = vector.shape_cast %112 : vector<32xf32> to vector<32x1xf32>
    %114 = vector.broadcast %113 : vector<32x1xf32> to vector<32x8xf32>
    %115 = arith.subf %111, %114 : vector<32x8xf32>
    %116 = math.exp %115 : vector<32x8xf32>
    %cst_39 = arith.constant dense<0.000000e+00> : vector<32xf32>
    %117 = vector.multi_reduction <add>, %116, %cst_39 [1] : vector<32x8xf32> to vector<32xf32>
    %118 = vector.shape_cast %117 : vector<32xf32> to vector<32x1xf32>
    %119 = tpu.reciprocal %118 {approx = true} : vector<32x1xf32> -> vector<32x1xf32>
    %120 = vector.broadcast %119 : vector<32x1xf32> to vector<32x8xf32>
    %121 = arith.mulf %116, %120 : vector<32x8xf32>
    %122 = vector.extract_strided_slice %121 {offsets = [0, 0], sizes = [8, 8], strides = [1, 1]} : vector<32x8xf32> to vector<8x8xf32>
    %123 = vector.extract_strided_slice %85 {offsets = [0, 0], sizes = [8, 8], strides = [1, 1]} : vector<8x32xf32> to vector<8x8xf32>
    %124 = arith.truncf %122 : vector<8x8xf32> to vector<8x8xbf16>
    %125 = arith.truncf %123 : vector<8x8xf32> to vector<8x8xbf16>
    %cst_40 = arith.constant dense<0.000000e+00> : vector<8x8xf32>
    %126 = tpu.matmul %124, %125, %cst_40 {dimension_numbers = #tpu.dot_dimension_numbers<[1], [0], [0], [1], [0, 0, 1, 1], [], []>} : vector<8x8xbf16>, vector<8x8xbf16>, vector<8x8xf32> -> vector<8x8xf32>
    %127 = vector.extract_strided_slice %121 {offsets = [8, 0], sizes = [8, 8], strides = [1, 1]} : vector<32x8xf32> to vector<8x8xf32>
    %128 = vector.extract_strided_slice %85 {offsets = [0, 8], sizes = [8, 8], strides = [1, 1]} : vector<8x32xf32> to vector<8x8xf32>
    %129 = arith.truncf %127 : vector<8x8xf32> to vector<8x8xbf16>
    %130 = arith.truncf %128 : vector<8x8xf32> to vector<8x8xbf16>
    %cst_41 = arith.constant dense<0.000000e+00> : vector<8x8xf32>
    %131 = tpu.matmul %129, %130, %cst_41 {dimension_numbers = #tpu.dot_dimension_numbers<[1], [0], [0], [1], [0, 0, 1, 1], [], []>} : vector<8x8xbf16>, vector<8x8xbf16>, vector<8x8xf32> -> vector<8x8xf32>
    %132 = vector.extract_strided_slice %121 {offsets = [16, 0], sizes = [8, 8], strides = [1, 1]} : vector<32x8xf32> to vector<8x8xf32>
    %133 = vector.extract_strided_slice %85 {offsets = [0, 16], sizes = [8, 8], strides = [1, 1]} : vector<8x32xf32> to vector<8x8xf32>
    %134 = arith.truncf %132 : vector<8x8xf32> to vector<8x8xbf16>
    %135 = arith.truncf %133 : vector<8x8xf32> to vector<8x8xbf16>
    %cst_42 = arith.constant dense<0.000000e+00> : vector<8x8xf32>
    %136 = tpu.matmul %134, %135, %cst_42 {dimension_numbers = #tpu.dot_dimension_numbers<[1], [0], [0], [1], [0, 0, 1, 1], [], []>} : vector<8x8xbf16>, vector<8x8xbf16>, vector<8x8xf32> -> vector<8x8xf32>
    %137 = vector.extract_strided_slice %121 {offsets = [24, 0], sizes = [8, 8], strides = [1, 1]} : vector<32x8xf32> to vector<8x8xf32>
    %138 = vector.extract_strided_slice %85 {offsets = [0, 24], sizes = [8, 8], strides = [1, 1]} : vector<8x32xf32> to vector<8x8xf32>
    %139 = arith.truncf %137 : vector<8x8xf32> to vector<8x8xbf16>
    %140 = arith.truncf %138 : vector<8x8xf32> to vector<8x8xbf16>
    %cst_43 = arith.constant dense<0.000000e+00> : vector<8x8xf32>
    %141 = tpu.matmul %139, %140, %cst_43 {dimension_numbers = #tpu.dot_dimension_numbers<[1], [0], [0], [1], [0, 0, 1, 1], [], []>} : vector<8x8xbf16>, vector<8x8xbf16>, vector<8x8xf32> -> vector<8x8xf32>
    %142 = tpu.concatenate %126, %131, %136, %141 in 1 : vector<8x8xf32>, vector<8x8xf32>, vector<8x8xf32>, vector<8x8xf32> -> vector<8x32xf32>
    %143 = tpu.concatenate %82, %142 in 0 : vector<8x32xf32>, vector<8x32xf32> -> vector<16x32xf32>
    %144 = arith.truncf %143 : vector<16x32xf32> to vector<16x32xbf16>
    %cst_44 = arith.constant dense<0.000000e+00> : vector<16x32xf32>
    %145 = tpu.matmul %144, %21, %cst_44 {dimension_numbers = #tpu.dot_dimension_numbers<[1], [0], [0], [1], [0, 0, 1, 1], [], []>} : vector<16x32xbf16>, vector<32x32xbf16>, vector<16x32xf32> -> vector<16x32xf32>
    %146 = vector.broadcast %22 : vector<1x32xf32> to vector<16x32xf32>
    %147 = arith.addf %145, %146 : vector<16x32xf32>
    %148 = arith.addf %0, %147 : vector<16x32xf32>
    %c0_45 = arith.constant 0 : index
    %c0_46 = arith.constant 0 : index
    %149 = vector.load %arg23[%c0_45, %c0_46] : memref<1x32xf32, #tpu.memory_space<vmem>>, vector<1x32xf32>
    %c0_47 = arith.constant 0 : index
    %c0_48 = arith.constant 0 : index
    %150 = vector.load %arg24[%c0_47, %c0_48] : memref<1x32xf32, #tpu.memory_space<vmem>>, vector<1x32xf32>
    %cst_49 = arith.constant dense<0.000000e+00> : vector<16xf32>
    %151 = vector.multi_reduction <add>, %148, %cst_49 [1] : vector<16x32xf32> to vector<16xf32>
    %152 = vector.shape_cast %151 : vector<16xf32> to vector<16x1xf32>
    %cst_50 = arith.constant 3.200000e+01 : f32
    %153 = vector.broadcast %cst_50 : f32 to vector<16x1xf32>
    %154 = arith.divf %152, %153 : vector<16x1xf32>
    %155 = vector.broadcast %154 : vector<16x1xf32> to vector<16x32xf32>
    %156 = arith.subf %148, %155 : vector<16x32xf32>
    %157 = arith.mulf %156, %156 : vector<16x32xf32>
    %cst_51 = arith.constant dense<0.000000e+00> : vector<16xf32>
    %158 = vector.multi_reduction <add>, %157, %cst_51 [1] : vector<16x32xf32> to vector<16xf32>
    %159 = vector.shape_cast %158 : vector<16xf32> to vector<16x1xf32>
    %cst_52 = arith.constant 3.200000e+01 : f32
    %160 = vector.broadcast %cst_52 : f32 to vector<16x1xf32>
    %161 = arith.divf %159, %160 : vector<16x1xf32>
    %cst_53 = arith.constant 9.99999974E-6 : f32
    %162 = vector.broadcast %cst_53 : f32 to vector<16x1xf32>
    %163 = arith.addf %161, %162 : vector<16x1xf32>
    %164 = math.rsqrt %163 : vector<16x1xf32>
    %165 = vector.broadcast %164 : vector<16x1xf32> to vector<16x32xf32>
    %166 = arith.mulf %156, %165 : vector<16x32xf32>
    %167 = vector.broadcast %149 : vector<1x32xf32> to vector<16x32xf32>
    %168 = arith.mulf %166, %167 : vector<16x32xf32>
    %169 = vector.broadcast %150 : vector<1x32xf32> to vector<16x32xf32>
    %170 = arith.addf %168, %169 : vector<16x32xf32>
    %171 = arith.addf %170, %1 : vector<16x32xf32>
    %c0_54 = arith.constant 0 : index
    %c0_55 = arith.constant 0 : index
    %172 = vector.load %arg11[%c0_54, %c0_55] : memref<32x32xbf16, #tpu.memory_space<vmem>>, vector<32x32xbf16>
    %173 = arith.truncf %171 : vector<16x32xf32> to vector<16x32xbf16>
    %cst_56 = arith.constant dense<0.000000e+00> : vector<16x32xf32>
    %174 = tpu.matmul %173, %172, %cst_56 {dimension_numbers = #tpu.dot_dimension_numbers<[1], [0], [0], [1], [0, 0, 1, 1], [], []>} : vector<16x32xbf16>, vector<32x32xbf16>, vector<16x32xf32> -> vector<16x32xf32>
    %c0_57 = arith.constant 0 : index
    %c0_58 = arith.constant 0 : index
    %175 = vector.load %arg12[%c0_57, %c0_58] : memref<1x32xf32, #tpu.memory_space<vmem>>, vector<1x32xf32>
    %176 = vector.broadcast %175 : vector<1x32xf32> to vector<16x32xf32>
    %177 = arith.addf %174, %176 : vector<16x32xf32>
    %cst_59 = arith.constant 0.353553385 : f32
    %178 = vector.broadcast %cst_59 : f32 to vector<16x32xf32>
    %179 = arith.mulf %177, %178 : vector<16x32xf32>
    %c0_60 = arith.constant 0 : index
    %c0_61 = arith.constant 0 : index
    %180 = vector.load %arg13[%c0_60, %c0_61] : memref<32x32xbf16, #tpu.memory_space<vmem>>, vector<32x32xbf16>
    %cst_62 = arith.constant dense<0.000000e+00> : vector<32x32xf32>
    %181 = tpu.matmul %3, %180, %cst_62 {dimension_numbers = #tpu.dot_dimension_numbers<[1], [0], [0], [1], [0, 0, 1, 1], [], []>} : vector<32x32xbf16>, vector<32x32xbf16>, vector<32x32xf32> -> vector<32x32xf32>
    %c0_63 = arith.constant 0 : index
    %c0_64 = arith.constant 0 : index
    %182 = vector.load %arg14[%c0_63, %c0_64] : memref<1x32xf32, #tpu.memory_space<vmem>>, vector<1x32xf32>
    %183 = vector.broadcast %182 : vector<1x32xf32> to vector<32x32xf32>
    %184 = arith.addf %181, %183 : vector<32x32xf32>
    %c0_65 = arith.constant 0 : index
    %c0_66 = arith.constant 0 : index
    %185 = vector.load %arg15[%c0_65, %c0_66] : memref<32x32xbf16, #tpu.memory_space<vmem>>, vector<32x32xbf16>
    %cst_67 = arith.constant dense<0.000000e+00> : vector<32x32xf32>
    %186 = tpu.matmul %2, %185, %cst_67 {dimension_numbers = #tpu.dot_dimension_numbers<[1], [0], [0], [1], [0, 0, 1, 1], [], []>} : vector<32x32xbf16>, vector<32x32xbf16>, vector<32x32xf32> -> vector<32x32xf32>
    %c0_68 = arith.constant 0 : index
    %c0_69 = arith.constant 0 : index
    %187 = vector.load %arg16[%c0_68, %c0_69] : memref<1x32xf32, #tpu.memory_space<vmem>>, vector<1x32xf32>
    %188 = vector.broadcast %187 : vector<1x32xf32> to vector<32x32xf32>
    %189 = arith.addf %186, %188 : vector<32x32xf32>
    %c0_70 = arith.constant 0 : index
    %c0_71 = arith.constant 0 : index
    %190 = vector.load %arg17[%c0_70, %c0_71] : memref<32x32xbf16, #tpu.memory_space<vmem>>, vector<32x32xbf16>
    %c0_72 = arith.constant 0 : index
    %c0_73 = arith.constant 0 : index
    %191 = vector.load %arg18[%c0_72, %c0_73] : memref<1x32xf32, #tpu.memory_space<vmem>>, vector<1x32xf32>
    %192 = vector.extract_strided_slice %179 {offsets = [0, 0], sizes = [8, 32], strides = [1, 1]} : vector<16x32xf32> to vector<8x32xf32>
    %193 = vector.extract_strided_slice %184 {offsets = [0, 0], sizes = [16, 32], strides = [1, 1]} : vector<32x32xf32> to vector<16x32xf32>
    %194 = vector.extract_strided_slice %189 {offsets = [0, 0], sizes = [16, 32], strides = [1, 1]} : vector<32x32xf32> to vector<16x32xf32>
    %195 = vector.extract_strided_slice %192 {offsets = [0, 0], sizes = [8, 8], strides = [1, 1]} : vector<8x32xf32> to vector<8x8xf32>
    %196 = vector.extract_strided_slice %193 {offsets = [0, 0], sizes = [16, 8], strides = [1, 1]} : vector<16x32xf32> to vector<16x8xf32>
    %197 = arith.truncf %195 : vector<8x8xf32> to vector<8x8xbf16>
    %198 = arith.truncf %196 : vector<16x8xf32> to vector<16x8xbf16>
    %cst_74 = arith.constant dense<0.000000e+00> : vector<8x16xf32>
    %199 = tpu.matmul %197, %198, %cst_74 {dimension_numbers = #tpu.dot_dimension_numbers<[1], [1], [0], [0], [0, 0, 1, 0], [], []>} : vector<8x8xbf16>, vector<16x8xbf16>, vector<8x16xf32> -> vector<8x16xf32>
    %200 = vector.extract_strided_slice %192 {offsets = [0, 8], sizes = [8, 8], strides = [1, 1]} : vector<8x32xf32> to vector<8x8xf32>
    %201 = vector.extract_strided_slice %193 {offsets = [0, 8], sizes = [16, 8], strides = [1, 1]} : vector<16x32xf32> to vector<16x8xf32>
    %202 = arith.truncf %200 : vector<8x8xf32> to vector<8x8xbf16>
    %203 = arith.truncf %201 : vector<16x8xf32> to vector<16x8xbf16>
    %cst_75 = arith.constant dense<0.000000e+00> : vector<8x16xf32>
    %204 = tpu.matmul %202, %203, %cst_75 {dimension_numbers = #tpu.dot_dimension_numbers<[1], [1], [0], [0], [0, 0, 1, 0], [], []>} : vector<8x8xbf16>, vector<16x8xbf16>, vector<8x16xf32> -> vector<8x16xf32>
    %205 = vector.extract_strided_slice %192 {offsets = [0, 16], sizes = [8, 8], strides = [1, 1]} : vector<8x32xf32> to vector<8x8xf32>
    %206 = vector.extract_strided_slice %193 {offsets = [0, 16], sizes = [16, 8], strides = [1, 1]} : vector<16x32xf32> to vector<16x8xf32>
    %207 = arith.truncf %205 : vector<8x8xf32> to vector<8x8xbf16>
    %208 = arith.truncf %206 : vector<16x8xf32> to vector<16x8xbf16>
    %cst_76 = arith.constant dense<0.000000e+00> : vector<8x16xf32>
    %209 = tpu.matmul %207, %208, %cst_76 {dimension_numbers = #tpu.dot_dimension_numbers<[1], [1], [0], [0], [0, 0, 1, 0], [], []>} : vector<8x8xbf16>, vector<16x8xbf16>, vector<8x16xf32> -> vector<8x16xf32>
    %210 = vector.extract_strided_slice %192 {offsets = [0, 24], sizes = [8, 8], strides = [1, 1]} : vector<8x32xf32> to vector<8x8xf32>
    %211 = vector.extract_strided_slice %193 {offsets = [0, 24], sizes = [16, 8], strides = [1, 1]} : vector<16x32xf32> to vector<16x8xf32>
    %212 = arith.truncf %210 : vector<8x8xf32> to vector<8x8xbf16>
    %213 = arith.truncf %211 : vector<16x8xf32> to vector<16x8xbf16>
    %cst_77 = arith.constant dense<0.000000e+00> : vector<8x16xf32>
    %214 = tpu.matmul %212, %213, %cst_77 {dimension_numbers = #tpu.dot_dimension_numbers<[1], [1], [0], [0], [0, 0, 1, 0], [], []>} : vector<8x8xbf16>, vector<16x8xbf16>, vector<8x16xf32> -> vector<8x16xf32>
    %215 = tpu.concatenate %199, %204, %209, %214 in 0 : vector<8x16xf32>, vector<8x16xf32>, vector<8x16xf32>, vector<8x16xf32> -> vector<32x16xf32>
    %216 = tpu.iota {dimensions = array<i32: 1>} : vector<32x16xi32>
    %c13_i32 = arith.constant 13 : i32
    %217 = vector.broadcast %c13_i32 : i32 to vector<32x16xi32>
    %218 = arith.cmpi slt, %216, %217 : vector<32x16xi32>
    %cst_78 = arith.constant -1.000000e+30 : f32
    %219 = vector.broadcast %cst_78 : f32 to vector<32x16xf32>
    %220 = arith.select %218, %215, %219 : vector<32x16xi1>, vector<32x16xf32>
    %cst_79 = arith.constant dense<0xFF800000> : vector<32xf32>
    %221 = vector.multi_reduction <maximumf>, %220, %cst_79 [1] : vector<32x16xf32> to vector<32xf32>
    %222 = vector.shape_cast %221 : vector<32xf32> to vector<32x1xf32>
    %223 = vector.broadcast %222 : vector<32x1xf32> to vector<32x16xf32>
    %224 = arith.subf %220, %223 : vector<32x16xf32>
    %225 = math.exp %224 : vector<32x16xf32>
    %cst_80 = arith.constant dense<0.000000e+00> : vector<32xf32>
    %226 = vector.multi_reduction <add>, %225, %cst_80 [1] : vector<32x16xf32> to vector<32xf32>
    %227 = vector.shape_cast %226 : vector<32xf32> to vector<32x1xf32>
    %228 = tpu.reciprocal %227 {approx = true} : vector<32x1xf32> -> vector<32x1xf32>
    %229 = vector.broadcast %228 : vector<32x1xf32> to vector<32x16xf32>
    %230 = arith.mulf %225, %229 : vector<32x16xf32>
    %231 = vector.extract_strided_slice %230 {offsets = [0, 0], sizes = [8, 16], strides = [1, 1]} : vector<32x16xf32> to vector<8x16xf32>
    %232 = vector.extract_strided_slice %194 {offsets = [0, 0], sizes = [16, 8], strides = [1, 1]} : vector<16x32xf32> to vector<16x8xf32>
    %233 = arith.truncf %231 : vector<8x16xf32> to vector<8x16xbf16>
    %234 = arith.truncf %232 : vector<16x8xf32> to vector<16x8xbf16>
    %cst_81 = arith.constant dense<0.000000e+00> : vector<8x8xf32>
    %235 = tpu.matmul %233, %234, %cst_81 {dimension_numbers = #tpu.dot_dimension_numbers<[1], [0], [0], [1], [0, 0, 1, 1], [], []>} : vector<8x16xbf16>, vector<16x8xbf16>, vector<8x8xf32> -> vector<8x8xf32>
    %236 = vector.extract_strided_slice %230 {offsets = [8, 0], sizes = [8, 16], strides = [1, 1]} : vector<32x16xf32> to vector<8x16xf32>
    %237 = vector.extract_strided_slice %194 {offsets = [0, 8], sizes = [16, 8], strides = [1, 1]} : vector<16x32xf32> to vector<16x8xf32>
    %238 = arith.truncf %236 : vector<8x16xf32> to vector<8x16xbf16>
    %239 = arith.truncf %237 : vector<16x8xf32> to vector<16x8xbf16>
    %cst_82 = arith.constant dense<0.000000e+00> : vector<8x8xf32>
    %240 = tpu.matmul %238, %239, %cst_82 {dimension_numbers = #tpu.dot_dimension_numbers<[1], [0], [0], [1], [0, 0, 1, 1], [], []>} : vector<8x16xbf16>, vector<16x8xbf16>, vector<8x8xf32> -> vector<8x8xf32>
    %241 = vector.extract_strided_slice %230 {offsets = [16, 0], sizes = [8, 16], strides = [1, 1]} : vector<32x16xf32> to vector<8x16xf32>
    %242 = vector.extract_strided_slice %194 {offsets = [0, 16], sizes = [16, 8], strides = [1, 1]} : vector<16x32xf32> to vector<16x8xf32>
    %243 = arith.truncf %241 : vector<8x16xf32> to vector<8x16xbf16>
    %244 = arith.truncf %242 : vector<16x8xf32> to vector<16x8xbf16>
    %cst_83 = arith.constant dense<0.000000e+00> : vector<8x8xf32>
    %245 = tpu.matmul %243, %244, %cst_83 {dimension_numbers = #tpu.dot_dimension_numbers<[1], [0], [0], [1], [0, 0, 1, 1], [], []>} : vector<8x16xbf16>, vector<16x8xbf16>, vector<8x8xf32> -> vector<8x8xf32>
    %246 = vector.extract_strided_slice %230 {offsets = [24, 0], sizes = [8, 16], strides = [1, 1]} : vector<32x16xf32> to vector<8x16xf32>
    %247 = vector.extract_strided_slice %194 {offsets = [0, 24], sizes = [16, 8], strides = [1, 1]} : vector<16x32xf32> to vector<16x8xf32>
    %248 = arith.truncf %246 : vector<8x16xf32> to vector<8x16xbf16>
    %249 = arith.truncf %247 : vector<16x8xf32> to vector<16x8xbf16>
    %cst_84 = arith.constant dense<0.000000e+00> : vector<8x8xf32>
    %250 = tpu.matmul %248, %249, %cst_84 {dimension_numbers = #tpu.dot_dimension_numbers<[1], [0], [0], [1], [0, 0, 1, 1], [], []>} : vector<8x16xbf16>, vector<16x8xbf16>, vector<8x8xf32> -> vector<8x8xf32>
    %251 = tpu.concatenate %235, %240, %245, %250 in 1 : vector<8x8xf32>, vector<8x8xf32>, vector<8x8xf32>, vector<8x8xf32> -> vector<8x32xf32>
    %252 = vector.extract_strided_slice %179 {offsets = [8, 0], sizes = [8, 32], strides = [1, 1]} : vector<16x32xf32> to vector<8x32xf32>
    %253 = vector.extract_strided_slice %184 {offsets = [16, 0], sizes = [16, 32], strides = [1, 1]} : vector<32x32xf32> to vector<16x32xf32>
    %254 = vector.extract_strided_slice %189 {offsets = [16, 0], sizes = [16, 32], strides = [1, 1]} : vector<32x32xf32> to vector<16x32xf32>
    %255 = vector.extract_strided_slice %252 {offsets = [0, 0], sizes = [8, 8], strides = [1, 1]} : vector<8x32xf32> to vector<8x8xf32>
    %256 = vector.extract_strided_slice %253 {offsets = [0, 0], sizes = [16, 8], strides = [1, 1]} : vector<16x32xf32> to vector<16x8xf32>
    %257 = arith.truncf %255 : vector<8x8xf32> to vector<8x8xbf16>
    %258 = arith.truncf %256 : vector<16x8xf32> to vector<16x8xbf16>
    %cst_85 = arith.constant dense<0.000000e+00> : vector<8x16xf32>
    %259 = tpu.matmul %257, %258, %cst_85 {dimension_numbers = #tpu.dot_dimension_numbers<[1], [1], [0], [0], [0, 0, 1, 0], [], []>} : vector<8x8xbf16>, vector<16x8xbf16>, vector<8x16xf32> -> vector<8x16xf32>
    %260 = vector.extract_strided_slice %252 {offsets = [0, 8], sizes = [8, 8], strides = [1, 1]} : vector<8x32xf32> to vector<8x8xf32>
    %261 = vector.extract_strided_slice %253 {offsets = [0, 8], sizes = [16, 8], strides = [1, 1]} : vector<16x32xf32> to vector<16x8xf32>
    %262 = arith.truncf %260 : vector<8x8xf32> to vector<8x8xbf16>
    %263 = arith.truncf %261 : vector<16x8xf32> to vector<16x8xbf16>
    %cst_86 = arith.constant dense<0.000000e+00> : vector<8x16xf32>
    %264 = tpu.matmul %262, %263, %cst_86 {dimension_numbers = #tpu.dot_dimension_numbers<[1], [1], [0], [0], [0, 0, 1, 0], [], []>} : vector<8x8xbf16>, vector<16x8xbf16>, vector<8x16xf32> -> vector<8x16xf32>
    %265 = vector.extract_strided_slice %252 {offsets = [0, 16], sizes = [8, 8], strides = [1, 1]} : vector<8x32xf32> to vector<8x8xf32>
    %266 = vector.extract_strided_slice %253 {offsets = [0, 16], sizes = [16, 8], strides = [1, 1]} : vector<16x32xf32> to vector<16x8xf32>
    %267 = arith.truncf %265 : vector<8x8xf32> to vector<8x8xbf16>
    %268 = arith.truncf %266 : vector<16x8xf32> to vector<16x8xbf16>
    %cst_87 = arith.constant dense<0.000000e+00> : vector<8x16xf32>
    %269 = tpu.matmul %267, %268, %cst_87 {dimension_numbers = #tpu.dot_dimension_numbers<[1], [1], [0], [0], [0, 0, 1, 0], [], []>} : vector<8x8xbf16>, vector<16x8xbf16>, vector<8x16xf32> -> vector<8x16xf32>
    %270 = vector.extract_strided_slice %252 {offsets = [0, 24], sizes = [8, 8], strides = [1, 1]} : vector<8x32xf32> to vector<8x8xf32>
    %271 = vector.extract_strided_slice %253 {offsets = [0, 24], sizes = [16, 8], strides = [1, 1]} : vector<16x32xf32> to vector<16x8xf32>
    %272 = arith.truncf %270 : vector<8x8xf32> to vector<8x8xbf16>
    %273 = arith.truncf %271 : vector<16x8xf32> to vector<16x8xbf16>
    %cst_88 = arith.constant dense<0.000000e+00> : vector<8x16xf32>
    %274 = tpu.matmul %272, %273, %cst_88 {dimension_numbers = #tpu.dot_dimension_numbers<[1], [1], [0], [0], [0, 0, 1, 0], [], []>} : vector<8x8xbf16>, vector<16x8xbf16>, vector<8x16xf32> -> vector<8x16xf32>
    %275 = tpu.concatenate %259, %264, %269, %274 in 0 : vector<8x16xf32>, vector<8x16xf32>, vector<8x16xf32>, vector<8x16xf32> -> vector<32x16xf32>
    %276 = tpu.iota {dimensions = array<i32: 1>} : vector<32x16xi32>
    %c13_i32_89 = arith.constant 13 : i32
    %277 = vector.broadcast %c13_i32_89 : i32 to vector<32x16xi32>
    %278 = arith.cmpi slt, %276, %277 : vector<32x16xi32>
    %cst_90 = arith.constant -1.000000e+30 : f32
    %279 = vector.broadcast %cst_90 : f32 to vector<32x16xf32>
    %280 = arith.select %278, %275, %279 : vector<32x16xi1>, vector<32x16xf32>
    %cst_91 = arith.constant dense<0xFF800000> : vector<32xf32>
    %281 = vector.multi_reduction <maximumf>, %280, %cst_91 [1] : vector<32x16xf32> to vector<32xf32>
    %282 = vector.shape_cast %281 : vector<32xf32> to vector<32x1xf32>
    %283 = vector.broadcast %282 : vector<32x1xf32> to vector<32x16xf32>
    %284 = arith.subf %280, %283 : vector<32x16xf32>
    %285 = math.exp %284 : vector<32x16xf32>
    %cst_92 = arith.constant dense<0.000000e+00> : vector<32xf32>
    %286 = vector.multi_reduction <add>, %285, %cst_92 [1] : vector<32x16xf32> to vector<32xf32>
    %287 = vector.shape_cast %286 : vector<32xf32> to vector<32x1xf32>
    %288 = tpu.reciprocal %287 {approx = true} : vector<32x1xf32> -> vector<32x1xf32>
    %289 = vector.broadcast %288 : vector<32x1xf32> to vector<32x16xf32>
    %290 = arith.mulf %285, %289 : vector<32x16xf32>
    %291 = vector.extract_strided_slice %290 {offsets = [0, 0], sizes = [8, 16], strides = [1, 1]} : vector<32x16xf32> to vector<8x16xf32>
    %292 = vector.extract_strided_slice %254 {offsets = [0, 0], sizes = [16, 8], strides = [1, 1]} : vector<16x32xf32> to vector<16x8xf32>
    %293 = arith.truncf %291 : vector<8x16xf32> to vector<8x16xbf16>
    %294 = arith.truncf %292 : vector<16x8xf32> to vector<16x8xbf16>
    %cst_93 = arith.constant dense<0.000000e+00> : vector<8x8xf32>
    %295 = tpu.matmul %293, %294, %cst_93 {dimension_numbers = #tpu.dot_dimension_numbers<[1], [0], [0], [1], [0, 0, 1, 1], [], []>} : vector<8x16xbf16>, vector<16x8xbf16>, vector<8x8xf32> -> vector<8x8xf32>
    %296 = vector.extract_strided_slice %290 {offsets = [8, 0], sizes = [8, 16], strides = [1, 1]} : vector<32x16xf32> to vector<8x16xf32>
    %297 = vector.extract_strided_slice %254 {offsets = [0, 8], sizes = [16, 8], strides = [1, 1]} : vector<16x32xf32> to vector<16x8xf32>
    %298 = arith.truncf %296 : vector<8x16xf32> to vector<8x16xbf16>
    %299 = arith.truncf %297 : vector<16x8xf32> to vector<16x8xbf16>
    %cst_94 = arith.constant dense<0.000000e+00> : vector<8x8xf32>
    %300 = tpu.matmul %298, %299, %cst_94 {dimension_numbers = #tpu.dot_dimension_numbers<[1], [0], [0], [1], [0, 0, 1, 1], [], []>} : vector<8x16xbf16>, vector<16x8xbf16>, vector<8x8xf32> -> vector<8x8xf32>
    %301 = vector.extract_strided_slice %290 {offsets = [16, 0], sizes = [8, 16], strides = [1, 1]} : vector<32x16xf32> to vector<8x16xf32>
    %302 = vector.extract_strided_slice %254 {offsets = [0, 16], sizes = [16, 8], strides = [1, 1]} : vector<16x32xf32> to vector<16x8xf32>
    %303 = arith.truncf %301 : vector<8x16xf32> to vector<8x16xbf16>
    %304 = arith.truncf %302 : vector<16x8xf32> to vector<16x8xbf16>
    %cst_95 = arith.constant dense<0.000000e+00> : vector<8x8xf32>
    %305 = tpu.matmul %303, %304, %cst_95 {dimension_numbers = #tpu.dot_dimension_numbers<[1], [0], [0], [1], [0, 0, 1, 1], [], []>} : vector<8x16xbf16>, vector<16x8xbf16>, vector<8x8xf32> -> vector<8x8xf32>
    %306 = vector.extract_strided_slice %290 {offsets = [24, 0], sizes = [8, 16], strides = [1, 1]} : vector<32x16xf32> to vector<8x16xf32>
    %307 = vector.extract_strided_slice %254 {offsets = [0, 24], sizes = [16, 8], strides = [1, 1]} : vector<16x32xf32> to vector<16x8xf32>
    %308 = arith.truncf %306 : vector<8x16xf32> to vector<8x16xbf16>
    %309 = arith.truncf %307 : vector<16x8xf32> to vector<16x8xbf16>
    %cst_96 = arith.constant dense<0.000000e+00> : vector<8x8xf32>
    %310 = tpu.matmul %308, %309, %cst_96 {dimension_numbers = #tpu.dot_dimension_numbers<[1], [0], [0], [1], [0, 0, 1, 1], [], []>} : vector<8x16xbf16>, vector<16x8xbf16>, vector<8x8xf32> -> vector<8x8xf32>
    %311 = tpu.concatenate %295, %300, %305, %310 in 1 : vector<8x8xf32>, vector<8x8xf32>, vector<8x8xf32>, vector<8x8xf32> -> vector<8x32xf32>
    %312 = tpu.concatenate %251, %311 in 0 : vector<8x32xf32>, vector<8x32xf32> -> vector<16x32xf32>
    %313 = arith.truncf %312 : vector<16x32xf32> to vector<16x32xbf16>
    %cst_97 = arith.constant dense<0.000000e+00> : vector<16x32xf32>
    %314 = tpu.matmul %313, %190, %cst_97 {dimension_numbers = #tpu.dot_dimension_numbers<[1], [0], [0], [1], [0, 0, 1, 1], [], []>} : vector<16x32xbf16>, vector<32x32xbf16>, vector<16x32xf32> -> vector<16x32xf32>
    %315 = vector.broadcast %191 : vector<1x32xf32> to vector<16x32xf32>
    %316 = arith.addf %314, %315 : vector<16x32xf32>
    %317 = arith.addf %170, %316 : vector<16x32xf32>
    %c0_98 = arith.constant 0 : index
    %c0_99 = arith.constant 0 : index
    %318 = vector.load %arg25[%c0_98, %c0_99] : memref<1x32xf32, #tpu.memory_space<vmem>>, vector<1x32xf32>
    %c0_100 = arith.constant 0 : index
    %c0_101 = arith.constant 0 : index
    %319 = vector.load %arg26[%c0_100, %c0_101] : memref<1x32xf32, #tpu.memory_space<vmem>>, vector<1x32xf32>
    %cst_102 = arith.constant dense<0.000000e+00> : vector<16xf32>
    %320 = vector.multi_reduction <add>, %317, %cst_102 [1] : vector<16x32xf32> to vector<16xf32>
    %321 = vector.shape_cast %320 : vector<16xf32> to vector<16x1xf32>
    %cst_103 = arith.constant 3.200000e+01 : f32
    %322 = vector.broadcast %cst_103 : f32 to vector<16x1xf32>
    %323 = arith.divf %321, %322 : vector<16x1xf32>
    %324 = vector.broadcast %323 : vector<16x1xf32> to vector<16x32xf32>
    %325 = arith.subf %317, %324 : vector<16x32xf32>
    %326 = arith.mulf %325, %325 : vector<16x32xf32>
    %cst_104 = arith.constant dense<0.000000e+00> : vector<16xf32>
    %327 = vector.multi_reduction <add>, %326, %cst_104 [1] : vector<16x32xf32> to vector<16xf32>
    %328 = vector.shape_cast %327 : vector<16xf32> to vector<16x1xf32>
    %cst_105 = arith.constant 3.200000e+01 : f32
    %329 = vector.broadcast %cst_105 : f32 to vector<16x1xf32>
    %330 = arith.divf %328, %329 : vector<16x1xf32>
    %cst_106 = arith.constant 9.99999974E-6 : f32
    %331 = vector.broadcast %cst_106 : f32 to vector<16x1xf32>
    %332 = arith.addf %330, %331 : vector<16x1xf32>
    %333 = math.rsqrt %332 : vector<16x1xf32>
    %334 = vector.broadcast %333 : vector<16x1xf32> to vector<16x32xf32>
    %335 = arith.mulf %325, %334 : vector<16x32xf32>
    %336 = vector.broadcast %318 : vector<1x32xf32> to vector<16x32xf32>
    %337 = arith.mulf %335, %336 : vector<16x32xf32>
    %338 = vector.broadcast %319 : vector<1x32xf32> to vector<16x32xf32>
    %339 = arith.addf %337, %338 : vector<16x32xf32>
    %c0_107 = arith.constant 0 : index
    %c0_108 = arith.constant 0 : index
    %340 = vector.load %arg19[%c0_107, %c0_108] : memref<32x64xbf16, #tpu.memory_space<vmem>>, vector<32x64xbf16>
    %341 = arith.truncf %339 : vector<16x32xf32> to vector<16x32xbf16>
    %cst_109 = arith.constant dense<0.000000e+00> : vector<16x64xf32>
    %342 = tpu.matmul %341, %340, %cst_109 {dimension_numbers = #tpu.dot_dimension_numbers<[1], [0], [0], [1], [0, 0, 1, 1], [], []>} : vector<16x32xbf16>, vector<32x64xbf16>, vector<16x64xf32> -> vector<16x64xf32>
    %c0_110 = arith.constant 0 : index
    %c0_111 = arith.constant 0 : index
    %343 = vector.load %arg20[%c0_110, %c0_111] : memref<1x64xf32, #tpu.memory_space<vmem>>, vector<1x64xf32>
    %344 = vector.broadcast %343 : vector<1x64xf32> to vector<16x64xf32>
    %345 = arith.addf %342, %344 : vector<16x64xf32>
    %cst_112 = arith.constant 0.000000e+00 : f32
    %346 = vector.broadcast %cst_112 : f32 to vector<16x64xf32>
    %347 = arith.maximumf %345, %346 : vector<16x64xf32>
    %c0_113 = arith.constant 0 : index
    %c0_114 = arith.constant 0 : index
    %348 = vector.load %arg21[%c0_113, %c0_114] : memref<64x32xbf16, #tpu.memory_space<vmem>>, vector<64x32xbf16>
    %349 = arith.truncf %347 : vector<16x64xf32> to vector<16x64xbf16>
    %cst_115 = arith.constant dense<0.000000e+00> : vector<16x32xf32>
    %350 = tpu.matmul %349, %348, %cst_115 {dimension_numbers = #tpu.dot_dimension_numbers<[1], [0], [0], [1], [0, 0, 1, 1], [], []>} : vector<16x64xbf16>, vector<64x32xbf16>, vector<16x32xf32> -> vector<16x32xf32>
    %c0_116 = arith.constant 0 : index
    %c0_117 = arith.constant 0 : index
    %351 = vector.load %arg22[%c0_116, %c0_117] : memref<1x32xf32, #tpu.memory_space<vmem>>, vector<1x32xf32>
    %352 = vector.broadcast %351 : vector<1x32xf32> to vector<16x32xf32>
    %353 = arith.addf %350, %352 : vector<16x32xf32>
    %354 = arith.addf %339, %353 : vector<16x32xf32>
    %c0_118 = arith.constant 0 : index
    %c0_119 = arith.constant 0 : index
    %355 = vector.load %arg27[%c0_118, %c0_119] : memref<1x32xf32, #tpu.memory_space<vmem>>, vector<1x32xf32>
    %c0_120 = arith.constant 0 : index
    %c0_121 = arith.constant 0 : index
    %356 = vector.load %arg28[%c0_120, %c0_121] : memref<1x32xf32, #tpu.memory_space<vmem>>, vector<1x32xf32>
    %cst_122 = arith.constant dense<0.000000e+00> : vector<16xf32>
    %357 = vector.multi_reduction <add>, %354, %cst_122 [1] : vector<16x32xf32> to vector<16xf32>
    %358 = vector.shape_cast %357 : vector<16xf32> to vector<16x1xf32>
    %cst_123 = arith.constant 3.200000e+01 : f32
    %359 = vector.broadcast %cst_123 : f32 to vector<16x1xf32>
    %360 = arith.divf %358, %359 : vector<16x1xf32>
    %361 = vector.broadcast %360 : vector<16x1xf32> to vector<16x32xf32>
    %362 = arith.subf %354, %361 : vector<16x32xf32>
    %363 = arith.mulf %362, %362 : vector<16x32xf32>
    %cst_124 = arith.constant dense<0.000000e+00> : vector<16xf32>
    %364 = vector.multi_reduction <add>, %363, %cst_124 [1] : vector<16x32xf32> to vector<16xf32>
    %365 = vector.shape_cast %364 : vector<16xf32> to vector<16x1xf32>
    %cst_125 = arith.constant 3.200000e+01 : f32
    %366 = vector.broadcast %cst_125 : f32 to vector<16x1xf32>
    %367 = arith.divf %365, %366 : vector<16x1xf32>
    %cst_126 = arith.constant 9.99999974E-6 : f32
    %368 = vector.broadcast %cst_126 : f32 to vector<16x1xf32>
    %369 = arith.addf %367, %368 : vector<16x1xf32>
    %370 = math.rsqrt %369 : vector<16x1xf32>
    %371 = vector.broadcast %370 : vector<16x1xf32> to vector<16x32xf32>
    %372 = arith.mulf %362, %371 : vector<16x32xf32>
    %373 = vector.broadcast %355 : vector<1x32xf32> to vector<16x32xf32>
    %374 = arith.mulf %372, %373 : vector<16x32xf32>
    %375 = vector.broadcast %356 : vector<1x32xf32> to vector<16x32xf32>
    %376 = arith.addf %374, %375 : vector<16x32xf32>
    %c0_127 = arith.constant 0 : index
    %c0_128 = arith.constant 0 : index
    %377 = vector.load %arg29[%c0_127, %c0_128] : memref<16x32xf32, #tpu.memory_space<vmem>>, vector<16x32xf32>
    tpu.vector_store %arg29[%c0_127, %c0_128], %376 {strides = array<i32>} : memref<16x32xf32, #tpu.memory_space<vmem>>, vector<16x32xf32>,
    return
  }
  func.func @transform_0(%arg0: i32) -> (i32, i32) {
    %c0_i32 = arith.constant 0 : i32
    %c0_i32_0 = arith.constant 0 : i32
    return %arg0, %c0_i32 : i32, i32
  }
  func.func @transform_1(%arg0: i32) -> (i32, i32) {
    %c0_i32 = arith.constant 0 : i32
    %c0_i32_0 = arith.constant 0 : i32
    return %arg0, %c0_i32 : i32, i32
  }
  func.func @transform_2(%arg0: i32) -> (i32, i32) {
    %c0_i32 = arith.constant 0 : i32
    %c0_i32_0 = arith.constant 0 : i32
    return %arg0, %c0_i32 : i32, i32
  }
  func.func @transform_3(%arg0: i32) -> (i32, i32) {
    %c0_i32 = arith.constant 0 : i32
    %c0_i32_0 = arith.constant 0 : i32
    return %arg0, %c0_i32 : i32, i32
  }
  func.func @transform_4(%arg0: i32) -> (i32, i32) {
    %c0_i32 = arith.constant 0 : i32
    %c0_i32_0 = arith.constant 0 : i32
    %c0_i32_1 = arith.constant 0 : i32
    return %c0_i32, %c0_i32_0 : i32, i32
  }
  func.func @transform_5(%arg0: i32) -> (i32, i32) {
    %c0_i32 = arith.constant 0 : i32
    %c0_i32_0 = arith.constant 0 : i32
    %c0_i32_1 = arith.constant 0 : i32
    return %c0_i32, %c0_i32_0 : i32, i32
  }
  func.func @transform_6(%arg0: i32) -> (i32, i32) {
    %c0_i32 = arith.constant 0 : i32
    %c0_i32_0 = arith.constant 0 : i32
    %c0_i32_1 = arith.constant 0 : i32
    return %c0_i32, %c0_i32_0 : i32, i32
  }
  func.func @transform_7(%arg0: i32) -> (i32, i32) {
    %c0_i32 = arith.constant 0 : i32
    %c0_i32_0 = arith.constant 0 : i32
    %c0_i32_1 = arith.constant 0 : i32
    return %c0_i32, %c0_i32_0 : i32, i32
  }
  func.func @transform_8(%arg0: i32) -> (i32, i32) {
    %c0_i32 = arith.constant 0 : i32
    %c0_i32_0 = arith.constant 0 : i32
    %c0_i32_1 = arith.constant 0 : i32
    return %c0_i32, %c0_i32_0 : i32, i32
  }
  func.func @transform_9(%arg0: i32) -> (i32, i32) {
    %c0_i32 = arith.constant 0 : i32
    %c0_i32_0 = arith.constant 0 : i32
    %c0_i32_1 = arith.constant 0 : i32
    return %c0_i32, %c0_i32_0 : i32, i32
  }
  func.func @transform_10(%arg0: i32) -> (i32, i32) {
    %c0_i32 = arith.constant 0 : i32
    %c0_i32_0 = arith.constant 0 : i32
    %c0_i32_1 = arith.constant 0 : i32
    return %c0_i32, %c0_i32_0 : i32, i32
  }
  func.func @transform_11(%arg0: i32) -> (i32, i32) {
    %c0_i32 = arith.constant 0 : i32
    %c0_i32_0 = arith.constant 0 : i32
    %c0_i32_1 = arith.constant 0 : i32
    return %c0_i32, %c0_i32_0 : i32, i32
  }
  func.func @transform_12(%arg0: i32) -> (i32, i32) {
    %c0_i32 = arith.constant 0 : i32
    %c0_i32_0 = arith.constant 0 : i32
    %c0_i32_1 = arith.constant 0 : i32
    return %c0_i32, %c0_i32_0 : i32, i32
  }
  func.func @transform_13(%arg0: i32) -> (i32, i32) {
    %c0_i32 = arith.constant 0 : i32
    %c0_i32_0 = arith.constant 0 : i32
    %c0_i32_1 = arith.constant 0 : i32
    return %c0_i32, %c0_i32_0 : i32, i32
  }
  func.func @transform_14(%arg0: i32) -> (i32, i32) {
    %c0_i32 = arith.constant 0 : i32
    %c0_i32_0 = arith.constant 0 : i32
    %c0_i32_1 = arith.constant 0 : i32
    return %c0_i32, %c0_i32_0 : i32, i32
  }
  func.func @transform_15(%arg0: i32) -> (i32, i32) {
    %c0_i32 = arith.constant 0 : i32
    %c0_i32_0 = arith.constant 0 : i32
    %c0_i32_1 = arith.constant 0 : i32
    return %c0_i32, %c0_i32_0 : i32, i32
  }
  func.func @transform_16(%arg0: i32) -> (i32, i32) {
    %c0_i32 = arith.constant 0 : i32
    %c0_i32_0 = arith.constant 0 : i32
    %c0_i32_1 = arith.constant 0 : i32
    return %c0_i32, %c0_i32_0 : i32, i32
  }
  func.func @transform_17(%arg0: i32) -> (i32, i32) {
    %c0_i32 = arith.constant 0 : i32
    %c0_i32_0 = arith.constant 0 : i32
    %c0_i32_1 = arith.constant 0 : i32
    return %c0_i32, %c0_i32_0 : i32, i32
  }
  func.func @transform_18(%arg0: i32) -> (i32, i32) {
    %c0_i32 = arith.constant 0 : i32
    %c0_i32_0 = arith.constant 0 : i32
    %c0_i32_1 = arith.constant 0 : i32
    return %c0_i32, %c0_i32_0 : i32, i32
  }
  func.func @transform_19(%arg0: i32) -> (i32, i32) {
    %c0_i32 = arith.constant 0 : i32
    %c0_i32_0 = arith.constant 0 : i32
    %c0_i32_1 = arith.constant 0 : i32
    return %c0_i32, %c0_i32_0 : i32, i32
  }
  func.func @transform_20(%arg0: i32) -> (i32, i32) {
    %c0_i32 = arith.constant 0 : i32
    %c0_i32_0 = arith.constant 0 : i32
    %c0_i32_1 = arith.constant 0 : i32
    return %c0_i32, %c0_i32_0 : i32, i32
  }
  func.func @transform_21(%arg0: i32) -> (i32, i32) {
    %c0_i32 = arith.constant 0 : i32
    %c0_i32_0 = arith.constant 0 : i32
    %c0_i32_1 = arith.constant 0 : i32
    return %c0_i32, %c0_i32_0 : i32, i32
  }
  func.func @transform_22(%arg0: i32) -> (i32, i32) {
    %c0_i32 = arith.constant 0 : i32
    %c0_i32_0 = arith.constant 0 : i32
    %c0_i32_1 = arith.constant 0 : i32
    return %c0_i32, %c0_i32_0 : i32, i32
  }
  func.func @transform_23(%arg0: i32) -> (i32, i32) {
    %c0_i32 = arith.constant 0 : i32
    %c0_i32_0 = arith.constant 0 : i32
    %c0_i32_1 = arith.constant 0 : i32
    return %c0_i32, %c0_i32_0 : i32, i32
  }
  func.func @transform_24(%arg0: i32) -> (i32, i32) {
    %c0_i32 = arith.constant 0 : i32
    %c0_i32_0 = arith.constant 0 : i32
    %c0_i32_1 = arith.constant 0 : i32
    return %c0_i32, %c0_i32_0 : i32, i32
  }
  func.func @transform_25(%arg0: i32) -> (i32, i32) {
    %c0_i32 = arith.constant 0 : i32
    %c0_i32_0 = arith.constant 0 : i32
    %c0_i32_1 = arith.constant 0 : i32
    return %c0_i32, %c0_i32_0 : i32, i32
  }
  func.func @transform_26(%arg0: i32) -> (i32, i32) {
    %c0_i32 = arith.constant 0 : i32
    %c0_i32_0 = arith.constant 0 : i32
    %c0_i32_1 = arith.constant 0 : i32
    return %c0_i32, %c0_i32_0 : i32, i32
  }
  func.func @transform_27(%arg0: i32) -> (i32, i32) {
    %c0_i32 = arith.constant 0 : i32
    %c0_i32_0 = arith.constant 0 : i32
    %c0_i32_1 = arith.constant 0 : i32
    return %c0_i32, %c0_i32_0 : i32, i32
  }
  func.func @transform_28(%arg0: i32) -> (i32, i32) {
    %c0_i32 = arith.constant 0 : i32
    %c0_i32_0 = arith.constant 0 : i32
    return %arg0, %c0_i32 : i32, i32
  }
}

module attributes {stable_mosaic.version = 11 : i64} {
  func.func @_decoder_layer_kernel(%arg0: i32, %arg1: memref<16x32xf32, #tpu.memory_space<vmem>>, %arg2: memref<16x32xf32, #tpu.memory_space<vmem>>, %arg3: memref<32x32xbf16, #tpu.memory_space<vmem>>, %arg4: memref<32x32xbf16, #tpu.memory_space<vmem>>, %arg5: memref<32x64xbf16, #tpu.memory_space<vmem>>, %arg6: memref<1x64xf32, #tpu.memory_space<vmem>>, %arg7: memref<32x32xbf16, #tpu.memory_space<vmem>>, %arg8: memref<1x32xf32, #tpu.memory_space<vmem>>, %arg9: memref<32x32xbf16, #tpu.memory_space<vmem>>, %arg10: memref<1x32xf32, #tpu.memory_space<vmem>>, %arg11: memref<32x32xbf16, #tpu.memory_space<vmem>>, %arg12: memref<1x32xf32, #tpu.memory_space<vmem>>, %arg13: memref<32x32xbf16, #tpu.memory_space<vmem>>, %arg14: memref<1x32xf32, #tpu.memory_space<vmem>>, %arg15: memref<32x32xbf16, #tpu.memory_space<vmem>>, %arg16: memref<1x32xf32, #tpu.memory_space<vmem>>, %arg17: memref<32x32xbf16, #tpu.memory_space<vmem>>, %arg18: memref<1x32xf32, #tpu.memory_space<vmem>>, %arg19: memref<32x64xbf16, #tpu.memory_space<vmem>>, %arg20: memref<1x64xf32, #tpu.memory_space<vmem>>, %arg21: memref<64x32xbf16, #tpu.memory_space<vmem>>, %arg22: memref<1x32xf32, #tpu.memory_space<vmem>>, %arg23: memref<1x32xf32, #tpu.memory_space<vmem>>, %arg24: memref<1x32xf32, #tpu.memory_space<vmem>>, %arg25: memref<1x32xf32, #tpu.memory_space<vmem>>, %arg26: memref<1x32xf32, #tpu.memory_space<vmem>>, %arg27: memref<1x32xf32, #tpu.memory_space<vmem>>, %arg28: memref<1x32xf32, #tpu.memory_space<vmem>>, %arg29: memref<1x32xf32, #tpu.memory_space<vmem>>, %arg30: memref<1x32xf32, #tpu.memory_space<vmem>>, %arg31: memref<16x32xf32, #tpu.memory_space<vmem>>, %arg32: memref<16x32xf32, #tpu.memory_space<vmem>>) attributes {dimension_semantics = [#tpu.dimension_semantics<parallel>], iteration_bounds = array<i64: 2>, scalar_prefetch = 0 : i64, scratch_operands = 0 : i64, tpu.core_type = #tpu.core_type<tc>, window_params = [{transform_indices = @transform_0, window_bounds = array<i64: 16, 32>}, {transform_indices = @transform_1, window_bounds = array<i64: 16, 32>}, {transform_indices = @transform_2, window_bounds = array<i64: 32, 32>}, {transform_indices = @transform_3, window_bounds = array<i64: 32, 32>}, {pipeline_mode = #tpu.pipeline_mode<synchronous>, transform_indices = @transform_4, window_bounds = array<i64: 32, 64>}, {pipeline_mode = #tpu.pipeline_mode<synchronous>, transform_indices = @transform_5, window_bounds = array<i64: 1, 64>}, {pipeline_mode = #tpu.pipeline_mode<synchronous>, transform_indices = @transform_6, window_bounds = array<i64: 32, 32>}, {pipeline_mode = #tpu.pipeline_mode<synchronous>, transform_indices = @transform_7, window_bounds = array<i64: 1, 32>}, {pipeline_mode = #tpu.pipeline_mode<synchronous>, transform_indices = @transform_8, window_bounds = array<i64: 32, 32>}, {pipeline_mode = #tpu.pipeline_mode<synchronous>, transform_indices = @transform_9, window_bounds = array<i64: 1, 32>}, {pipeline_mode = #tpu.pipeline_mode<synchronous>, transform_indices = @transform_10, window_bounds = array<i64: 32, 32>}, {pipeline_mode = #tpu.pipeline_mode<synchronous>, transform_indices = @transform_11, window_bounds = array<i64: 1, 32>}, {pipeline_mode = #tpu.pipeline_mode<synchronous>, transform_indices = @transform_12, window_bounds = array<i64: 32, 32>}, {pipeline_mode = #tpu.pipeline_mode<synchronous>, transform_indices = @transform_13, window_bounds = array<i64: 1, 32>}, {pipeline_mode = #tpu.pipeline_mode<synchronous>, transform_indices = @transform_14, window_bounds = array<i64: 32, 32>}, {pipeline_mode = #tpu.pipeline_mode<synchronous>, transform_indices = @transform_15, window_bounds = array<i64: 1, 32>}, {pipeline_mode = #tpu.pipeline_mode<synchronous>, transform_indices = @transform_16, window_bounds = array<i64: 32, 32>}, {pipeline_mode = #tpu.pipeline_mode<synchronous>, transform_indices = @transform_17, window_bounds = array<i64: 1, 32>}, {pipeline_mode = #tpu.pipeline_mode<synchronous>, transform_indices = @transform_18, window_bounds = array<i64: 32, 64>}, {pipeline_mode = #tpu.pipeline_mode<synchronous>, transform_indices = @transform_19, window_bounds = array<i64: 1, 64>}, {pipeline_mode = #tpu.pipeline_mode<synchronous>, transform_indices = @transform_20, window_bounds = array<i64: 64, 32>}, {pipeline_mode = #tpu.pipeline_mode<synchronous>, transform_indices = @transform_21, window_bounds = array<i64: 1, 32>}, {pipeline_mode = #tpu.pipeline_mode<synchronous>, transform_indices = @transform_22, window_bounds = array<i64: 1, 32>}, {pipeline_mode = #tpu.pipeline_mode<synchronous>, transform_indices = @transform_23, window_bounds = array<i64: 1, 32>}, {pipeline_mode = #tpu.pipeline_mode<synchronous>, transform_indices = @transform_24, window_bounds = array<i64: 1, 32>}, {pipeline_mode = #tpu.pipeline_mode<synchronous>, transform_indices = @transform_25, window_bounds = array<i64: 1, 32>}, {pipeline_mode = #tpu.pipeline_mode<synchronous>, transform_indices = @transform_26, window_bounds = array<i64: 1, 32>}, {pipeline_mode = #tpu.pipeline_mode<synchronous>, transform_indices = @transform_27, window_bounds = array<i64: 1, 32>}, {pipeline_mode = #tpu.pipeline_mode<synchronous>, transform_indices = @transform_28, window_bounds = array<i64: 1, 32>}, {pipeline_mode = #tpu.pipeline_mode<synchronous>, transform_indices = @transform_29, window_bounds = array<i64: 1, 32>}, {transform_indices = @transform_30, window_bounds = array<i64: 16, 32>}, {transform_indices = @transform_31, window_bounds = array<i64: 16, 32>}]} {
    %c0 = arith.constant 0 : index
    %c0_0 = arith.constant 0 : index
    %0 = vector.load %arg1[%c0, %c0_0] : memref<16x32xf32, #tpu.memory_space<vmem>>, vector<16x32xf32>
    %c0_1 = arith.constant 0 : index
    %c0_2 = arith.constant 0 : index
    %1 = vector.load %arg2[%c0_1, %c0_2] : memref<16x32xf32, #tpu.memory_space<vmem>>, vector<16x32xf32>
    %c0_3 = arith.constant 0 : index
    %c0_4 = arith.constant 0 : index
    %2 = vector.load %arg3[%c0_3, %c0_4] : memref<32x32xbf16, #tpu.memory_space<vmem>>, vector<32x32xbf16>
    %c0_5 = arith.constant 0 : index
    %c0_6 = arith.constant 0 : index
    %3 = vector.load %arg4[%c0_5, %c0_6] : memref<32x32xbf16, #tpu.memory_space<vmem>>, vector<32x32xbf16>
    %4 = arith.addf %0, %1 : vector<16x32xf32>
    %c0_7 = arith.constant 0 : index
    %c0_8 = arith.constant 0 : index
    %5 = vector.load %arg5[%c0_7, %c0_8] : memref<32x64xbf16, #tpu.memory_space<vmem>>, vector<32x64xbf16>
    %6 = arith.truncf %4 : vector<16x32xf32> to vector<16x32xbf16>
    %cst = arith.constant dense<0.000000e+00> : vector<16x64xf32>
    %7 = tpu.matmul %6, %5, %cst {dimension_numbers = #tpu.dot_dimension_numbers<[1], [0], [0], [1], [0, 0, 1, 1], [], []>} : vector<16x32xbf16>, vector<32x64xbf16>, vector<16x64xf32> -> vector<16x64xf32>
    %c0_9 = arith.constant 0 : index
    %c0_10 = arith.constant 0 : index
    %8 = vector.load %arg6[%c0_9, %c0_10] : memref<1x64xf32, #tpu.memory_space<vmem>>, vector<1x64xf32>
    %9 = vector.broadcast %8 : vector<1x64xf32> to vector<16x64xf32>
    %10 = arith.addf %7, %9 : vector<16x64xf32>
    %11 = vector.extract_strided_slice %10 {offsets = [0, 0], sizes = [16, 32], strides = [1, 1]} : vector<16x64xf32> to vector<16x32xf32>
    %cst_11 = arith.constant 0.353553385 : f32
    %12 = vector.broadcast %cst_11 : f32 to vector<16x32xf32>
    %13 = arith.mulf %11, %12 : vector<16x32xf32>
    %14 = vector.extract_strided_slice %10 {offsets = [0, 32], sizes = [16, 32], strides = [1, 1]} : vector<16x64xf32> to vector<16x32xf32>
    %c0_12 = arith.constant 0 : index
    %c0_13 = arith.constant 0 : index
    %15 = vector.load %arg7[%c0_12, %c0_13] : memref<32x32xbf16, #tpu.memory_space<vmem>>, vector<32x32xbf16>
    %16 = arith.truncf %0 : vector<16x32xf32> to vector<16x32xbf16>
    %cst_14 = arith.constant dense<0.000000e+00> : vector<16x32xf32>
    %17 = tpu.matmul %16, %15, %cst_14 {dimension_numbers = #tpu.dot_dimension_numbers<[1], [0], [0], [1], [0, 0, 1, 1], [], []>} : vector<16x32xbf16>, vector<32x32xbf16>, vector<16x32xf32> -> vector<16x32xf32>
    %c0_15 = arith.constant 0 : index
    %c0_16 = arith.constant 0 : index
    %18 = vector.load %arg8[%c0_15, %c0_16] : memref<1x32xf32, #tpu.memory_space<vmem>>, vector<1x32xf32>
    %19 = vector.broadcast %18 : vector<1x32xf32> to vector<16x32xf32>
    %20 = arith.addf %17, %19 : vector<16x32xf32>
    %c0_17 = arith.constant 0 : index
    %c0_18 = arith.constant 0 : index
    %21 = vector.load %arg9[%c0_17, %c0_18] : memref<32x32xbf16, #tpu.memory_space<vmem>>, vector<32x32xbf16>
    %c0_19 = arith.constant 0 : index
    %c0_20 = arith.constant 0 : index
    %22 = vector.load %arg10[%c0_19, %c0_20] : memref<1x32xf32, #tpu.memory_space<vmem>>, vector<1x32xf32>
    %23 = vector.extract_strided_slice %13 {offsets = [0, 0], sizes = [8, 32], strides = [1, 1]} : vector<16x32xf32> to vector<8x32xf32>
    %24 = vector.extract_strided_slice %14 {offsets = [0, 0], sizes = [8, 32], strides = [1, 1]} : vector<16x32xf32> to vector<8x32xf32>
    %25 = vector.extract_strided_slice %20 {offsets = [0, 0], sizes = [8, 32], strides = [1, 1]} : vector<16x32xf32> to vector<8x32xf32>
    %26 = vector.extract_strided_slice %23 {offsets = [0, 0], sizes = [8, 8], strides = [1, 1]} : vector<8x32xf32> to vector<8x8xf32>
    %27 = vector.extract_strided_slice %24 {offsets = [0, 0], sizes = [8, 8], strides = [1, 1]} : vector<8x32xf32> to vector<8x8xf32>
    %28 = arith.truncf %26 : vector<8x8xf32> to vector<8x8xbf16>
    %29 = arith.truncf %27 : vector<8x8xf32> to vector<8x8xbf16>
    %cst_21 = arith.constant dense<0.000000e+00> : vector<8x8xf32>
    %30 = tpu.matmul %28, %29, %cst_21 {dimension_numbers = #tpu.dot_dimension_numbers<[1], [1], [0], [0], [0, 0, 1, 0], [], []>} : vector<8x8xbf16>, vector<8x8xbf16>, vector<8x8xf32> -> vector<8x8xf32>
    %31 = vector.extract_strided_slice %23 {offsets = [0, 8], sizes = [8, 8], strides = [1, 1]} : vector<8x32xf32> to vector<8x8xf32>
    %32 = vector.extract_strided_slice %24 {offsets = [0, 8], sizes = [8, 8], strides = [1, 1]} : vector<8x32xf32> to vector<8x8xf32>
    %33 = arith.truncf %31 : vector<8x8xf32> to vector<8x8xbf16>
    %34 = arith.truncf %32 : vector<8x8xf32> to vector<8x8xbf16>
    %cst_22 = arith.constant dense<0.000000e+00> : vector<8x8xf32>
    %35 = tpu.matmul %33, %34, %cst_22 {dimension_numbers = #tpu.dot_dimension_numbers<[1], [1], [0], [0], [0, 0, 1, 0], [], []>} : vector<8x8xbf16>, vector<8x8xbf16>, vector<8x8xf32> -> vector<8x8xf32>
    %36 = vector.extract_strided_slice %23 {offsets = [0, 16], sizes = [8, 8], strides = [1, 1]} : vector<8x32xf32> to vector<8x8xf32>
    %37 = vector.extract_strided_slice %24 {offsets = [0, 16], sizes = [8, 8], strides = [1, 1]} : vector<8x32xf32> to vector<8x8xf32>
    %38 = arith.truncf %36 : vector<8x8xf32> to vector<8x8xbf16>
    %39 = arith.truncf %37 : vector<8x8xf32> to vector<8x8xbf16>
    %cst_23 = arith.constant dense<0.000000e+00> : vector<8x8xf32>
    %40 = tpu.matmul %38, %39, %cst_23 {dimension_numbers = #tpu.dot_dimension_numbers<[1], [1], [0], [0], [0, 0, 1, 0], [], []>} : vector<8x8xbf16>, vector<8x8xbf16>, vector<8x8xf32> -> vector<8x8xf32>
    %41 = vector.extract_strided_slice %23 {offsets = [0, 24], sizes = [8, 8], strides = [1, 1]} : vector<8x32xf32> to vector<8x8xf32>
    %42 = vector.extract_strided_slice %24 {offsets = [0, 24], sizes = [8, 8], strides = [1, 1]} : vector<8x32xf32> to vector<8x8xf32>
    %43 = arith.truncf %41 : vector<8x8xf32> to vector<8x8xbf16>
    %44 = arith.truncf %42 : vector<8x8xf32> to vector<8x8xbf16>
    %cst_24 = arith.constant dense<0.000000e+00> : vector<8x8xf32>
    %45 = tpu.matmul %43, %44, %cst_24 {dimension_numbers = #tpu.dot_dimension_numbers<[1], [1], [0], [0], [0, 0, 1, 0], [], []>} : vector<8x8xbf16>, vector<8x8xbf16>, vector<8x8xf32> -> vector<8x8xf32>
    %46 = tpu.concatenate %30, %35, %40, %45 in 0 : vector<8x8xf32>, vector<8x8xf32>, vector<8x8xf32>, vector<8x8xf32> -> vector<32x8xf32>
    %47 = tpu.iota {dimensions = array<i32: 1>} : vector<32x8xi32>
    %c7_i32 = arith.constant 7 : i32
    %48 = vector.broadcast %c7_i32 : i32 to vector<32x8xi32>
    %49 = arith.cmpi slt, %47, %48 : vector<32x8xi32>
    %cst_25 = arith.constant -1.000000e+30 : f32
    %50 = vector.broadcast %cst_25 : f32 to vector<32x8xf32>
    %51 = arith.select %49, %46, %50 : vector<32x8xi1>, vector<32x8xf32>
    %cst_26 = arith.constant dense<0xFF800000> : vector<32xf32>
    %52 = vector.multi_reduction <maximumf>, %51, %cst_26 [1] : vector<32x8xf32> to vector<32xf32>
    %53 = vector.shape_cast %52 : vector<32xf32> to vector<32x1xf32>
    %54 = vector.broadcast %53 : vector<32x1xf32> to vector<32x8xf32>
    %55 = arith.subf %51, %54 : vector<32x8xf32>
    %56 = math.exp %55 : vector<32x8xf32>
    %cst_27 = arith.constant dense<0.000000e+00> : vector<32xf32>
    %57 = vector.multi_reduction <add>, %56, %cst_27 [1] : vector<32x8xf32> to vector<32xf32>
    %58 = vector.shape_cast %57 : vector<32xf32> to vector<32x1xf32>
    %59 = tpu.reciprocal %58 {approx = true} : vector<32x1xf32> -> vector<32x1xf32>
    %60 = vector.broadcast %59 : vector<32x1xf32> to vector<32x8xf32>
    %61 = arith.mulf %56, %60 : vector<32x8xf32>
    %62 = vector.extract_strided_slice %61 {offsets = [0, 0], sizes = [8, 8], strides = [1, 1]} : vector<32x8xf32> to vector<8x8xf32>
    %63 = vector.extract_strided_slice %25 {offsets = [0, 0], sizes = [8, 8], strides = [1, 1]} : vector<8x32xf32> to vector<8x8xf32>
    %64 = arith.truncf %62 : vector<8x8xf32> to vector<8x8xbf16>
    %65 = arith.truncf %63 : vector<8x8xf32> to vector<8x8xbf16>
    %cst_28 = arith.constant dense<0.000000e+00> : vector<8x8xf32>
    %66 = tpu.matmul %64, %65, %cst_28 {dimension_numbers = #tpu.dot_dimension_numbers<[1], [0], [0], [1], [0, 0, 1, 1], [], []>} : vector<8x8xbf16>, vector<8x8xbf16>, vector<8x8xf32> -> vector<8x8xf32>
    %67 = vector.extract_strided_slice %61 {offsets = [8, 0], sizes = [8, 8], strides = [1, 1]} : vector<32x8xf32> to vector<8x8xf32>
    %68 = vector.extract_strided_slice %25 {offsets = [0, 8], sizes = [8, 8], strides = [1, 1]} : vector<8x32xf32> to vector<8x8xf32>
    %69 = arith.truncf %67 : vector<8x8xf32> to vector<8x8xbf16>
    %70 = arith.truncf %68 : vector<8x8xf32> to vector<8x8xbf16>
    %cst_29 = arith.constant dense<0.000000e+00> : vector<8x8xf32>
    %71 = tpu.matmul %69, %70, %cst_29 {dimension_numbers = #tpu.dot_dimension_numbers<[1], [0], [0], [1], [0, 0, 1, 1], [], []>} : vector<8x8xbf16>, vector<8x8xbf16>, vector<8x8xf32> -> vector<8x8xf32>
    %72 = vector.extract_strided_slice %61 {offsets = [16, 0], sizes = [8, 8], strides = [1, 1]} : vector<32x8xf32> to vector<8x8xf32>
    %73 = vector.extract_strided_slice %25 {offsets = [0, 16], sizes = [8, 8], strides = [1, 1]} : vector<8x32xf32> to vector<8x8xf32>
    %74 = arith.truncf %72 : vector<8x8xf32> to vector<8x8xbf16>
    %75 = arith.truncf %73 : vector<8x8xf32> to vector<8x8xbf16>
    %cst_30 = arith.constant dense<0.000000e+00> : vector<8x8xf32>
    %76 = tpu.matmul %74, %75, %cst_30 {dimension_numbers = #tpu.dot_dimension_numbers<[1], [0], [0], [1], [0, 0, 1, 1], [], []>} : vector<8x8xbf16>, vector<8x8xbf16>, vector<8x8xf32> -> vector<8x8xf32>
    %77 = vector.extract_strided_slice %61 {offsets = [24, 0], sizes = [8, 8], strides = [1, 1]} : vector<32x8xf32> to vector<8x8xf32>
    %78 = vector.extract_strided_slice %25 {offsets = [0, 24], sizes = [8, 8], strides = [1, 1]} : vector<8x32xf32> to vector<8x8xf32>
    %79 = arith.truncf %77 : vector<8x8xf32> to vector<8x8xbf16>
    %80 = arith.truncf %78 : vector<8x8xf32> to vector<8x8xbf16>
    %cst_31 = arith.constant dense<0.000000e+00> : vector<8x8xf32>
    %81 = tpu.matmul %79, %80, %cst_31 {dimension_numbers = #tpu.dot_dimension_numbers<[1], [0], [0], [1], [0, 0, 1, 1], [], []>} : vector<8x8xbf16>, vector<8x8xbf16>, vector<8x8xf32> -> vector<8x8xf32>
    %82 = tpu.concatenate %66, %71, %76, %81 in 1 : vector<8x8xf32>, vector<8x8xf32>, vector<8x8xf32>, vector<8x8xf32> -> vector<8x32xf32>
    %83 = vector.extract_strided_slice %13 {offsets = [8, 0], sizes = [8, 32], strides = [1, 1]} : vector<16x32xf32> to vector<8x32xf32>
    %84 = vector.extract_strided_slice %14 {offsets = [8, 0], sizes = [8, 32], strides = [1, 1]} : vector<16x32xf32> to vector<8x32xf32>
    %85 = vector.extract_strided_slice %20 {offsets = [8, 0], sizes = [8, 32], strides = [1, 1]} : vector<16x32xf32> to vector<8x32xf32>
    %86 = vector.extract_strided_slice %83 {offsets = [0, 0], sizes = [8, 8], strides = [1, 1]} : vector<8x32xf32> to vector<8x8xf32>
    %87 = vector.extract_strided_slice %84 {offsets = [0, 0], sizes = [8, 8], strides = [1, 1]} : vector<8x32xf32> to vector<8x8xf32>
    %88 = arith.truncf %86 : vector<8x8xf32> to vector<8x8xbf16>
    %89 = arith.truncf %87 : vector<8x8xf32> to vector<8x8xbf16>
    %cst_32 = arith.constant dense<0.000000e+00> : vector<8x8xf32>
    %90 = tpu.matmul %88, %89, %cst_32 {dimension_numbers = #tpu.dot_dimension_numbers<[1], [1], [0], [0], [0, 0, 1, 0], [], []>} : vector<8x8xbf16>, vector<8x8xbf16>, vector<8x8xf32> -> vector<8x8xf32>
    %91 = vector.extract_strided_slice %83 {offsets = [0, 8], sizes = [8, 8], strides = [1, 1]} : vector<8x32xf32> to vector<8x8xf32>
    %92 = vector.extract_strided_slice %84 {offsets = [0, 8], sizes = [8, 8], strides = [1, 1]} : vector<8x32xf32> to vector<8x8xf32>
    %93 = arith.truncf %91 : vector<8x8xf32> to vector<8x8xbf16>
    %94 = arith.truncf %92 : vector<8x8xf32> to vector<8x8xbf16>
    %cst_33 = arith.constant dense<0.000000e+00> : vector<8x8xf32>
    %95 = tpu.matmul %93, %94, %cst_33 {dimension_numbers = #tpu.dot_dimension_numbers<[1], [1], [0], [0], [0, 0, 1, 0], [], []>} : vector<8x8xbf16>, vector<8x8xbf16>, vector<8x8xf32> -> vector<8x8xf32>
    %96 = vector.extract_strided_slice %83 {offsets = [0, 16], sizes = [8, 8], strides = [1, 1]} : vector<8x32xf32> to vector<8x8xf32>
    %97 = vector.extract_strided_slice %84 {offsets = [0, 16], sizes = [8, 8], strides = [1, 1]} : vector<8x32xf32> to vector<8x8xf32>
    %98 = arith.truncf %96 : vector<8x8xf32> to vector<8x8xbf16>
    %99 = arith.truncf %97 : vector<8x8xf32> to vector<8x8xbf16>
    %cst_34 = arith.constant dense<0.000000e+00> : vector<8x8xf32>
    %100 = tpu.matmul %98, %99, %cst_34 {dimension_numbers = #tpu.dot_dimension_numbers<[1], [1], [0], [0], [0, 0, 1, 0], [], []>} : vector<8x8xbf16>, vector<8x8xbf16>, vector<8x8xf32> -> vector<8x8xf32>
    %101 = vector.extract_strided_slice %83 {offsets = [0, 24], sizes = [8, 8], strides = [1, 1]} : vector<8x32xf32> to vector<8x8xf32>
    %102 = vector.extract_strided_slice %84 {offsets = [0, 24], sizes = [8, 8], strides = [1, 1]} : vector<8x32xf32> to vector<8x8xf32>
    %103 = arith.truncf %101 : vector<8x8xf32> to vector<8x8xbf16>
    %104 = arith.truncf %102 : vector<8x8xf32> to vector<8x8xbf16>
    %cst_35 = arith.constant dense<0.000000e+00> : vector<8x8xf32>
    %105 = tpu.matmul %103, %104, %cst_35 {dimension_numbers = #tpu.dot_dimension_numbers<[1], [1], [0], [0], [0, 0, 1, 0], [], []>} : vector<8x8xbf16>, vector<8x8xbf16>, vector<8x8xf32> -> vector<8x8xf32>
    %106 = tpu.concatenate %90, %95, %100, %105 in 0 : vector<8x8xf32>, vector<8x8xf32>, vector<8x8xf32>, vector<8x8xf32> -> vector<32x8xf32>
    %107 = tpu.iota {dimensions = array<i32: 1>} : vector<32x8xi32>
    %c7_i32_36 = arith.constant 7 : i32
    %108 = vector.broadcast %c7_i32_36 : i32 to vector<32x8xi32>
    %109 = arith.cmpi slt, %107, %108 : vector<32x8xi32>
    %cst_37 = arith.constant -1.000000e+30 : f32
    %110 = vector.broadcast %cst_37 : f32 to vector<32x8xf32>
    %111 = arith.select %109, %106, %110 : vector<32x8xi1>, vector<32x8xf32>
    %cst_38 = arith.constant dense<0xFF800000> : vector<32xf32>
    %112 = vector.multi_reduction <maximumf>, %111, %cst_38 [1] : vector<32x8xf32> to vector<32xf32>
    %113 = vector.shape_cast %112 : vector<32xf32> to vector<32x1xf32>
    %114 = vector.broadcast %113 : vector<32x1xf32> to vector<32x8xf32>
    %115 = arith.subf %111, %114 : vector<32x8xf32>
    %116 = math.exp %115 : vector<32x8xf32>
    %cst_39 = arith.constant dense<0.000000e+00> : vector<32xf32>
    %117 = vector.multi_reduction <add>, %116, %cst_39 [1] : vector<32x8xf32> to vector<32xf32>
    %118 = vector.shape_cast %117 : vector<32xf32> to vector<32x1xf32>
    %119 = tpu.reciprocal %118 {approx = true} : vector<32x1xf32> -> vector<32x1xf32>
    %120 = vector.broadcast %119 : vector<32x1xf32> to vector<32x8xf32>
    %121 = arith.mulf %116, %120 : vector<32x8xf32>
    %122 = vector.extract_strided_slice %121 {offsets = [0, 0], sizes = [8, 8], strides = [1, 1]} : vector<32x8xf32> to vector<8x8xf32>
    %123 = vector.extract_strided_slice %85 {offsets = [0, 0], sizes = [8, 8], strides = [1, 1]} : vector<8x32xf32> to vector<8x8xf32>
    %124 = arith.truncf %122 : vector<8x8xf32> to vector<8x8xbf16>
    %125 = arith.truncf %123 : vector<8x8xf32> to vector<8x8xbf16>
    %cst_40 = arith.constant dense<0.000000e+00> : vector<8x8xf32>
    %126 = tpu.matmul %124, %125, %cst_40 {dimension_numbers = #tpu.dot_dimension_numbers<[1], [0], [0], [1], [0, 0, 1, 1], [], []>} : vector<8x8xbf16>, vector<8x8xbf16>, vector<8x8xf32> -> vector<8x8xf32>
    %127 = vector.extract_strided_slice %121 {offsets = [8, 0], sizes = [8, 8], strides = [1, 1]} : vector<32x8xf32> to vector<8x8xf32>
    %128 = vector.extract_strided_slice %85 {offsets = [0, 8], sizes = [8, 8], strides = [1, 1]} : vector<8x32xf32> to vector<8x8xf32>
    %129 = arith.truncf %127 : vector<8x8xf32> to vector<8x8xbf16>
    %130 = arith.truncf %128 : vector<8x8xf32> to vector<8x8xbf16>
    %cst_41 = arith.constant dense<0.000000e+00> : vector<8x8xf32>
    %131 = tpu.matmul %129, %130, %cst_41 {dimension_numbers = #tpu.dot_dimension_numbers<[1], [0], [0], [1], [0, 0, 1, 1], [], []>} : vector<8x8xbf16>, vector<8x8xbf16>, vector<8x8xf32> -> vector<8x8xf32>
    %132 = vector.extract_strided_slice %121 {offsets = [16, 0], sizes = [8, 8], strides = [1, 1]} : vector<32x8xf32> to vector<8x8xf32>
    %133 = vector.extract_strided_slice %85 {offsets = [0, 16], sizes = [8, 8], strides = [1, 1]} : vector<8x32xf32> to vector<8x8xf32>
    %134 = arith.truncf %132 : vector<8x8xf32> to vector<8x8xbf16>
    %135 = arith.truncf %133 : vector<8x8xf32> to vector<8x8xbf16>
    %cst_42 = arith.constant dense<0.000000e+00> : vector<8x8xf32>
    %136 = tpu.matmul %134, %135, %cst_42 {dimension_numbers = #tpu.dot_dimension_numbers<[1], [0], [0], [1], [0, 0, 1, 1], [], []>} : vector<8x8xbf16>, vector<8x8xbf16>, vector<8x8xf32> -> vector<8x8xf32>
    %137 = vector.extract_strided_slice %121 {offsets = [24, 0], sizes = [8, 8], strides = [1, 1]} : vector<32x8xf32> to vector<8x8xf32>
    %138 = vector.extract_strided_slice %85 {offsets = [0, 24], sizes = [8, 8], strides = [1, 1]} : vector<8x32xf32> to vector<8x8xf32>
    %139 = arith.truncf %137 : vector<8x8xf32> to vector<8x8xbf16>
    %140 = arith.truncf %138 : vector<8x8xf32> to vector<8x8xbf16>
    %cst_43 = arith.constant dense<0.000000e+00> : vector<8x8xf32>
    %141 = tpu.matmul %139, %140, %cst_43 {dimension_numbers = #tpu.dot_dimension_numbers<[1], [0], [0], [1], [0, 0, 1, 1], [], []>} : vector<8x8xbf16>, vector<8x8xbf16>, vector<8x8xf32> -> vector<8x8xf32>
    %142 = tpu.concatenate %126, %131, %136, %141 in 1 : vector<8x8xf32>, vector<8x8xf32>, vector<8x8xf32>, vector<8x8xf32> -> vector<8x32xf32>
    %143 = tpu.concatenate %82, %142 in 0 : vector<8x32xf32>, vector<8x32xf32> -> vector<16x32xf32>
    %144 = arith.truncf %143 : vector<16x32xf32> to vector<16x32xbf16>
    %cst_44 = arith.constant dense<0.000000e+00> : vector<16x32xf32>
    %145 = tpu.matmul %144, %21, %cst_44 {dimension_numbers = #tpu.dot_dimension_numbers<[1], [0], [0], [1], [0, 0, 1, 1], [], []>} : vector<16x32xbf16>, vector<32x32xbf16>, vector<16x32xf32> -> vector<16x32xf32>
    %146 = vector.broadcast %22 : vector<1x32xf32> to vector<16x32xf32>
    %147 = arith.addf %145, %146 : vector<16x32xf32>
    %148 = arith.addf %0, %147 : vector<16x32xf32>
    %c0_45 = arith.constant 0 : index
    %c0_46 = arith.constant 0 : index
    %149 = vector.load %arg23[%c0_45, %c0_46] : memref<1x32xf32, #tpu.memory_space<vmem>>, vector<1x32xf32>
    %c0_47 = arith.constant 0 : index
    %c0_48 = arith.constant 0 : index
    %150 = vector.load %arg24[%c0_47, %c0_48] : memref<1x32xf32, #tpu.memory_space<vmem>>, vector<1x32xf32>
    %cst_49 = arith.constant dense<0.000000e+00> : vector<16xf32>
    %151 = vector.multi_reduction <add>, %148, %cst_49 [1] : vector<16x32xf32> to vector<16xf32>
    %152 = vector.shape_cast %151 : vector<16xf32> to vector<16x1xf32>
    %cst_50 = arith.constant 3.200000e+01 : f32
    %153 = vector.broadcast %cst_50 : f32 to vector<16x1xf32>
    %154 = arith.divf %152, %153 : vector<16x1xf32>
    %155 = vector.broadcast %154 : vector<16x1xf32> to vector<16x32xf32>
    %156 = arith.subf %148, %155 : vector<16x32xf32>
    %157 = arith.mulf %156, %156 : vector<16x32xf32>
    %cst_51 = arith.constant dense<0.000000e+00> : vector<16xf32>
    %158 = vector.multi_reduction <add>, %157, %cst_51 [1] : vector<16x32xf32> to vector<16xf32>
    %159 = vector.shape_cast %158 : vector<16xf32> to vector<16x1xf32>
    %cst_52 = arith.constant 3.200000e+01 : f32
    %160 = vector.broadcast %cst_52 : f32 to vector<16x1xf32>
    %161 = arith.divf %159, %160 : vector<16x1xf32>
    %cst_53 = arith.constant 9.99999974E-6 : f32
    %162 = vector.broadcast %cst_53 : f32 to vector<16x1xf32>
    %163 = arith.addf %161, %162 : vector<16x1xf32>
    %164 = math.rsqrt %163 : vector<16x1xf32>
    %165 = vector.broadcast %164 : vector<16x1xf32> to vector<16x32xf32>
    %166 = arith.mulf %156, %165 : vector<16x32xf32>
    %167 = vector.broadcast %149 : vector<1x32xf32> to vector<16x32xf32>
    %168 = arith.mulf %166, %167 : vector<16x32xf32>
    %169 = vector.broadcast %150 : vector<1x32xf32> to vector<16x32xf32>
    %170 = arith.addf %168, %169 : vector<16x32xf32>
    %171 = arith.addf %170, %1 : vector<16x32xf32>
    %c0_54 = arith.constant 0 : index
    %c0_55 = arith.constant 0 : index
    %172 = vector.load %arg11[%c0_54, %c0_55] : memref<32x32xbf16, #tpu.memory_space<vmem>>, vector<32x32xbf16>
    %173 = arith.truncf %171 : vector<16x32xf32> to vector<16x32xbf16>
    %cst_56 = arith.constant dense<0.000000e+00> : vector<16x32xf32>
    %174 = tpu.matmul %173, %172, %cst_56 {dimension_numbers = #tpu.dot_dimension_numbers<[1], [0], [0], [1], [0, 0, 1, 1], [], []>} : vector<16x32xbf16>, vector<32x32xbf16>, vector<16x32xf32> -> vector<16x32xf32>
    %c0_57 = arith.constant 0 : index
    %c0_58 = arith.constant 0 : index
    %175 = vector.load %arg12[%c0_57, %c0_58] : memref<1x32xf32, #tpu.memory_space<vmem>>, vector<1x32xf32>
    %176 = vector.broadcast %175 : vector<1x32xf32> to vector<16x32xf32>
    %177 = arith.addf %174, %176 : vector<16x32xf32>
    %cst_59 = arith.constant 0.353553385 : f32
    %178 = vector.broadcast %cst_59 : f32 to vector<16x32xf32>
    %179 = arith.mulf %177, %178 : vector<16x32xf32>
    %c0_60 = arith.constant 0 : index
    %c0_61 = arith.constant 0 : index
    %180 = vector.load %arg13[%c0_60, %c0_61] : memref<32x32xbf16, #tpu.memory_space<vmem>>, vector<32x32xbf16>
    %cst_62 = arith.constant dense<0.000000e+00> : vector<32x32xf32>
    %181 = tpu.matmul %3, %180, %cst_62 {dimension_numbers = #tpu.dot_dimension_numbers<[1], [0], [0], [1], [0, 0, 1, 1], [], []>} : vector<32x32xbf16>, vector<32x32xbf16>, vector<32x32xf32> -> vector<32x32xf32>
    %c0_63 = arith.constant 0 : index
    %c0_64 = arith.constant 0 : index
    %182 = vector.load %arg14[%c0_63, %c0_64] : memref<1x32xf32, #tpu.memory_space<vmem>>, vector<1x32xf32>
    %183 = vector.broadcast %182 : vector<1x32xf32> to vector<32x32xf32>
    %184 = arith.addf %181, %183 : vector<32x32xf32>
    %c0_65 = arith.constant 0 : index
    %c0_66 = arith.constant 0 : index
    %185 = vector.load %arg15[%c0_65, %c0_66] : memref<32x32xbf16, #tpu.memory_space<vmem>>, vector<32x32xbf16>
    %cst_67 = arith.constant dense<0.000000e+00> : vector<32x32xf32>
    %186 = tpu.matmul %2, %185, %cst_67 {dimension_numbers = #tpu.dot_dimension_numbers<[1], [0], [0], [1], [0, 0, 1, 1], [], []>} : vector<32x32xbf16>, vector<32x32xbf16>, vector<32x32xf32> -> vector<32x32xf32>
    %c0_68 = arith.constant 0 : index
    %c0_69 = arith.constant 0 : index
    %187 = vector.load %arg16[%c0_68, %c0_69] : memref<1x32xf32, #tpu.memory_space<vmem>>, vector<1x32xf32>
    %188 = vector.broadcast %187 : vector<1x32xf32> to vector<32x32xf32>
    %189 = arith.addf %186, %188 : vector<32x32xf32>
    %c0_70 = arith.constant 0 : index
    %c0_71 = arith.constant 0 : index
    %190 = vector.load %arg17[%c0_70, %c0_71] : memref<32x32xbf16, #tpu.memory_space<vmem>>, vector<32x32xbf16>
    %c0_72 = arith.constant 0 : index
    %c0_73 = arith.constant 0 : index
    %191 = vector.load %arg18[%c0_72, %c0_73] : memref<1x32xf32, #tpu.memory_space<vmem>>, vector<1x32xf32>
    %192 = vector.extract_strided_slice %179 {offsets = [0, 0], sizes = [8, 32], strides = [1, 1]} : vector<16x32xf32> to vector<8x32xf32>
    %193 = vector.extract_strided_slice %184 {offsets = [0, 0], sizes = [16, 32], strides = [1, 1]} : vector<32x32xf32> to vector<16x32xf32>
    %194 = vector.extract_strided_slice %189 {offsets = [0, 0], sizes = [16, 32], strides = [1, 1]} : vector<32x32xf32> to vector<16x32xf32>
    %195 = vector.extract_strided_slice %192 {offsets = [0, 0], sizes = [8, 8], strides = [1, 1]} : vector<8x32xf32> to vector<8x8xf32>
    %196 = vector.extract_strided_slice %193 {offsets = [0, 0], sizes = [16, 8], strides = [1, 1]} : vector<16x32xf32> to vector<16x8xf32>
    %197 = arith.truncf %195 : vector<8x8xf32> to vector<8x8xbf16>
    %198 = arith.truncf %196 : vector<16x8xf32> to vector<16x8xbf16>
    %cst_74 = arith.constant dense<0.000000e+00> : vector<8x16xf32>
    %199 = tpu.matmul %197, %198, %cst_74 {dimension_numbers = #tpu.dot_dimension_numbers<[1], [1], [0], [0], [0, 0, 1, 0], [], []>} : vector<8x8xbf16>, vector<16x8xbf16>, vector<8x16xf32> -> vector<8x16xf32>
    %200 = vector.extract_strided_slice %192 {offsets = [0, 8], sizes = [8, 8], strides = [1, 1]} : vector<8x32xf32> to vector<8x8xf32>
    %201 = vector.extract_strided_slice %193 {offsets = [0, 8], sizes = [16, 8], strides = [1, 1]} : vector<16x32xf32> to vector<16x8xf32>
    %202 = arith.truncf %200 : vector<8x8xf32> to vector<8x8xbf16>
    %203 = arith.truncf %201 : vector<16x8xf32> to vector<16x8xbf16>
    %cst_75 = arith.constant dense<0.000000e+00> : vector<8x16xf32>
    %204 = tpu.matmul %202, %203, %cst_75 {dimension_numbers = #tpu.dot_dimension_numbers<[1], [1], [0], [0], [0, 0, 1, 0], [], []>} : vector<8x8xbf16>, vector<16x8xbf16>, vector<8x16xf32> -> vector<8x16xf32>
    %205 = vector.extract_strided_slice %192 {offsets = [0, 16], sizes = [8, 8], strides = [1, 1]} : vector<8x32xf32> to vector<8x8xf32>
    %206 = vector.extract_strided_slice %193 {offsets = [0, 16], sizes = [16, 8], strides = [1, 1]} : vector<16x32xf32> to vector<16x8xf32>
    %207 = arith.truncf %205 : vector<8x8xf32> to vector<8x8xbf16>
    %208 = arith.truncf %206 : vector<16x8xf32> to vector<16x8xbf16>
    %cst_76 = arith.constant dense<0.000000e+00> : vector<8x16xf32>
    %209 = tpu.matmul %207, %208, %cst_76 {dimension_numbers = #tpu.dot_dimension_numbers<[1], [1], [0], [0], [0, 0, 1, 0], [], []>} : vector<8x8xbf16>, vector<16x8xbf16>, vector<8x16xf32> -> vector<8x16xf32>
    %210 = vector.extract_strided_slice %192 {offsets = [0, 24], sizes = [8, 8], strides = [1, 1]} : vector<8x32xf32> to vector<8x8xf32>
    %211 = vector.extract_strided_slice %193 {offsets = [0, 24], sizes = [16, 8], strides = [1, 1]} : vector<16x32xf32> to vector<16x8xf32>
    %212 = arith.truncf %210 : vector<8x8xf32> to vector<8x8xbf16>
    %213 = arith.truncf %211 : vector<16x8xf32> to vector<16x8xbf16>
    %cst_77 = arith.constant dense<0.000000e+00> : vector<8x16xf32>
    %214 = tpu.matmul %212, %213, %cst_77 {dimension_numbers = #tpu.dot_dimension_numbers<[1], [1], [0], [0], [0, 0, 1, 0], [], []>} : vector<8x8xbf16>, vector<16x8xbf16>, vector<8x16xf32> -> vector<8x16xf32>
    %215 = tpu.concatenate %199, %204, %209, %214 in 0 : vector<8x16xf32>, vector<8x16xf32>, vector<8x16xf32>, vector<8x16xf32> -> vector<32x16xf32>
    %216 = tpu.iota {dimensions = array<i32: 1>} : vector<32x16xi32>
    %c13_i32 = arith.constant 13 : i32
    %217 = vector.broadcast %c13_i32 : i32 to vector<32x16xi32>
    %218 = arith.cmpi slt, %216, %217 : vector<32x16xi32>
    %cst_78 = arith.constant -1.000000e+30 : f32
    %219 = vector.broadcast %cst_78 : f32 to vector<32x16xf32>
    %220 = arith.select %218, %215, %219 : vector<32x16xi1>, vector<32x16xf32>
    %cst_79 = arith.constant dense<0xFF800000> : vector<32xf32>
    %221 = vector.multi_reduction <maximumf>, %220, %cst_79 [1] : vector<32x16xf32> to vector<32xf32>
    %222 = vector.shape_cast %221 : vector<32xf32> to vector<32x1xf32>
    %223 = vector.broadcast %222 : vector<32x1xf32> to vector<32x16xf32>
    %224 = arith.subf %220, %223 : vector<32x16xf32>
    %225 = math.exp %224 : vector<32x16xf32>
    %cst_80 = arith.constant dense<0.000000e+00> : vector<32xf32>
    %226 = vector.multi_reduction <add>, %225, %cst_80 [1] : vector<32x16xf32> to vector<32xf32>
    %227 = vector.shape_cast %226 : vector<32xf32> to vector<32x1xf32>
    %228 = tpu.reciprocal %227 {approx = true} : vector<32x1xf32> -> vector<32x1xf32>
    %229 = vector.broadcast %228 : vector<32x1xf32> to vector<32x16xf32>
    %230 = arith.mulf %225, %229 : vector<32x16xf32>
    %231 = vector.extract_strided_slice %230 {offsets = [0, 0], sizes = [8, 16], strides = [1, 1]} : vector<32x16xf32> to vector<8x16xf32>
    %232 = vector.extract_strided_slice %194 {offsets = [0, 0], sizes = [16, 8], strides = [1, 1]} : vector<16x32xf32> to vector<16x8xf32>
    %233 = arith.truncf %231 : vector<8x16xf32> to vector<8x16xbf16>
    %234 = arith.truncf %232 : vector<16x8xf32> to vector<16x8xbf16>
    %cst_81 = arith.constant dense<0.000000e+00> : vector<8x8xf32>
    %235 = tpu.matmul %233, %234, %cst_81 {dimension_numbers = #tpu.dot_dimension_numbers<[1], [0], [0], [1], [0, 0, 1, 1], [], []>} : vector<8x16xbf16>, vector<16x8xbf16>, vector<8x8xf32> -> vector<8x8xf32>
    %236 = vector.extract_strided_slice %230 {offsets = [8, 0], sizes = [8, 16], strides = [1, 1]} : vector<32x16xf32> to vector<8x16xf32>
    %237 = vector.extract_strided_slice %194 {offsets = [0, 8], sizes = [16, 8], strides = [1, 1]} : vector<16x32xf32> to vector<16x8xf32>
    %238 = arith.truncf %236 : vector<8x16xf32> to vector<8x16xbf16>
    %239 = arith.truncf %237 : vector<16x8xf32> to vector<16x8xbf16>
    %cst_82 = arith.constant dense<0.000000e+00> : vector<8x8xf32>
    %240 = tpu.matmul %238, %239, %cst_82 {dimension_numbers = #tpu.dot_dimension_numbers<[1], [0], [0], [1], [0, 0, 1, 1], [], []>} : vector<8x16xbf16>, vector<16x8xbf16>, vector<8x8xf32> -> vector<8x8xf32>
    %241 = vector.extract_strided_slice %230 {offsets = [16, 0], sizes = [8, 16], strides = [1, 1]} : vector<32x16xf32> to vector<8x16xf32>
    %242 = vector.extract_strided_slice %194 {offsets = [0, 16], sizes = [16, 8], strides = [1, 1]} : vector<16x32xf32> to vector<16x8xf32>
    %243 = arith.truncf %241 : vector<8x16xf32> to vector<8x16xbf16>
    %244 = arith.truncf %242 : vector<16x8xf32> to vector<16x8xbf16>
    %cst_83 = arith.constant dense<0.000000e+00> : vector<8x8xf32>
    %245 = tpu.matmul %243, %244, %cst_83 {dimension_numbers = #tpu.dot_dimension_numbers<[1], [0], [0], [1], [0, 0, 1, 1], [], []>} : vector<8x16xbf16>, vector<16x8xbf16>, vector<8x8xf32> -> vector<8x8xf32>
    %246 = vector.extract_strided_slice %230 {offsets = [24, 0], sizes = [8, 16], strides = [1, 1]} : vector<32x16xf32> to vector<8x16xf32>
    %247 = vector.extract_strided_slice %194 {offsets = [0, 24], sizes = [16, 8], strides = [1, 1]} : vector<16x32xf32> to vector<16x8xf32>
    %248 = arith.truncf %246 : vector<8x16xf32> to vector<8x16xbf16>
    %249 = arith.truncf %247 : vector<16x8xf32> to vector<16x8xbf16>
    %cst_84 = arith.constant dense<0.000000e+00> : vector<8x8xf32>
    %250 = tpu.matmul %248, %249, %cst_84 {dimension_numbers = #tpu.dot_dimension_numbers<[1], [0], [0], [1], [0, 0, 1, 1], [], []>} : vector<8x16xbf16>, vector<16x8xbf16>, vector<8x8xf32> -> vector<8x8xf32>
    %251 = tpu.concatenate %235, %240, %245, %250 in 1 : vector<8x8xf32>, vector<8x8xf32>, vector<8x8xf32>, vector<8x8xf32> -> vector<8x32xf32>
    %252 = vector.extract_strided_slice %179 {offsets = [8, 0], sizes = [8, 32], strides = [1, 1]} : vector<16x32xf32> to vector<8x32xf32>
    %253 = vector.extract_strided_slice %184 {offsets = [16, 0], sizes = [16, 32], strides = [1, 1]} : vector<32x32xf32> to vector<16x32xf32>
    %254 = vector.extract_strided_slice %189 {offsets = [16, 0], sizes = [16, 32], strides = [1, 1]} : vector<32x32xf32> to vector<16x32xf32>
    %255 = vector.extract_strided_slice %252 {offsets = [0, 0], sizes = [8, 8], strides = [1, 1]} : vector<8x32xf32> to vector<8x8xf32>
    %256 = vector.extract_strided_slice %253 {offsets = [0, 0], sizes = [16, 8], strides = [1, 1]} : vector<16x32xf32> to vector<16x8xf32>
    %257 = arith.truncf %255 : vector<8x8xf32> to vector<8x8xbf16>
    %258 = arith.truncf %256 : vector<16x8xf32> to vector<16x8xbf16>
    %cst_85 = arith.constant dense<0.000000e+00> : vector<8x16xf32>
    %259 = tpu.matmul %257, %258, %cst_85 {dimension_numbers = #tpu.dot_dimension_numbers<[1], [1], [0], [0], [0, 0, 1, 0], [], []>} : vector<8x8xbf16>, vector<16x8xbf16>, vector<8x16xf32> -> vector<8x16xf32>
    %260 = vector.extract_strided_slice %252 {offsets = [0, 8], sizes = [8, 8], strides = [1, 1]} : vector<8x32xf32> to vector<8x8xf32>
    %261 = vector.extract_strided_slice %253 {offsets = [0, 8], sizes = [16, 8], strides = [1, 1]} : vector<16x32xf32> to vector<16x8xf32>
    %262 = arith.truncf %260 : vector<8x8xf32> to vector<8x8xbf16>
    %263 = arith.truncf %261 : vector<16x8xf32> to vector<16x8xbf16>
    %cst_86 = arith.constant dense<0.000000e+00> : vector<8x16xf32>
    %264 = tpu.matmul %262, %263, %cst_86 {dimension_numbers = #tpu.dot_dimension_numbers<[1], [1], [0], [0], [0, 0, 1, 0], [], []>} : vector<8x8xbf16>, vector<16x8xbf16>, vector<8x16xf32> -> vector<8x16xf32>
    %265 = vector.extract_strided_slice %252 {offsets = [0, 16], sizes = [8, 8], strides = [1, 1]} : vector<8x32xf32> to vector<8x8xf32>
    %266 = vector.extract_strided_slice %253 {offsets = [0, 16], sizes = [16, 8], strides = [1, 1]} : vector<16x32xf32> to vector<16x8xf32>
    %267 = arith.truncf %265 : vector<8x8xf32> to vector<8x8xbf16>
    %268 = arith.truncf %266 : vector<16x8xf32> to vector<16x8xbf16>
    %cst_87 = arith.constant dense<0.000000e+00> : vector<8x16xf32>
    %269 = tpu.matmul %267, %268, %cst_87 {dimension_numbers = #tpu.dot_dimension_numbers<[1], [1], [0], [0], [0, 0, 1, 0], [], []>} : vector<8x8xbf16>, vector<16x8xbf16>, vector<8x16xf32> -> vector<8x16xf32>
    %270 = vector.extract_strided_slice %252 {offsets = [0, 24], sizes = [8, 8], strides = [1, 1]} : vector<8x32xf32> to vector<8x8xf32>
    %271 = vector.extract_strided_slice %253 {offsets = [0, 24], sizes = [16, 8], strides = [1, 1]} : vector<16x32xf32> to vector<16x8xf32>
    %272 = arith.truncf %270 : vector<8x8xf32> to vector<8x8xbf16>
    %273 = arith.truncf %271 : vector<16x8xf32> to vector<16x8xbf16>
    %cst_88 = arith.constant dense<0.000000e+00> : vector<8x16xf32>
    %274 = tpu.matmul %272, %273, %cst_88 {dimension_numbers = #tpu.dot_dimension_numbers<[1], [1], [0], [0], [0, 0, 1, 0], [], []>} : vector<8x8xbf16>, vector<16x8xbf16>, vector<8x16xf32> -> vector<8x16xf32>
    %275 = tpu.concatenate %259, %264, %269, %274 in 0 : vector<8x16xf32>, vector<8x16xf32>, vector<8x16xf32>, vector<8x16xf32> -> vector<32x16xf32>
    %276 = tpu.iota {dimensions = array<i32: 1>} : vector<32x16xi32>
    %c13_i32_89 = arith.constant 13 : i32
    %277 = vector.broadcast %c13_i32_89 : i32 to vector<32x16xi32>
    %278 = arith.cmpi slt, %276, %277 : vector<32x16xi32>
    %cst_90 = arith.constant -1.000000e+30 : f32
    %279 = vector.broadcast %cst_90 : f32 to vector<32x16xf32>
    %280 = arith.select %278, %275, %279 : vector<32x16xi1>, vector<32x16xf32>
    %cst_91 = arith.constant dense<0xFF800000> : vector<32xf32>
    %281 = vector.multi_reduction <maximumf>, %280, %cst_91 [1] : vector<32x16xf32> to vector<32xf32>
    %282 = vector.shape_cast %281 : vector<32xf32> to vector<32x1xf32>
    %283 = vector.broadcast %282 : vector<32x1xf32> to vector<32x16xf32>
    %284 = arith.subf %280, %283 : vector<32x16xf32>
    %285 = math.exp %284 : vector<32x16xf32>
    %cst_92 = arith.constant dense<0.000000e+00> : vector<32xf32>
    %286 = vector.multi_reduction <add>, %285, %cst_92 [1] : vector<32x16xf32> to vector<32xf32>
    %287 = vector.shape_cast %286 : vector<32xf32> to vector<32x1xf32>
    %288 = tpu.reciprocal %287 {approx = true} : vector<32x1xf32> -> vector<32x1xf32>
    %289 = vector.broadcast %288 : vector<32x1xf32> to vector<32x16xf32>
    %290 = arith.mulf %285, %289 : vector<32x16xf32>
    %291 = vector.extract_strided_slice %290 {offsets = [0, 0], sizes = [8, 16], strides = [1, 1]} : vector<32x16xf32> to vector<8x16xf32>
    %292 = vector.extract_strided_slice %254 {offsets = [0, 0], sizes = [16, 8], strides = [1, 1]} : vector<16x32xf32> to vector<16x8xf32>
    %293 = arith.truncf %291 : vector<8x16xf32> to vector<8x16xbf16>
    %294 = arith.truncf %292 : vector<16x8xf32> to vector<16x8xbf16>
    %cst_93 = arith.constant dense<0.000000e+00> : vector<8x8xf32>
    %295 = tpu.matmul %293, %294, %cst_93 {dimension_numbers = #tpu.dot_dimension_numbers<[1], [0], [0], [1], [0, 0, 1, 1], [], []>} : vector<8x16xbf16>, vector<16x8xbf16>, vector<8x8xf32> -> vector<8x8xf32>
    %296 = vector.extract_strided_slice %290 {offsets = [8, 0], sizes = [8, 16], strides = [1, 1]} : vector<32x16xf32> to vector<8x16xf32>
    %297 = vector.extract_strided_slice %254 {offsets = [0, 8], sizes = [16, 8], strides = [1, 1]} : vector<16x32xf32> to vector<16x8xf32>
    %298 = arith.truncf %296 : vector<8x16xf32> to vector<8x16xbf16>
    %299 = arith.truncf %297 : vector<16x8xf32> to vector<16x8xbf16>
    %cst_94 = arith.constant dense<0.000000e+00> : vector<8x8xf32>
    %300 = tpu.matmul %298, %299, %cst_94 {dimension_numbers = #tpu.dot_dimension_numbers<[1], [0], [0], [1], [0, 0, 1, 1], [], []>} : vector<8x16xbf16>, vector<16x8xbf16>, vector<8x8xf32> -> vector<8x8xf32>
    %301 = vector.extract_strided_slice %290 {offsets = [16, 0], sizes = [8, 16], strides = [1, 1]} : vector<32x16xf32> to vector<8x16xf32>
    %302 = vector.extract_strided_slice %254 {offsets = [0, 16], sizes = [16, 8], strides = [1, 1]} : vector<16x32xf32> to vector<16x8xf32>
    %303 = arith.truncf %301 : vector<8x16xf32> to vector<8x16xbf16>
    %304 = arith.truncf %302 : vector<16x8xf32> to vector<16x8xbf16>
    %cst_95 = arith.constant dense<0.000000e+00> : vector<8x8xf32>
    %305 = tpu.matmul %303, %304, %cst_95 {dimension_numbers = #tpu.dot_dimension_numbers<[1], [0], [0], [1], [0, 0, 1, 1], [], []>} : vector<8x16xbf16>, vector<16x8xbf16>, vector<8x8xf32> -> vector<8x8xf32>
    %306 = vector.extract_strided_slice %290 {offsets = [24, 0], sizes = [8, 16], strides = [1, 1]} : vector<32x16xf32> to vector<8x16xf32>
    %307 = vector.extract_strided_slice %254 {offsets = [0, 24], sizes = [16, 8], strides = [1, 1]} : vector<16x32xf32> to vector<16x8xf32>
    %308 = arith.truncf %306 : vector<8x16xf32> to vector<8x16xbf16>
    %309 = arith.truncf %307 : vector<16x8xf32> to vector<16x8xbf16>
    %cst_96 = arith.constant dense<0.000000e+00> : vector<8x8xf32>
    %310 = tpu.matmul %308, %309, %cst_96 {dimension_numbers = #tpu.dot_dimension_numbers<[1], [0], [0], [1], [0, 0, 1, 1], [], []>} : vector<8x16xbf16>, vector<16x8xbf16>, vector<8x8xf32> -> vector<8x8xf32>
    %311 = tpu.concatenate %295, %300, %305, %310 in 1 : vector<8x8xf32>, vector<8x8xf32>, vector<8x8xf32>, vector<8x8xf32> -> vector<8x32xf32>
    %312 = tpu.concatenate %251, %311 in 0 : vector<8x32xf32>, vector<8x32xf32> -> vector<16x32xf32>
    %313 = arith.truncf %312 : vector<16x32xf32> to vector<16x32xbf16>
    %cst_97 = arith.constant dense<0.000000e+00> : vector<16x32xf32>
    %314 = tpu.matmul %313, %190, %cst_97 {dimension_numbers = #tpu.dot_dimension_numbers<[1], [0], [0], [1], [0, 0, 1, 1], [], []>} : vector<16x32xbf16>, vector<32x32xbf16>, vector<16x32xf32> -> vector<16x32xf32>
    %315 = vector.broadcast %191 : vector<1x32xf32> to vector<16x32xf32>
    %316 = arith.addf %314, %315 : vector<16x32xf32>
    %317 = arith.addf %170, %316 : vector<16x32xf32>
    %c0_98 = arith.constant 0 : index
    %c0_99 = arith.constant 0 : index
    %318 = vector.load %arg25[%c0_98, %c0_99] : memref<1x32xf32, #tpu.memory_space<vmem>>, vector<1x32xf32>
    %c0_100 = arith.constant 0 : index
    %c0_101 = arith.constant 0 : index
    %319 = vector.load %arg26[%c0_100, %c0_101] : memref<1x32xf32, #tpu.memory_space<vmem>>, vector<1x32xf32>
    %cst_102 = arith.constant dense<0.000000e+00> : vector<16xf32>
    %320 = vector.multi_reduction <add>, %317, %cst_102 [1] : vector<16x32xf32> to vector<16xf32>
    %321 = vector.shape_cast %320 : vector<16xf32> to vector<16x1xf32>
    %cst_103 = arith.constant 3.200000e+01 : f32
    %322 = vector.broadcast %cst_103 : f32 to vector<16x1xf32>
    %323 = arith.divf %321, %322 : vector<16x1xf32>
    %324 = vector.broadcast %323 : vector<16x1xf32> to vector<16x32xf32>
    %325 = arith.subf %317, %324 : vector<16x32xf32>
    %326 = arith.mulf %325, %325 : vector<16x32xf32>
    %cst_104 = arith.constant dense<0.000000e+00> : vector<16xf32>
    %327 = vector.multi_reduction <add>, %326, %cst_104 [1] : vector<16x32xf32> to vector<16xf32>
    %328 = vector.shape_cast %327 : vector<16xf32> to vector<16x1xf32>
    %cst_105 = arith.constant 3.200000e+01 : f32
    %329 = vector.broadcast %cst_105 : f32 to vector<16x1xf32>
    %330 = arith.divf %328, %329 : vector<16x1xf32>
    %cst_106 = arith.constant 9.99999974E-6 : f32
    %331 = vector.broadcast %cst_106 : f32 to vector<16x1xf32>
    %332 = arith.addf %330, %331 : vector<16x1xf32>
    %333 = math.rsqrt %332 : vector<16x1xf32>
    %334 = vector.broadcast %333 : vector<16x1xf32> to vector<16x32xf32>
    %335 = arith.mulf %325, %334 : vector<16x32xf32>
    %336 = vector.broadcast %318 : vector<1x32xf32> to vector<16x32xf32>
    %337 = arith.mulf %335, %336 : vector<16x32xf32>
    %338 = vector.broadcast %319 : vector<1x32xf32> to vector<16x32xf32>
    %339 = arith.addf %337, %338 : vector<16x32xf32>
    %c0_107 = arith.constant 0 : index
    %c0_108 = arith.constant 0 : index
    %340 = vector.load %arg19[%c0_107, %c0_108] : memref<32x64xbf16, #tpu.memory_space<vmem>>, vector<32x64xbf16>
    %341 = arith.truncf %339 : vector<16x32xf32> to vector<16x32xbf16>
    %cst_109 = arith.constant dense<0.000000e+00> : vector<16x64xf32>
    %342 = tpu.matmul %341, %340, %cst_109 {dimension_numbers = #tpu.dot_dimension_numbers<[1], [0], [0], [1], [0, 0, 1, 1], [], []>} : vector<16x32xbf16>, vector<32x64xbf16>, vector<16x64xf32> -> vector<16x64xf32>
    %c0_110 = arith.constant 0 : index
    %c0_111 = arith.constant 0 : index
    %343 = vector.load %arg20[%c0_110, %c0_111] : memref<1x64xf32, #tpu.memory_space<vmem>>, vector<1x64xf32>
    %344 = vector.broadcast %343 : vector<1x64xf32> to vector<16x64xf32>
    %345 = arith.addf %342, %344 : vector<16x64xf32>
    %cst_112 = arith.constant 0.000000e+00 : f32
    %346 = vector.broadcast %cst_112 : f32 to vector<16x64xf32>
    %347 = arith.maximumf %345, %346 : vector<16x64xf32>
    %c0_113 = arith.constant 0 : index
    %c0_114 = arith.constant 0 : index
    %348 = vector.load %arg21[%c0_113, %c0_114] : memref<64x32xbf16, #tpu.memory_space<vmem>>, vector<64x32xbf16>
    %349 = arith.truncf %347 : vector<16x64xf32> to vector<16x64xbf16>
    %cst_115 = arith.constant dense<0.000000e+00> : vector<16x32xf32>
    %350 = tpu.matmul %349, %348, %cst_115 {dimension_numbers = #tpu.dot_dimension_numbers<[1], [0], [0], [1], [0, 0, 1, 1], [], []>} : vector<16x64xbf16>, vector<64x32xbf16>, vector<16x32xf32> -> vector<16x32xf32>
    %c0_116 = arith.constant 0 : index
    %c0_117 = arith.constant 0 : index
    %351 = vector.load %arg22[%c0_116, %c0_117] : memref<1x32xf32, #tpu.memory_space<vmem>>, vector<1x32xf32>
    %352 = vector.broadcast %351 : vector<1x32xf32> to vector<16x32xf32>
    %353 = arith.addf %350, %352 : vector<16x32xf32>
    %354 = arith.addf %339, %353 : vector<16x32xf32>
    %c0_118 = arith.constant 0 : index
    %c0_119 = arith.constant 0 : index
    %355 = vector.load %arg27[%c0_118, %c0_119] : memref<1x32xf32, #tpu.memory_space<vmem>>, vector<1x32xf32>
    %c0_120 = arith.constant 0 : index
    %c0_121 = arith.constant 0 : index
    %356 = vector.load %arg28[%c0_120, %c0_121] : memref<1x32xf32, #tpu.memory_space<vmem>>, vector<1x32xf32>
    %cst_122 = arith.constant dense<0.000000e+00> : vector<16xf32>
    %357 = vector.multi_reduction <add>, %354, %cst_122 [1] : vector<16x32xf32> to vector<16xf32>
    %358 = vector.shape_cast %357 : vector<16xf32> to vector<16x1xf32>
    %cst_123 = arith.constant 3.200000e+01 : f32
    %359 = vector.broadcast %cst_123 : f32 to vector<16x1xf32>
    %360 = arith.divf %358, %359 : vector<16x1xf32>
    %361 = vector.broadcast %360 : vector<16x1xf32> to vector<16x32xf32>
    %362 = arith.subf %354, %361 : vector<16x32xf32>
    %363 = arith.mulf %362, %362 : vector<16x32xf32>
    %cst_124 = arith.constant dense<0.000000e+00> : vector<16xf32>
    %364 = vector.multi_reduction <add>, %363, %cst_124 [1] : vector<16x32xf32> to vector<16xf32>
    %365 = vector.shape_cast %364 : vector<16xf32> to vector<16x1xf32>
    %cst_125 = arith.constant 3.200000e+01 : f32
    %366 = vector.broadcast %cst_125 : f32 to vector<16x1xf32>
    %367 = arith.divf %365, %366 : vector<16x1xf32>
    %cst_126 = arith.constant 9.99999974E-6 : f32
    %368 = vector.broadcast %cst_126 : f32 to vector<16x1xf32>
    %369 = arith.addf %367, %368 : vector<16x1xf32>
    %370 = math.rsqrt %369 : vector<16x1xf32>
    %371 = vector.broadcast %370 : vector<16x1xf32> to vector<16x32xf32>
    %372 = arith.mulf %362, %371 : vector<16x32xf32>
    %373 = vector.broadcast %355 : vector<1x32xf32> to vector<16x32xf32>
    %374 = arith.mulf %372, %373 : vector<16x32xf32>
    %375 = vector.broadcast %356 : vector<1x32xf32> to vector<16x32xf32>
    %376 = arith.addf %374, %375 : vector<16x32xf32>
    %c0_127 = arith.constant 0 : index
    %c0_128 = arith.constant 0 : index
    %377 = vector.load %arg31[%c0_127, %c0_128] : memref<16x32xf32, #tpu.memory_space<vmem>>, vector<16x32xf32>
    tpu.vector_store %arg31[%c0_127, %c0_128], %376 {strides = array<i32>} : memref<16x32xf32, #tpu.memory_space<vmem>>, vector<16x32xf32>,
    %c0_129 = arith.constant 0 : index
    %c0_130 = arith.constant 0 : index
    %378 = vector.load %arg29[%c0_129, %c0_130] : memref<1x32xf32, #tpu.memory_space<vmem>>, vector<1x32xf32>
    %c0_131 = arith.constant 0 : index
    %c0_132 = arith.constant 0 : index
    %379 = vector.load %arg30[%c0_131, %c0_132] : memref<1x32xf32, #tpu.memory_space<vmem>>, vector<1x32xf32>
    %cst_133 = arith.constant dense<0.000000e+00> : vector<16xf32>
    %380 = vector.multi_reduction <add>, %376, %cst_133 [1] : vector<16x32xf32> to vector<16xf32>
    %381 = vector.shape_cast %380 : vector<16xf32> to vector<16x1xf32>
    %cst_134 = arith.constant 3.200000e+01 : f32
    %382 = vector.broadcast %cst_134 : f32 to vector<16x1xf32>
    %383 = arith.divf %381, %382 : vector<16x1xf32>
    %384 = vector.broadcast %383 : vector<16x1xf32> to vector<16x32xf32>
    %385 = arith.subf %376, %384 : vector<16x32xf32>
    %386 = arith.mulf %385, %385 : vector<16x32xf32>
    %cst_135 = arith.constant dense<0.000000e+00> : vector<16xf32>
    %387 = vector.multi_reduction <add>, %386, %cst_135 [1] : vector<16x32xf32> to vector<16xf32>
    %388 = vector.shape_cast %387 : vector<16xf32> to vector<16x1xf32>
    %cst_136 = arith.constant 3.200000e+01 : f32
    %389 = vector.broadcast %cst_136 : f32 to vector<16x1xf32>
    %390 = arith.divf %388, %389 : vector<16x1xf32>
    %cst_137 = arith.constant 9.99999974E-6 : f32
    %391 = vector.broadcast %cst_137 : f32 to vector<16x1xf32>
    %392 = arith.addf %390, %391 : vector<16x1xf32>
    %393 = math.rsqrt %392 : vector<16x1xf32>
    %394 = vector.broadcast %393 : vector<16x1xf32> to vector<16x32xf32>
    %395 = arith.mulf %385, %394 : vector<16x32xf32>
    %396 = vector.broadcast %378 : vector<1x32xf32> to vector<16x32xf32>
    %397 = arith.mulf %395, %396 : vector<16x32xf32>
    %398 = vector.broadcast %379 : vector<1x32xf32> to vector<16x32xf32>
    %399 = arith.addf %397, %398 : vector<16x32xf32>
    %c0_138 = arith.constant 0 : index
    %c0_139 = arith.constant 0 : index
    %400 = vector.load %arg32[%c0_138, %c0_139] : memref<16x32xf32, #tpu.memory_space<vmem>>, vector<16x32xf32>
    tpu.vector_store %arg32[%c0_138, %c0_139], %399 {strides = array<i32>} : memref<16x32xf32, #tpu.memory_space<vmem>>, vector<16x32xf32>,
    return
  }
  func.func @transform_0(%arg0: i32) -> (i32, i32) {
    %c0_i32 = arith.constant 0 : i32
    %c0_i32_0 = arith.constant 0 : i32
    return %arg0, %c0_i32 : i32, i32
  }
  func.func @transform_1(%arg0: i32) -> (i32, i32) {
    %c0_i32 = arith.constant 0 : i32
    %c0_i32_0 = arith.constant 0 : i32
    return %arg0, %c0_i32 : i32, i32
  }
  func.func @transform_2(%arg0: i32) -> (i32, i32) {
    %c0_i32 = arith.constant 0 : i32
    %c0_i32_0 = arith.constant 0 : i32
    return %arg0, %c0_i32 : i32, i32
  }
  func.func @transform_3(%arg0: i32) -> (i32, i32) {
    %c0_i32 = arith.constant 0 : i32
    %c0_i32_0 = arith.constant 0 : i32
    return %arg0, %c0_i32 : i32, i32
  }
  func.func @transform_4(%arg0: i32) -> (i32, i32) {
    %c0_i32 = arith.constant 0 : i32
    %c0_i32_0 = arith.constant 0 : i32
    %c0_i32_1 = arith.constant 0 : i32
    return %c0_i32, %c0_i32_0 : i32, i32
  }
  func.func @transform_5(%arg0: i32) -> (i32, i32) {
    %c0_i32 = arith.constant 0 : i32
    %c0_i32_0 = arith.constant 0 : i32
    %c0_i32_1 = arith.constant 0 : i32
    return %c0_i32, %c0_i32_0 : i32, i32
  }
  func.func @transform_6(%arg0: i32) -> (i32, i32) {
    %c0_i32 = arith.constant 0 : i32
    %c0_i32_0 = arith.constant 0 : i32
    %c0_i32_1 = arith.constant 0 : i32
    return %c0_i32, %c0_i32_0 : i32, i32
  }
  func.func @transform_7(%arg0: i32) -> (i32, i32) {
    %c0_i32 = arith.constant 0 : i32
    %c0_i32_0 = arith.constant 0 : i32
    %c0_i32_1 = arith.constant 0 : i32
    return %c0_i32, %c0_i32_0 : i32, i32
  }
  func.func @transform_8(%arg0: i32) -> (i32, i32) {
    %c0_i32 = arith.constant 0 : i32
    %c0_i32_0 = arith.constant 0 : i32
    %c0_i32_1 = arith.constant 0 : i32
    return %c0_i32, %c0_i32_0 : i32, i32
  }
  func.func @transform_9(%arg0: i32) -> (i32, i32) {
    %c0_i32 = arith.constant 0 : i32
    %c0_i32_0 = arith.constant 0 : i32
    %c0_i32_1 = arith.constant 0 : i32
    return %c0_i32, %c0_i32_0 : i32, i32
  }
  func.func @transform_10(%arg0: i32) -> (i32, i32) {
    %c0_i32 = arith.constant 0 : i32
    %c0_i32_0 = arith.constant 0 : i32
    %c0_i32_1 = arith.constant 0 : i32
    return %c0_i32, %c0_i32_0 : i32, i32
  }
  func.func @transform_11(%arg0: i32) -> (i32, i32) {
    %c0_i32 = arith.constant 0 : i32
    %c0_i32_0 = arith.constant 0 : i32
    %c0_i32_1 = arith.constant 0 : i32
    return %c0_i32, %c0_i32_0 : i32, i32
  }
  func.func @transform_12(%arg0: i32) -> (i32, i32) {
    %c0_i32 = arith.constant 0 : i32
    %c0_i32_0 = arith.constant 0 : i32
    %c0_i32_1 = arith.constant 0 : i32
    return %c0_i32, %c0_i32_0 : i32, i32
  }
  func.func @transform_13(%arg0: i32) -> (i32, i32) {
    %c0_i32 = arith.constant 0 : i32
    %c0_i32_0 = arith.constant 0 : i32
    %c0_i32_1 = arith.constant 0 : i32
    return %c0_i32, %c0_i32_0 : i32, i32
  }
  func.func @transform_14(%arg0: i32) -> (i32, i32) {
    %c0_i32 = arith.constant 0 : i32
    %c0_i32_0 = arith.constant 0 : i32
    %c0_i32_1 = arith.constant 0 : i32
    return %c0_i32, %c0_i32_0 : i32, i32
  }
  func.func @transform_15(%arg0: i32) -> (i32, i32) {
    %c0_i32 = arith.constant 0 : i32
    %c0_i32_0 = arith.constant 0 : i32
    %c0_i32_1 = arith.constant 0 : i32
    return %c0_i32, %c0_i32_0 : i32, i32
  }
  func.func @transform_16(%arg0: i32) -> (i32, i32) {
    %c0_i32 = arith.constant 0 : i32
    %c0_i32_0 = arith.constant 0 : i32
    %c0_i32_1 = arith.constant 0 : i32
    return %c0_i32, %c0_i32_0 : i32, i32
  }
  func.func @transform_17(%arg0: i32) -> (i32, i32) {
    %c0_i32 = arith.constant 0 : i32
    %c0_i32_0 = arith.constant 0 : i32
    %c0_i32_1 = arith.constant 0 : i32
    return %c0_i32, %c0_i32_0 : i32, i32
  }
  func.func @transform_18(%arg0: i32) -> (i32, i32) {
    %c0_i32 = arith.constant 0 : i32
    %c0_i32_0 = arith.constant 0 : i32
    %c0_i32_1 = arith.constant 0 : i32
    return %c0_i32, %c0_i32_0 : i32, i32
  }
  func.func @transform_19(%arg0: i32) -> (i32, i32) {
    %c0_i32 = arith.constant 0 : i32
    %c0_i32_0 = arith.constant 0 : i32
    %c0_i32_1 = arith.constant 0 : i32
    return %c0_i32, %c0_i32_0 : i32, i32
  }
  func.func @transform_20(%arg0: i32) -> (i32, i32) {
    %c0_i32 = arith.constant 0 : i32
    %c0_i32_0 = arith.constant 0 : i32
    %c0_i32_1 = arith.constant 0 : i32
    return %c0_i32, %c0_i32_0 : i32, i32
  }
  func.func @transform_21(%arg0: i32) -> (i32, i32) {
    %c0_i32 = arith.constant 0 : i32
    %c0_i32_0 = arith.constant 0 : i32
    %c0_i32_1 = arith.constant 0 : i32
    return %c0_i32, %c0_i32_0 : i32, i32
  }
  func.func @transform_22(%arg0: i32) -> (i32, i32) {
    %c0_i32 = arith.constant 0 : i32
    %c0_i32_0 = arith.constant 0 : i32
    %c0_i32_1 = arith.constant 0 : i32
    return %c0_i32, %c0_i32_0 : i32, i32
  }
  func.func @transform_23(%arg0: i32) -> (i32, i32) {
    %c0_i32 = arith.constant 0 : i32
    %c0_i32_0 = arith.constant 0 : i32
    %c0_i32_1 = arith.constant 0 : i32
    return %c0_i32, %c0_i32_0 : i32, i32
  }
  func.func @transform_24(%arg0: i32) -> (i32, i32) {
    %c0_i32 = arith.constant 0 : i32
    %c0_i32_0 = arith.constant 0 : i32
    %c0_i32_1 = arith.constant 0 : i32
    return %c0_i32, %c0_i32_0 : i32, i32
  }
  func.func @transform_25(%arg0: i32) -> (i32, i32) {
    %c0_i32 = arith.constant 0 : i32
    %c0_i32_0 = arith.constant 0 : i32
    %c0_i32_1 = arith.constant 0 : i32
    return %c0_i32, %c0_i32_0 : i32, i32
  }
  func.func @transform_26(%arg0: i32) -> (i32, i32) {
    %c0_i32 = arith.constant 0 : i32
    %c0_i32_0 = arith.constant 0 : i32
    %c0_i32_1 = arith.constant 0 : i32
    return %c0_i32, %c0_i32_0 : i32, i32
  }
  func.func @transform_27(%arg0: i32) -> (i32, i32) {
    %c0_i32 = arith.constant 0 : i32
    %c0_i32_0 = arith.constant 0 : i32
    %c0_i32_1 = arith.constant 0 : i32
    return %c0_i32, %c0_i32_0 : i32, i32
  }
  func.func @transform_28(%arg0: i32) -> (i32, i32) {
    %c0_i32 = arith.constant 0 : i32
    %c0_i32_0 = arith.constant 0 : i32
    %c0_i32_1 = arith.constant 0 : i32
    return %c0_i32, %c0_i32_0 : i32, i32
  }
  func.func @transform_29(%arg0: i32) -> (i32, i32) {
    %c0_i32 = arith.constant 0 : i32
    %c0_i32_0 = arith.constant 0 : i32
    %c0_i32_1 = arith.constant 0 : i32
    return %c0_i32, %c0_i32_0 : i32, i32
  }
  func.func @transform_30(%arg0: i32) -> (i32, i32) {
    %c0_i32 = arith.constant 0 : i32
    %c0_i32_0 = arith.constant 0 : i32
    return %arg0, %c0_i32 : i32, i32
  }
  func.func @transform_31(%arg0: i32) -> (i32, i32) {
    %c0_i32 = arith.constant 0 : i32
    %c0_i32_0 = arith.constant 0 : i32
    return %arg0, %c0_i32 : i32, i32
  }
}

</mosaic_0001>

<bundles_post_ra>
// kernel: transformer_decoder.2
= control target key start
LH: loop header
LB: loop body
LE: loop exit
PB: predicated region body
PF: predicated region fallthrough
CT: control target
= control target key end

     0   :  { %s5017_s0 = inlined_call_operand.vmem [shape: f32[32,32], index: 0, kind: input, shape index: {}]   ;;  %s5018_s1 = inlined_call_operand.vmem [shape: f32[32,32], index: 1, kind: input, shape index: {}]   ;;  %s5019_s2 = inlined_call_operand.vmem [shape: bf16[64,32], index: 2, kind: input, shape index: {}]   ;;  %s5020_s3 = inlined_call_operand.vmem [shape: bf16[64,32], index: 3, kind: input, shape index: {}]   ;;  %s5021_s4 = inlined_call_operand.vmem [shape: bf16[32,64], index: 4, kind: input, shape index: {}]   ;;  %s5022_s5 = inlined_call_operand.vmem [shape: f32[1,64], index: 5, kind: input, shape index: {}]   ;;  %s5023_s6 = inlined_call_operand.vmem [shape: bf16[32,32], index: 6, kind: input, shape index: {}]   ;;  %s5024_s7 = inlined_call_operand.vmem [shape: f32[1,32], index: 7, kind: input, shape index: {}]   ;;  %s5025_s8 = inlined_call_operand.vmem [shape: bf16[32,32], index: 8, kind: input, shape index: {}]   ;;  %s5026_s9 = inlined_call_operand.vmem [shape: f32[1,32], index: 9, kind: input, shape index: {}]   ;;  %s5027_s10 = inlined_call_operand.vmem [shape: bf16[32,32], index: 10, kind: input, shape index: {}]   ;;  %s5028_s11 = inlined_call_operand.vmem [shape: f32[1,32], index: 11, kind: input, shape index: {}]   ;;  %s5029_s12 = inlined_call_operand.vmem [shape: bf16[32,32], index: 12, kind: input, shape index: {}]   ;;  %s5030_s13 = inlined_call_operand.vmem [shape: f32[1,32], index: 13, kind: input, shape index: {}]   ;;  %s5031_s14 = inlined_call_operand.vmem [shape: bf16[32,32], index: 14, kind: input, shape index: {}]   ;;  %s5032_s15 = inlined_call_operand.vmem [shape: f32[1,32], index: 15, kind: input, shape index: {}]   ;;  %s5033_s16 = inlined_call_operand.vmem [shape: bf16[32,32], index: 16, kind: input, shape index: {}]   ;;  %s5034_s17 = inlined_call_operand.vmem [shape: f32[1,32], index: 17, kind: input, shape index: {}]   ;;  %s5035_s18 = inlined_call_operand.vmem [shape: bf16[32,64], index: 18, kind: input, shape index: {}]   ;;  %s5036_s19 = inlined_call_operand.vmem [shape: f32[1,64], index: 19, kind: input, shape index: {}]   ;;  %s5037_s20 = inlined_call_operand.vmem [shape: bf16[64,32], index: 20, kind: input, shape index: {}]   ;;  %s5038_s21 = inlined_call_operand.vmem [shape: f32[1,32], index: 21, kind: input, shape index: {}]   ;;  %s5039_s22 = inlined_call_operand.vmem [shape: f32[1,32], index: 22, kind: input, shape index: {}]   ;;  %s5040_s23 = inlined_call_operand.vmem [shape: f32[1,32], index: 23, kind: input, shape index: {}]   ;;  %s5041_s24 = inlined_call_operand.vmem [shape: f32[1,32], index: 24, kind: input, shape index: {}]   ;;  %s5042_s25 = inlined_call_operand.vmem [shape: f32[1,32], index: 25, kind: input, shape index: {}]   ;;  %s5043_s26 = inlined_call_operand.vmem [shape: f32[1,32], index: 26, kind: input, shape index: {}]   ;;  %s5044_s27 = inlined_call_operand.vmem [shape: f32[1,32], index: 27, kind: input, shape index: {}]   ;;  %s5045_s28 = inlined_call_operand.vmem [shape: f32[32,32], index: 28, kind: output, shape index: {}]  }
   0x1   :  { %5064 = sst [smem:[#allocation2_spill]] %s5017_s0 }
   0x2   :  { %5065 = sst [smem:[#allocation3_spill]] %s5018_s1 }
   0x3   :  { %5066 = sst [smem:[#allocation4_spill]] %s5019_s2 }
   0x4   :  { %5067 = sst [smem:[#allocation5_spill]] %s5020_s3 }
   0x5   :  { %5068 = sst [smem:[#allocation6_spill]] %s5021_s4 }
   0x6   :  { %5069 = sst [smem:[#allocation7_spill]] %s5022_s5 }
   0x7   :  { %5070 = sst [smem:[#allocation8_spill]] %s5023_s6 }
   0x8   :  { %5071 = sst [smem:[#allocation9_spill]] %s5024_s7 }
   0x9   :  { %5072 = sst [smem:[#allocation10_spill]] %s5025_s8  ;;  %s4448_s8 = smov 0  }
   0xa   :  { %5073 = sst [smem:[#allocation11_spill]] %s5026_s9 }
   0xb   :  { %5074 = sst [smem:[#allocation12_spill]] %s5027_s10 }
   0xc   :  { %5075 = sst [smem:[#allocation13_spill]] %s5028_s11 }
   0xd   :  { %5076 = sst [smem:[#allocation14_spill]] %s5029_s12 }
   0xe   :  { %5077 = sst [smem:[#allocation15_spill]] %s5030_s13 }
   0xf LB: > { %s3671_s5 = sadd.s32 4294967295, %s4289_s8   ;;  %p3675_p0 = scmp.ge.s32.totalorder %s4289_s8, 1  ;;  %s4289_s8 = sphi %s4448_s8, %s38_s8  }
  0x10   : > { %p796_p1 = scmp.lt.s32.totalorder %s4289_s8, 3 }
  0x12   : > { %p797_p2 = pnand %p3675_p0, %p796_p1 }
  0x13   : > { %s5078_s3 = sld [smem:[#allocation6_spill]] (!%p797_p2)  ;;  %v4291_v1 = vmov (!%p797_p2), 0.0   ;;  %vm4292_vm0 = vmmov (!%p797_p2), 0   ;;  %s3676_s0 = sshll.u32 (!%p797_p2), %s3671_s5, 1  ;;  %vm954_vm1 = vcmask (!%p797_p2), 261120   ;;  %vm1079_vm2 = vcmask (!%p797_p2), 64512  }
  0x14   : > { %800 = sbr.rel (%p797_p2) target bundleno = 5457 (0x1551), region = 132  ;;  %3865 = vmatprep.subr.bf16.mxu1 (!%p797_p2), %v4291_v1  ;;  %3881 = vmatprep.subr.bf16.mxu0 (!%p797_p2), %v4291_v1  ;;  %p886_p3 = scmp.lt.s32.totalorder (!%p797_p2), %s3676_s0, 3  ;;  %vm1333_vm3 = vcmask (!%p797_p2), 1043456   ;;  %v1277_v43 = vlaneseq (!%p797_p2)  ;;  %vm1538_vm5 = vcmask (!%p797_p2), 130048   ;;  %vm1540_vm6 = vcmask (!%p797_p2), 195584  }
  0x15   : > { %3869 = vmatprep.mubr.msk.bf16.mxu1 (!%p797_p2), %vm4292_vm0, %v4291_v1  ;;  %3883 = vmatprep.mubr.msk.bf16.mxu0 (!%p797_p2), %vm4292_vm0, %v4291_v1  ;;  %s5079_s7 = sld [smem:[#allocation2_spill]] (!%p797_p2)  ;;  %s5080_s9 = sld [smem:[#allocation3_spill]] (!%p797_p2)  ;;  %vm3486_vm8 = vcmask (!%p797_p2), 523264  }
  0x16   : > { %s5082_s1 = sld [smem:[#allocation7_spill]] (!%p797_p2)  ;;  %s4293_s4 = smov (!%p797_p2), 80   ;;  %v4549_v44 = vand.u32 (!%p797_p2), 127, %v1277_v43 }
  0x17   : > { %s5058_s6 = smov (!%p797_p2), 120   ;;  %s4297_s10 = smov (!%p797_p2), 72  }
  0x18   : > { %s5056_s29 = smov (!%p797_p2), 112   ;;  %s5054_s2 = smov (!%p797_p2), 104   ;;  %vm1279_vm4 = vcmp.lt.s32.totalorder (!%p797_p2), %v4549_v44, 7  ;;  %vm2566_vm7 = vcmp.lt.s32.totalorder (!%p797_p2), %v4549_v44, 13 }
  0x19   : > { %v4183_v0 = vld [vmem:[%s5078_s3] sm:$0xff] (!%p797_p2)   ;;  %v4184_v2 = vld [vmem:[%s5078_s3 + $0x8] sm:$0xff] (!%p797_p2)   ;;  %s5089_s13 = sld [smem:[#allocation15_spill]] (!%p797_p2) }
  0x1a   : > { %3866 = vmatpush3.bf16.msra.mxu1 (!%p797_p2), %v4183_v0 }
  0x1b   : > { %3867 = vmatprep.subr.bf16.mxu1 %v4291_v1  ;;  %s5099_s0 = smov (!%p886_p3, %s3676_s0), 3 }
  0x1c   : > { %s4471_s11 = sshll.u32 %s5099_s0, 3  ;;  %s5081_s0 = sld [smem:[#allocation8_spill]]  ;;  %v3686_v13 = vld [vmem:[%s5082_s1] ss:$0 sm:$0xff] }
  0x1d   : > { %s889_s12 = scalar_lea.vmem %s5079_s7, %s4471_s11  ;;  %s895_s30 = scalar_lea.vmem %s5080_s9, %s4471_s11 }
  0x1e   : > { %3868 = vmatpush3.bf16.msra.mxu1 %v4184_v2  ;;  %v4482_v3 = vld [vmem:[%s889_s12] sm:$0xff]  ;;  %v4484_v4 = vld [vmem:[%s889_s12 + $0x8] sm:$0xff]  ;;  %s4294_s9 = smov 96   ;;  %s5083_s1 = sld [smem:[#allocation9_spill]] }
  0x1f   : > { %3873 = vmatprep.subr.bf16.mxu1 %v4291_v1  ;;  %v4486_v5 = vld [vmem:[%s895_s30] sm:$0xff]  ;;  %v4488_v6 = vld [vmem:[%s895_s30 + $0x8] sm:$0xff]  ;;  %v1005_v12 = vpack.c.bf16 %v4484_v4, %v4482_v3  ;;  %s4295_s30 = smov 88   ;;  %s5053_s12 = smov 8  }
  0x20   : > { %v928_v7 = vadd.f32 %v4486_v5, %v4482_v3  ;;  %v929_v8 = vadd.f32 %v4488_v6, %v4484_v4  ;;  %s5085_s7 = sld [smem:[#allocation11_spill]] }
  0x22   : > { %v934_v9 = vpack.c.bf16 %v929_v8, %v928_v7  ;;  %v4185_v10 = vld [vmem:[%s5081_s0] sm:$0xff]   ;;  %v4186_v11 = vld [vmem:[%s5081_s0 + $0x8] sm:$0xff]   ;;  %s5095_s0 = smov 8  }
  0x24   : > { %3870 = vmatmul.mubr.msk.bf16.vlgmr.msra.gmra.mrb[0].mxu1 %vm954_vm1, %v934_v9  ;;  %v3690_v34 = vld [vmem:[%s5083_s1] ss:$0 sm:$0xff]  ;;  %s5052_s1 = smov 16  }
  0x25   : > { %3877 = vmatprep.mubr.msk.bf16.mxu1 %vm4292_vm0, %v4291_v1  ;;  %3874 = vmatpush3.bf16.msra.mxu1 %v4185_v10 }
  0x26   : > { %3875 = vmatprep.subr.bf16.mxu1 %v4291_v1 }
  0x29   : > { %3876 = vmatpush3.bf16.msra.mxu1 %v4186_v11 }
  0x2a   : > { %3887 = vmatprep.subr.bf16.mxu1 %v4291_v1 }
  0x2c   : > { %3878 = vmatmul.mubr.msk.bf16.vlgmr.msra.gmra.mrb[4].mxu1 %vm954_vm1, %v1005_v12 }
  0x2d   : > { %3889 = vmatprep.mubr.msk.bf16.mxu1 %vm4292_vm0, %v4291_v1 }
  0xf7   : > { %v992_v14 = vpop.f32.mrb[0].mxu1 }
  0xf8   : > { %v993_v15 = vadd.f32 %v3686_v13, %v992_v14  ;;  %v3871_v16 = vpop.f32.mrb[1].mxu1 }
  0xf9   : > { %v995_v17 = vpop.f32.mrb[2].mxu1 }
  0xfa   : > { %v999_v18 = vmul.f32 0.35355338, %v993_v15  ;;  %v1075_v19 = vpack.c.bf16 %v993_v15, %v993_v15  ;;  %v4513_v20 = vadd.f32 %v3686_v13, %v995_v17  ;;  %v3872_v21 = vpop.f32.mrb[3].mxu1 }
  0xfc   : > { %1179 = vrot.lane.b32.xlu1 %v1075_v19, %s4293_s4  ;;  %1077 = vrot.lane.b32.xlu0 %v1075_v19, %s4294_s9  ;;  %v1074_v22 = vpack.c.bf16 %v999_v18, %v999_v18 }
  0xff   : > { %v1062_v35 = vpop.f32.mrb[4].mxu1 }
 0x100   : > { %1129 = vrot.lane.b32.xlu0 %v1075_v19, %s4295_s30  ;;  %1127 = vrot.lane.b32.xlu1 %v1074_v22, %s5058_s6  ;;  %v1063_v36 = vadd.f32 %v3690_v34, %v1062_v35  ;;  %v3879_v37 = vpop.f32.mrb[5].mxu1 }
 0x101   : > { %v1065_v38 = vpop.f32.mrb[6].mxu1 }
 0x102   : > { %v4545_v39 = vadd.f32 %v3690_v34, %v1065_v38  ;;  %v3880_v40 = vpop.f32.mrb[7].mxu1  ;;  %v1329_v41 = vpack.c.bf16 %v1063_v36, %v1063_v36 }
 0x104   : > { %1229 = vrot.lane.b32.xlu0 %v1075_v19, %s4297_s10  ;;  %1177 = vrot.lane.b32.xlu1 %v1074_v22, %s5056_s29  ;;  %v1335_v42 = vsel %vm1333_vm3, %v1329_v41, 0 }
 0x108   : > { %1227 = vrot.lane.b32.xlu0 %v1074_v22, %s5054_s2 }
 0x16e   : > { %v1078_v23 = vpop.permute.xlu0 %1077  ;;  %v1180_v25 = vpop.permute.xlu1 %1179 }
 0x16f   : > { %v1084_v24 = vsel %vm1079_vm2, %v1078_v23, 0  ;;  %v1185_v28 = vsel %vm1079_vm2, %v1180_v25, 0 }
 0x170   : > { %3882 = vmatpush3.bf16.xpose.msra.mxu0 %v1084_v24 }
 0x171   : > { %3893 = vmatprep.subr.bf16.mxu0 %v4291_v1 }
 0x172   : > { %v1130_v26 = vpop.permute.xlu0 %1129  ;;  %v1128_v29 = vpop.permute.xlu1 %1127 }
 0x173   : > { %v1135_v27 = vsel %vm1079_vm2, %v1130_v26, 0  ;;  %v1000_v26 = vmul.f32 0.35355338, %v4513_v20 }
 0x174   : > { %3888 = vmatpush3.bf16.xpose.msra.mxu1 %v1135_v27  ;;  %v1543_v27 = vpack.c.bf16 %v4513_v20, %v4513_v20 }
 0x175   : > { %3899 = vmatprep.subr.bf16.mxu1 %v4291_v1 }
 0x176   : > { %v1230_v30 = vpop.permute.xlu0 %1229  ;;  %v1178_v32 = vpop.permute.xlu1 %1177 }
 0x177   : > { %3884 = vmatmul.mubr.msk.bf16.vlgmr.msra.gmra.mrb[0].mxu0 %vm1079_vm2, %v1074_v22  ;;  %v1235_v31 = vsel %vm1079_vm2, %v1230_v30, 0 }
 0x178   : > { %3894 = vmatpush3.bf16.xpose.msra.mxu0 %v1185_v28  ;;  %3895 = vmatprep.mubr.msk.bf16.mxu0 %vm4292_vm0, %v4291_v1 }
 0x179   : > { %3905 = vmatprep.subr.bf16.mxu0 %v4291_v1 }
 0x17a   : > { %v1228_v33 = vpop.permute.xlu0 %1227 }
 0x17b   : > { %3890 = vmatmul.mubr.msk.bf16.vlgmr.msra.gmra.mrb[8].mxu1 %vm1079_vm2, %v1128_v29  ;;  %v4574_v29 = vpack.c.bf16 %v1000_v26, %v1000_v26 }
 0x17c   : > { %3900 = vmatpush3.bf16.xpose.msra.mxu1 %v1235_v31  ;;  %3901 = vmatprep.mubr.msk.bf16.mxu1 %vm4292_vm0, %v4291_v1 }
 0x17d   : > { %3911 = vmatprep.subr.bf16.mxu1 %v4291_v1 }
 0x17f   : > { %3896 = vmatmul.mubr.msk.bf16.vlgmr.msra.gmra.mrb[4].mxu0 %vm1079_vm2, %v1178_v32 }
 0x180   : > { %3907 = vmatprep.mubr.msk.bf16.mxu0 %vm4292_vm0, %v4291_v1  ;;  %3906 = vmatpush3.bf16.msra.mxu0 %v1335_v42 }
 0x181   : > { %3917 = vmatprep.subr.bf16.mxu0 %v4291_v1 }
 0x183   : > { %3902 = vmatmul.mubr.msk.bf16.vlgmr.msra.gmra.mrb[12].mxu1 %vm1079_vm2, %v1228_v33 }
 0x184   : > { %3913 = vmatprep.mubr.msk.bf16.mxu1 %vm4292_vm0, %v4291_v1 }
 0x24a   : > { %v1120_v45 = vpop.f32.mrb[0].mxu0 }
 0x24b   : > { %v1280_v46 = vsel %vm1279_vm4, %v1120_v45, -1e+30  ;;  %v3885_v47 = vpop.f32.mrb[1].mxu0 }
 0x24c   : > { %v1123_v48 = vpop.f32.mrb[2].mxu0  ;;  %v1284_v49 = vsel %vm1079_vm2, %v1280_v46, -inf }
 0x24d   : > { %1285 = vmax.xlane.f32.xlu1 %v1284_v49  ;;  %v3886_v50 = vpop.f32.mrb[3].mxu0 }
 0x24e   : > { %v1171_v51 = vpop.f32.mrb[8].mxu1 }
 0x24f   : > { %v1281_v52 = vsel %vm1279_vm4, %v1171_v51, -1e+30  ;;  %v3891_v53 = vpop.f32.mrb[9].mxu1 }
 0x250   : > { %v1174_v54 = vpop.f32.mrb[10].mxu1  ;;  %v1287_v55 = vsel %vm1079_vm2, %v1281_v52, -inf }
 0x251   : > { %1288 = vmax.xlane.f32.xlu0 %v1287_v55  ;;  %v3892_v56 = vpop.f32.mrb[11].mxu1 }
 0x252   : > { %v1221_v57 = vpop.f32.mrb[4].mxu0 }
 0x253   : > { %v1282_v58 = vsel %vm1279_vm4, %v1221_v57, -1e+30  ;;  %v3897_v59 = vpop.f32.mrb[5].mxu0 }
 0x254   : > { %v1224_v60 = vpop.f32.mrb[6].mxu0  ;;  %v1290_v61 = vsel %vm1079_vm2, %v1282_v58, -inf }
 0x255   : > { %v3898_v62 = vpop.f32.mrb[7].mxu0  ;;  %1291 = vmax.xlane.f32.xlu0 %v1290_v61 }
 0x256   : > { %v1271_v63 = vpop.f32.mrb[12].mxu1 }
 0x257   : > { %v1283_v0 = vsel %vm1279_vm4, %v1271_v63, -1e+30  ;;  %v3903_v2 = vpop.f32.mrb[13].mxu1 }
 0x258   : > { %v1274_v7 = vpop.f32.mrb[14].mxu1  ;;  %v1293_v8 = vsel %vm1079_vm2, %v1283_v0, -inf }
 0x259   : > { %1294 = vmax.xlane.f32.xlu1 %v1293_v8  ;;  %v3904_v9 = vpop.f32.mrb[15].mxu1  ;;  %v4624_v8 = vpack.c.bf16 %v4545_v39, %v4545_v39 }
 0x26a   : > { %1428 = vrot.lane.b32.xlu1 %v1329_v41, %s5056_s29 }
 0x26e   : > { %1477 = vrot.lane.b32.xlu1 %v1329_v41, %s5054_s2 }
 0x2da   : > { %v1286_v10 = vpop.xlane.xlu1 %1285 }
 0x2db   : > { %v1296_v11 = vsub.f32 %v1280_v46, %v1286_v10  ;;  %v1798_v10 = vsel %vm1333_vm3, %v4624_v8, 0 }
 0x2dd   : > { %v1300_v12 = vmul.f32 1.442695, %v1296_v11 }
 0x2de   : > { %v1289_v13 = vpop.xlane.xlu0 %1288 }
 0x2df   : > { %4207 = vpow2.f32 %v1300_v12  ;;  %v1297_v14 = vsub.f32 %v1281_v52, %v1289_v13 }
 0x2e1   : > { %v1302_v15 = vmul.f32 1.442695, %v1297_v14 }
 0x2e2   : > { %v1292_v28 = vpop.xlane.xlu0 %1291 }
 0x2e3   : > { %4209 = vpow2.f32 %v1302_v15  ;;  %v1298_v30 = vsub.f32 %v1282_v58, %v1292_v28 }
 0x2e5   : > { %v1304_v31 = vmul.f32 1.442695, %v1298_v30 }
 0x2e6   : > { %v1295_v16 = vpop.xlane.xlu1 %1294 }
 0x2e7   : > { %v1299_v17 = vsub.f32 %v1283_v0, %v1295_v16 }
 0x2e9   : > { %v4208_v18 = vpop.eup %4207  ;;  %v1306_v19 = vmul.f32 1.442695, %v1299_v17 }
 0x2ea   : > { %v1308_v21 = vsel %vm1079_vm2, %v4208_v18, 0.0  ;;  %v1429_v20 = vpop.permute.xlu1 %1428 }
 0x2eb   : > { %4211 = vpow2.f32 %v1306_v19  ;;  %1309 = vadd.xlane.f32.xlu0 %v1308_v21  ;;  %v1434_v46 = vsel %vm1333_vm3, %v1429_v20, 0 }
 0x2ec   : > { %4213 = vpow2.f32 %v1304_v31 }
 0x2ed   : > { %v4210_v22 = vpop.eup %4209 }
 0x2ee   : > { %v1311_v23 = vsel %vm1079_vm2, %v4210_v22, 0.0  ;;  %v1478_v34 = vpop.permute.xlu1 %1477 }
 0x2ef   : > { %1312 = vadd.xlane.f32.xlu1 %v1311_v23  ;;  %v1483_v49 = vsel %vm1333_vm3, %v1478_v34, 0 }
 0x2f5   : > { %v4212_v24 = vpop.eup %4211 }
 0x2f6   : > { %v1317_v25 = vsel %vm1079_vm2, %v4212_v24, 0.0  ;;  %v4214_v32 = vpop.eup %4213 }
 0x2f7   : > { %1318 = vadd.xlane.f32.xlu1 %v1317_v25  ;;  %v1314_v33 = vsel %vm1079_vm2, %v4214_v32, 0.0 }
 0x301   : > { %1379 = vrot.lane.b32.xlu0 %v1329_v41, %s5058_s6 }
 0x308   : > { %1596 = vrot.lane.b32.xlu1 %v1543_v27, %s4295_s30  ;;  %s5084_s30 = sld [smem:[#allocation10_spill]] }
 0x30c   : > { %1594 = vrot.lane.b32.xlu1 %v4574_v29, %s5058_s6 }
 0x310   : > { %1644 = vrot.lane.b32.xlu1 %v4574_v29, %s5056_s29 }
 0x320   : > { %1315 = vadd.xlane.f32.xlu0 %v1314_v33 }
 0x336   : > { %1545 = vrot.lane.b32.xlu0 %v1543_v27, %s4294_s9  ;;  %s5087_s9 = sld [smem:[#allocation5_spill]] }
 0x33a   : > { %1646 = vrot.lane.b32.xlu0 %v1543_v27, %s4293_s4  ;;  %s5051_s4 = smov 24  }
 0x33e   : > { %1696 = vrot.lane.b32.xlu0 %v1543_v27, %s4297_s10 }
 0x342   : > { %1694 = vrot.lane.b32.xlu0 %v4574_v29, %s5054_s2 }
 0x378   : > { %v1310_v35 = vpop.xlane.xlu0 %1309 }
 0x379   : > { %4215 = vrcp.f32 %v1310_v35 }
 0x37c   : > { %v1380_v36 = vpop.permute.xlu0 %1379  ;;  %v1313_v37 = vpop.xlane.xlu1 %1312 }
 0x37d   : > { %v1385_v38 = vsel %vm1333_vm3, %v1380_v36, 0  ;;  %4217 = vrcp.f32 %v1313_v37 }
 0x37e   : > { %3912 = vmatpush3.bf16.msra.mxu1 %v1385_v38 }
 0x37f   : > { %3923 = vmatprep.subr.bf16.mxu1 %v4291_v1 }
 0x383   : > { %v4216_v40 = vpop.eup %4215 }
 0x384   : > { %v1324_v41 = vmul.f32 %v4216_v40, %v4208_v18  ;;  %v1319_v42 = vpop.xlane.xlu1 %1318 }
 0x385   : > { %4219 = vrcp.f32 %v1319_v42 }
 0x386   : > { %v1328_v43 = vpack.c.bf16 %v1324_v41, %v1324_v41 }
 0x387   : > { %v4218_v45 = vpop.eup %4217 }
 0x388   : > { %v1325_v47 = vmul.f32 %v4218_v45, %v4210_v22  ;;  %3908 = vmatmul.mubr.msk.bf16.vlgmr.msra.gmra.mrb[8].mxu0 %vm1079_vm2, %v1328_v43  ;;  %v1597_v52 = vpop.permute.xlu1 %1596 }
 0x389   : > { %3918 = vmatpush3.bf16.msra.mxu0 %v1434_v46  ;;  %3919 = vmatprep.mubr.msk.bf16.mxu0 %vm4292_vm0, %v4291_v1  ;;  %v1602_v54 = vsel %vm1079_vm2, %v1597_v52, 0 }
 0x38a   : > { %v1377_v48 = vpack.c.bf16 %v1325_v47, %v1325_v47  ;;  %3929 = vmatprep.subr.bf16.mxu0 %v4291_v1 }
 0x38c   : > { %3914 = vmatmul.mubr.msk.bf16.vlgmr.msra.gmra.mrb[16].mxu1 %vm1079_vm2, %v1377_v48  ;;  %v1595_v55 = vpop.permute.xlu1 %1594 }
 0x38d   : > { %3924 = vmatpush3.bf16.msra.mxu1 %v1483_v49  ;;  %3925 = vmatprep.mubr.msk.bf16.mxu1 %vm4292_vm0, %v4291_v1 }
 0x38e   : > { %3935 = vmatprep.subr.bf16.mxu1 %v4291_v1 }
 0x38f   : > { %v4220_v50 = vpop.eup %4219 }
 0x390   : > { %v1327_v51 = vmul.f32 %v4220_v50, %v4212_v24  ;;  %v1645_v9 = vpop.permute.xlu1 %1644 }
 0x392   : > { %v1476_v53 = vpack.c.bf16 %v1327_v51, %v1327_v51 }
 0x394   : > { %3926 = vmatmul.mubr.msk.bf16.vlgmr.msra.gmra.mrb[20].mxu1 %vm1079_vm2, %v1476_v53 }
 0x395   : > { %3937 = vmatprep.mubr.msk.bf16.mxu1 %vm4292_vm0, %v4291_v1 }
 0x396   : > { %3936 = vmatpush3.bf16.xpose.msra.mxu1 %v1602_v54 }
 0x397   : > { %3947 = vmatprep.subr.bf16.mxu1 %v4291_v1 }
 0x39d   : > { %3938 = vmatmul.mubr.msk.bf16.vlgmr.msra.gmra.mrb[24].mxu1 %vm1079_vm2, %v1595_v55 }
 0x39e   : > { %3949 = vmatprep.mubr.msk.bf16.mxu1 %vm4292_vm0, %v4291_v1 }
 0x3ad   : > { %v1316_v56 = vpop.xlane.xlu0 %1315 }
 0x3ae   : > { %4221 = vrcp.f32 %v1316_v56 }
 0x3b1   : > { %v1546_v57 = vpop.permute.xlu0 %1545 }
 0x3b2   : > { %v1551_v0 = vsel %vm1079_vm2, %v1546_v57, 0 }
 0x3b5   : > { %v1647_v58 = vpop.permute.xlu0 %1646 }
 0x3b6   : > { %v1652_v7 = vsel %vm1079_vm2, %v1647_v58, 0 }
 0x3b8   : > { %v4222_v59 = vpop.eup %4221 }
 0x3b9   : > { %v1326_v60 = vmul.f32 %v4222_v59, %v4214_v32  ;;  %v1697_v61 = vpop.permute.xlu0 %1696 }
 0x3ba   : > { %v1702_v62 = vsel %vm1079_vm2, %v1697_v61, 0 }
 0x3bb   : > { %3948 = vmatpush3.bf16.xpose.msra.mxu1 %v1702_v62  ;;  %v1427_v63 = vpack.c.bf16 %v1326_v60, %v1326_v60 }
 0x3bc   : > { %3959 = vmatprep.subr.bf16.mxu1 %v4291_v1 }
 0x3bd   : > { %3920 = vmatmul.mubr.msk.bf16.vlgmr.msra.gmra.mrb[12].mxu0 %vm1079_vm2, %v1427_v63  ;;  %v1695_v2 = vpop.permute.xlu0 %1694 }
 0x3be   : > { %3930 = vmatpush3.bf16.xpose.msra.mxu0 %v1551_v0  ;;  %3931 = vmatprep.mubr.msk.bf16.mxu0 %vm4292_vm0, %v4291_v1 }
 0x3bf   : > { %3941 = vmatprep.subr.bf16.mxu0 %v4291_v1 }
 0x3c2   : > { %3950 = vmatmul.mubr.msk.bf16.vlgmr.msra.gmra.mrb[28].mxu1 %vm1079_vm2, %v1695_v2 }
 0x3c3   : > { %3961 = vmatprep.mubr.msk.bf16.mxu1 %vm4292_vm0, %v4291_v1 }
 0x3c5   : > { %3932 = vmatmul.mubr.msk.bf16.vlgmr.msra.gmra.mrb[16].mxu0 %vm1079_vm2, %v4574_v29 }
 0x3c6   : > { %3942 = vmatpush3.bf16.xpose.msra.mxu0 %v1652_v7  ;;  %3943 = vmatprep.mubr.msk.bf16.mxu0 %vm4292_vm0, %v4291_v1 }
 0x3c7   : > { %3953 = vmatprep.subr.bf16.mxu0 %v4291_v1 }
 0x3cd   : > { %3944 = vmatmul.mubr.msk.bf16.vlgmr.msra.gmra.mrb[20].mxu0 %vm1079_vm2, %v1645_v9 }
 0x3ce   : > { %3954 = vmatpush3.bf16.msra.mxu0 %v1798_v10  ;;  %3955 = vmatprep.mubr.msk.bf16.mxu0 %vm4292_vm0, %v4291_v1 }
 0x3cf   : > { %3965 = vmatprep.subr.bf16.mxu0 %v4291_v1 }
 0x45b   : > { %v4632_v11 = vpop.f32.mrb[8].mxu0 }
 0x45c   : > { %v3909_v12 = vpop.f32.mrb[9].mxu0 }
 0x45d   : > { %v1374_v13 = vpop.f32.mrb[10].mxu0 }
 0x45e   : > { %v3910_v14 = vpop.f32.mrb[11].mxu0 }
 0x45f   : > { %v4634_v15 = vpop.f32.mrb[16].mxu1 }
 0x460   : > { %v3915_v39 = vpop.f32.mrb[17].mxu1 }
 0x461   : > { %v1424_v16 = vpop.f32.mrb[18].mxu1 }
 0x462   : > { %v3916_v17 = vpop.f32.mrb[19].mxu1 }
 0x467   : > { %v4636_v18 = vpop.f32.mrb[20].mxu1 }
 0x468   : > { %v3927_v19 = vpop.f32.mrb[21].mxu1 }
 0x469   : > { %v1522_v21 = vpop.f32.mrb[22].mxu1 }
 0x46a   : > { %v3928_v22 = vpop.f32.mrb[23].mxu1 }
 0x470   : > { %v1638_v23 = vpop.f32.mrb[24].mxu1 }
 0x471   : > { %v1745_v24 = vsel %vm1279_vm4, %v1638_v23, -1e+30  ;;  %v3939_v25 = vpop.f32.mrb[25].mxu1 }
 0x472   : > { %v1641_v26 = vpop.f32.mrb[26].mxu1  ;;  %v1751_v27 = vsel %vm1079_vm2, %v1745_v24, -inf }
 0x473   : > { %1752 = vmax.xlane.f32.xlu0 %v1751_v27  ;;  %v3940_v28 = vpop.f32.mrb[27].mxu1 }
 0x490   : > { %v4641_v29 = vpop.f32.mrb[12].mxu0 }
 0x491   : > { %v3921_v30 = vpop.f32.mrb[13].mxu0 }
 0x492   : > { %v1473_v31 = vpop.f32.mrb[14].mxu0 }
 0x493   : > { %v3922_v32 = vpop.f32.mrb[15].mxu0 }
 0x495   : > { %v1738_v33 = vpop.f32.mrb[28].mxu1 }
 0x496   : > { %v3951_v20 = vpop.f32.mrb[29].mxu1  ;;  %v1747_v42 = vsel %vm1279_vm4, %v1738_v33, -1e+30 }
 0x497   : > { %v1741_v34 = vpop.f32.mrb[30].mxu1  ;;  %v1757_v45 = vsel %vm1079_vm2, %v1747_v42, -inf }
 0x498   : > { %v1587_v35 = vpop.f32.mrb[16].mxu0  ;;  %v3952_v36 = vpop.f32.mrb[31].mxu1 }
 0x499   : > { %v1744_v37 = vsel %vm1279_vm4, %v1587_v35, -1e+30  ;;  %v3933_v38 = vpop.f32.mrb[17].mxu0 }
 0x49a   : > { %v1590_v40 = vpop.f32.mrb[18].mxu0  ;;  %v1748_v41 = vsel %vm1079_vm2, %v1744_v37, -inf  ;;  %v4187_v38 = vld [vmem:[%s5084_s30] sm:$0xff]  }
 0x49b   : > { %1749 = vmax.xlane.f32.xlu1 %v1748_v41  ;;  %v3934_v43 = vpop.f32.mrb[19].mxu0 }
 0x49f   : > { %1758 = vmax.xlane.f32.xlu1 %v1757_v45 }
 0x4a0   : > { %v1688_v46 = vpop.f32.mrb[20].mxu0 }
 0x4a1   : > { %v1746_v47 = vsel %vm1279_vm4, %v1688_v46, -1e+30  ;;  %v3945_v48 = vpop.f32.mrb[21].mxu0 }
 0x4a2   : > { %v1691_v49 = vpop.f32.mrb[22].mxu0  ;;  %v1754_v50 = vsel %vm1079_vm2, %v1746_v47, -inf }
 0x4a3   : > { %v3946_v51 = vpop.f32.mrb[23].mxu0  ;;  %1755 = vmax.xlane.f32.xlu0 %v1754_v50  ;;  %v4188_v49 = vld [vmem:[%s5084_s30 + $0x8] sm:$0xff]  }
 0x500   : > { %v1753_v52 = vpop.xlane.xlu0 %1752 }
 0x501   : > { %v1761_v53 = vsub.f32 %v1745_v24, %v1753_v52 }
 0x503   : > { %v1766_v54 = vmul.f32 1.442695, %v1761_v53 }
 0x505   : > { %4223 = vpow2.f32 %v1766_v54 }
 0x50f   : > { %v4224_v55 = vpop.eup %4223 }
 0x510   : > { %v1775_v56 = vsel %vm1079_vm2, %v4224_v55, 0.0 }
 0x511   : > { %1776 = vadd.xlane.f32.xlu1 %v1775_v56 }
 0x522   : > { %1891 = vrot.lane.b32.xlu1 %v4624_v8, %s5056_s29  ;;  %s5091_s29 = smov 112  }
 0x528   : > { %v1750_v57 = vpop.xlane.xlu1 %1749 }
 0x529   : > { %v1760_v58 = vsub.f32 %v1744_v37, %v1750_v57 }
 0x52b   : > { %v1764_v59 = vmul.f32 1.442695, %v1760_v58 }
 0x52c   : > { %v1759_v60 = vpop.xlane.xlu1 %1758 }
 0x52d   : > { %4225 = vpow2.f32 %v1764_v59  ;;  %v1763_v61 = vsub.f32 %v1747_v42, %v1759_v60 }
 0x52f   : > { %v1770_v2 = vmul.f32 1.442695, %v1763_v61 }
 0x530   : > { %v1756_v62 = vpop.xlane.xlu0 %1755 }
 0x531   : > { %v1762_v63 = vsub.f32 %v1746_v47, %v1756_v62 }
 0x533   : > { %v1768_v0 = vmul.f32 1.442695, %v1762_v63 }
 0x535   : > { %4227 = vpow2.f32 %v1768_v0 }
 0x536   : > { %4229 = vpow2.f32 %v1770_v2 }
 0x537   : > { %v4226_v7 = vpop.eup %4225 }
 0x538   : > { %v1772_v9 = vsel %vm1079_vm2, %v4226_v7, 0.0 }
 0x539   : > { %1773 = vadd.xlane.f32.xlu0 %v1772_v9 }
 0x53f   : > { %v4228_v10 = vpop.eup %4227 }
 0x540   : > { %v1778_v12 = vsel %vm1079_vm2, %v4228_v10, 0.0  ;;  %v4230_v13 = vpop.eup %4229 }
 0x541   : > { %1779 = vadd.xlane.f32.xlu0 %v1778_v12  ;;  %v1781_v14 = vsel %vm1079_vm2, %v4230_v13, 0.0 }
 0x546   : > { %1782 = vadd.xlane.f32.xlu1 %v1781_v14 }
 0x557   : > { %1940 = vrot.lane.b32.xlu1 %v4624_v8, %s5054_s2  ;;  %1842 = vrot.lane.b32.xlu0 %v4624_v8, %s5058_s6  ;;  %s5090_s6 = smov 120  }
 0x59e   : > { %v1777_v39 = vpop.xlane.xlu1 %1776 }
 0x59f   : > { %4231 = vrcp.f32 %v1777_v39 }
 0x5a2   : > { %v1892_v21 = vpop.permute.xlu1 %1891 }
 0x5a3   : > { %v1897_v8 = vsel %vm1333_vm3, %v1892_v21, 0 }
 0x5a9   : > { %v4232_v17 = vpop.eup %4231 }
 0x5aa   : > { %v1789_v23 = vmul.f32 %v4232_v17, %v4224_v55  ;;  %v3710_v17 = vld [vmem:[%s5085_s7] ss:$0 sm:$0xff]  ;;  %s5086_s7 = sld [smem:[#allocation14_spill]] }
 0x5ac   : > { %v1840_v30 = vpack.c.bf16 %v1789_v23, %v1789_v23 }
 0x5c6   : > { %v1774_v16 = vpop.xlane.xlu0 %1773 }
 0x5c7   : > { %4233 = vrcp.f32 %v1774_v16 }
 0x5ce   : > { %v1780_v19 = vpop.xlane.xlu0 %1779 }
 0x5cf   : > { %4235 = vrcp.f32 %v1780_v19 }
 0x5d1   : > { %v4234_v22 = vpop.eup %4233 }
 0x5d2   : > { %v1788_v24 = vmul.f32 %v4234_v22, %v4226_v7  ;;  %v1843_v25 = vpop.permute.xlu0 %1842 }
 0x5d3   : > { %v1848_v26 = vsel %vm1333_vm3, %v1843_v25, 0  ;;  %v1783_v27 = vpop.xlane.xlu1 %1782 }
 0x5d4   : > { %4237 = vrcp.f32 %v1783_v27  ;;  %3960 = vmatpush3.bf16.msra.mxu1 %v1848_v26  ;;  %v1792_v28 = vpack.c.bf16 %v1788_v24, %v1788_v24 }
 0x5d5   : > { %3971 = vmatprep.subr.bf16.mxu1 %v4291_v1 }
 0x5d6   : > { %3956 = vmatmul.mubr.msk.bf16.vlgmr.msra.gmra.mrb[24].mxu0 %vm1079_vm2, %v1792_v28 }
 0x5d7   : > { %3966 = vmatpush3.bf16.msra.mxu0 %v1897_v8  ;;  %v1941_v31 = vpop.permute.xlu1 %1940  ;;  %3962 = vmatmul.mubr.msk.bf16.vlgmr.msra.gmra.mrb[32].mxu1 %vm1079_vm2, %v1840_v30 }
 0x5d8   : > { %v1946_v32 = vsel %vm1333_vm3, %v1941_v31, 0  ;;  %3967 = vmatprep.mubr.msk.bf16.mxu0 %vm4292_vm0, %v4291_v1  ;;  %3973 = vmatprep.mubr.msk.bf16.mxu1 %vm4292_vm0, %v4291_v1 }
 0x5d9   : > { %v4236_v33 = vpop.eup %4235  ;;  %3972 = vmatpush3.bf16.msra.mxu1 %v1946_v32  ;;  %3977 = vmatprep.subr.bf16.mxu0 %v4291_v1 }
 0x5da   : > { %v1790_v20 = vmul.f32 %v4236_v33, %v4228_v10  ;;  %3985 = vmatprep.subr.bf16.mxu1 %v4291_v1 }
 0x5dc   : > { %v1890_v34 = vpack.c.bf16 %v1790_v20, %v1790_v20 }
 0x5de   : > { %v4238_v35 = vpop.eup %4237  ;;  %3968 = vmatmul.mubr.msk.bf16.vlgmr.msra.gmra.mrb[28].mxu0 %vm1079_vm2, %v1890_v34 }
 0x5df   : > { %v1791_v36 = vmul.f32 %v4238_v35, %v4230_v13  ;;  %3981 = vmatprep.mubr.msk.bf16.mxu0 %vm4292_vm0, %v4291_v1  ;;  %3978 = vmatpush3.bf16.msra.mxu0 %v4187_v38 }
 0x5e0   : > { %3979 = vmatprep.subr.bf16.mxu0 %v4291_v1 }
 0x5e1   : > { %v1939_v37 = vpack.c.bf16 %v1791_v36, %v1791_v36 }
 0x5e3   : > { %3974 = vmatmul.mubr.msk.bf16.vlgmr.msra.gmra.mrb[36].mxu1 %vm1079_vm2, %v1939_v37  ;;  %3980 = vmatpush3.bf16.msra.mxu0 %v4188_v49  ;;  %v4190_v37 = vld [vmem:[%s5086_s7 + $0x8] sm:$0xff]  }
 0x5e4   : > { %3989 = vmatprep.mubr.msk.bf16.mxu1 %vm4292_vm0, %v4291_v1 }
 0x6a9   : > { %v1834_v40 = vpop.f32.mrb[24].mxu0 }
 0x6aa   : > { %v3957_v41 = vpop.f32.mrb[25].mxu0  ;;  %v1884_v42 = vpop.f32.mrb[32].mxu1 }
 0x6ab   : > { %v4153_v43 = vpack.i.bf16 %v1884_v42, %v4634_v15  ;;  %v1837_v45 = vpop.f32.mrb[26].mxu0  ;;  %v3963_v46 = vpop.f32.mrb[33].mxu1 }
 0x6ac   : > { %v3958_v47 = vpop.f32.mrb[27].mxu0  ;;  %v1887_v48 = vpop.f32.mrb[34].mxu1 }
 0x6ad   : > { %4154 = vrot.lane.b32.xlu0 %v4153_v43, %s5053_s12  ;;  %v3964_v50 = vpop.f32.mrb[35].mxu1 }
 0x6b1   : > { %v1933_v51 = vpop.f32.mrb[28].mxu0 }
 0x6b2   : > { %v4158_v52 = vpack.i.bf16 %v1933_v51, %v4641_v29  ;;  %v3969_v53 = vpop.f32.mrb[29].mxu0  ;;  %v3714_v51 = vld [vmem:[%s5039_s22] ss:$0 sm:$0xff] }
 0x6b3   : > { %v1936_v15 = vpop.f32.mrb[30].mxu0 }
 0x6b4   : > { %4159 = vrot.lane.b32.xlu1 %v4158_v52, %s5052_s1  ;;  %v3970_v54 = vpop.f32.mrb[31].mxu0  ;;  %s5088_s1 = sld [smem:[#allocation12_spill]]  ;;  %v3715_v15 = vld [vmem:[%s5040_s23] ss:$0 sm:$0xff] }
 0x6b6   : > { %v1982_v55 = vpop.f32.mrb[36].mxu1 }
 0x6b7   : > { %v4163_v56 = vpack.i.bf16 %v1982_v55, %v4636_v18  ;;  %v3975_v57 = vpop.f32.mrb[37].mxu1 }
 0x6b8   : > { %v1985_v58 = vpop.f32.mrb[38].mxu1 }
 0x6b9   : > { %4164 = vrot.lane.b32.xlu0 %v4163_v56, %s5051_s4  ;;  %v3976_v59 = vpop.f32.mrb[39].mxu1  ;;  %s3680_s4 = sshll.u32 %s3671_s5, 2  ;;  %s5097_s5 = smov 24  }
 0x6ba   : > { %p898_p4 = scmp.lt.s32.totalorder %s3680_s4, 7  ;;  %v4193_v41 = vld [vmem:[%s5088_s1] sm:$0xff]   ;;  %v4194_v42 = vld [vmem:[%s5088_s1 + $0x8] sm:$0xff]  }
 0x6bb   : > { %3986 = vmatpush3.bf16.msra.mxu1 %v4193_v41 }
 0x6bc   : > { %s5101_s4 = smov (!%p898_p4, %s3680_s4), 7  ;;  %3987 = vmatprep.subr.bf16.mxu1 %v4291_v1 }
 0x6bd   : > { %s3681_s2 = sshll.u32 %s5101_s4, 2  ;;  %s5094_s4 = sld [smem:[#allocation13_spill]] }
 0x6be   : > { %s907_s10 = scalar_lea.vmem %s5087_s9, %s3681_s2  ;;  %s5092_s9 = smov 104  }
 0x6bf   : > { %v4191_v38 = vld [vmem:[%s907_s10] sm:$0xff]   ;;  %3988 = vmatpush3.bf16.msra.mxu1 %v4194_v42 }
 0x71f   : > { %v4155_v60 = vpop.permute.xlu0 %4154 }
 0x720   : > { %v4157_v62 = vunpack.i.h.bf16 %v4155_v60  ;;  %v4156_v63 = vunpack.i.l.bf16 %v4155_v60 }
 0x722   : > { %v2000_v7 = vsel %vm1079_vm2, %v1834_v40, %v4157_v62  ;;  %v1537_v18 = vsel %vm1079_vm2, %v4632_v11, %v4156_v63  ;;  %v4192_v40 = vld [vmem:[%s907_s10 + $0x8] sm:$0xff]   ;;  %v3720_v62 = vld [vmem:[%s5089_s13] ss:$0 sm:$0xff]  ;;  %s5096_s10 = smov 16  }
 0x726   : > { %v4160_v61 = vpop.permute.xlu1 %4159 }
 0x727   : > { %v4162_v29 = vunpack.i.h.bf16 %v4160_v61  ;;  %v4161_v0 = vunpack.i.l.bf16 %v4160_v61 }
 0x729   : > { %v1539_v12 = vsel %vm1538_vm5, %v1537_v18, %v4161_v0  ;;  %v2001_v13 = vsel %vm1538_vm5, %v2000_v7, %v4162_v29 }
 0x72b   : > { %v4165_v2 = vpop.permute.xlu0 %4164 }
 0x72c   : > { %v4167_v9 = vunpack.i.h.bf16 %v4165_v2  ;;  %v4166_v10 = vunpack.i.l.bf16 %v4165_v2 }
 0x72e   : > { %v2002_v14 = vsel %vm1540_vm6, %v2001_v13, %v4167_v9  ;;  %v1541_v39 = vsel %vm1540_vm6, %v1539_v12, %v4166_v10  ;;  %v4195_v13 = vld [vmem:[%s5031_s14] sm:$0xff]  }
 0x72f   : > { %v2003_v16 = vpack.c.bf16 %v2002_v14, %v1541_v39  ;;  %v4196_v14 = vld [vmem:[%s5031_s14 + $0x8] sm:$0xff]   ;;  %4001 = vmatprep.subr.bf16.mxu1 %v4195_v13 }
 0x731   : > { %3982 = vmatmul.mubr.msk.bf16.vlgmr.msra.gmra.mrb[32].mxu0 %vm954_vm1, %v2003_v16 }
 0x732   : > { %3997 = vmatprep.mubr.msk.bf16.mxu0 %vm954_vm1, %v4191_v38 }
 0x804   : > { %v2059_v19 = vpop.f32.mrb[32].mxu0 }
 0x805   : > { %v2060_v21 = vadd.f32 %v3710_v17, %v2059_v19  ;;  %v3983_v11 = vpop.f32.mrb[33].mxu0 }
 0x806   : > { %v2062_v22 = vpop.f32.mrb[34].mxu0 }
 0x807   : > { %v2063_v23 = vadd.f32 %v3710_v17, %v2062_v22  ;;  %v3984_v24 = vpop.f32.mrb[35].mxu0  ;;  %v2066_v25 = vadd.f32 %v2060_v21, %v4482_v3  ;;  %v3716_v21 = vld [vmem:[%s5094_s4] ss:$0 sm:$0xff] }
 0x809   : > { %v2070_v26 = vsel %vm954_vm1, %v2066_v25, 0.0  ;;  %v2067_v27 = vadd.f32 %v2063_v23, %v4484_v4  ;;  %v4189_v4 = vld [vmem:[%s5086_s7] sm:$0xff]   ;;  %s5093_s7 = sld [smem:[#allocation4_spill]] }
 0x80a   : > { %2071 = vadd.xlane.f32.xlu1 %v2070_v26  ;;  %3993 = vmatprep.subr.bf16.mxu0 %v4189_v4 }
 0x80b   : > { %v2073_v28 = vsel %vm954_vm1, %v2067_v27, 0.0  ;;  %3994 = vmatpush3.bf16.msra.mxu0 %v4189_v4 }
 0x80c   : > { %2074 = vadd.xlane.f32.xlu0 %v2073_v28  ;;  %3995 = vmatprep.subr.bf16.mxu0 %v4190_v37 }
 0x80f   : > { %3996 = vmatpush3.bf16.msra.mxu0 %v4190_v37  ;;  %s901_s13 = scalar_lea.vmem %s5093_s7, %s3681_s2  ;;  %s913_s2 = scalar_lea.vmem %s5045_s28, %s4471_s11 }
 0x810   : > { %4009 = vmatprep.subr.bf16.mxu0 %v4291_v1  ;;  %v4197_v39 = vld [vmem:[%s901_s13] sm:$0xff]   ;;  %v4198_v16 = vld [vmem:[%s901_s13 + $0x8] sm:$0xff]  }
 0x812   : > { %3998 = vmatmul.mubr.msk.bf16.vlgmr.msra.gmra.mrb[36].mxu0 %vm954_vm1, %v4192_v40 }
 0x813   : > { %4011 = vmatprep.mubr.msk.bf16.mxu0 %vm4292_vm0, %v4291_v1 }
 0x897   : > { %v2072_v30 = vpop.xlane.xlu1 %2071 }
 0x898   : > { %v2077_v8 = vmul.f32 0.03125, %v2072_v30 }
 0x899   : > { %v2075_v31 = vpop.xlane.xlu0 %2074 }
 0x89a   : > { %v2079_v32 = vsub.f32 %v2066_v25, %v2077_v8  ;;  %v2078_v33 = vmul.f32 0.03125, %v2075_v31  ;;  %v3727_v31 = vld [vmem:[%s5032_s15] ss:$0 sm:$0xff] }
 0x89c   : > { %v2080_v20 = vsub.f32 %v2067_v27, %v2078_v33  ;;  %v2081_v34 = vmul.f32 %v2079_v32, %v2079_v32 }
 0x89e   : > { %v2083_v35 = vsel %vm954_vm1, %v2081_v34, 0.0  ;;  %v2082_v36 = vmul.f32 %v2080_v20, %v2080_v20 }
 0x89f   : > { %2084 = vadd.xlane.f32.xlu0 %v2083_v35 }
 0x8a0   : > { %v2086_v3 = vsel %vm954_vm1, %v2082_v36, 0.0 }
 0x8a1   : > { %2087 = vadd.xlane.f32.xlu1 %v2086_v3 }
 0x8e5   : > { %v3999_v63 = vpop.f32.mrb[36].mxu0 }
 0x8e6   : > { %v2267_v29 = vadd.f32 %v3999_v63, %v3720_v62  ;;  %v2258_v0 = vpop.f32.mrb[37].mxu0 }
 0x8e7   : > { %v2259_v2 = vadd.f32 %v3720_v62, %v2258_v0  ;;  %v4000_v7 = vpop.f32.mrb[38].mxu0 }
 0x8e8   : > { %v2270_v18 = vadd.f32 %v4000_v7, %v3720_v62  ;;  %v2261_v9 = vpop.f32.mrb[39].mxu0 }
 0x8e9   : > { %v2262_v10 = vadd.f32 %v3720_v62, %v2261_v9 }
 0x8eb   : > { %v2367_v12 = vpack.c.bf16 %v2262_v10, %v2259_v2 }
 0x8ed   : > { %2418 = vrot.lane.b32.xlu0 %v2367_v12, %s5090_s6  ;;  %2468 = vrot.lane.b32.xlu1 %v2367_v12, %s5091_s29 }
 0x8f1   : > { %2518 = vrot.lane.b32.xlu0 %v2367_v12, %s5092_s9 }
 0x92c   : > { %v2085_v43 = vpop.xlane.xlu0 %2084 }
 0x92d   : > { %v2089_v45 = vmul.f32 0.03125, %v2085_v43 }
 0x92e   : > { %v2088_v46 = vpop.xlane.xlu1 %2087 }
 0x92f   : > { %v2091_v47 = vadd.f32 1e-05, %v2089_v45  ;;  %v2090_v48 = vmul.f32 0.03125, %v2088_v46 }
 0x931   : > { %4239 = vrsqrt.f32 %v2091_v47  ;;  %v2092_v49 = vadd.f32 1e-05, %v2090_v48 }
 0x933   : > { %4241 = vrsqrt.f32 %v2092_v49 }
 0x93b   : > { %v4240_v50 = vpop.eup %4239 }
 0x93c   : > { %v2095_v52 = vmul.f32 %v4240_v50, %v2079_v32 }
 0x93d   : > { %v4242_v53 = vpop.eup %4241 }
 0x93e   : > { %v2103_v54 = vmul.f32 %v3714_v51, %v2095_v52  ;;  %v2096_v55 = vmul.f32 %v4242_v53, %v2080_v20 }
 0x940   : > { %v2104_v56 = vmul.f32 %v3714_v51, %v2096_v55  ;;  %v4744_v57 = vadd.f32 %v3715_v15, %v2103_v54 }
 0x942   : > { %v4746_v58 = vadd.f32 %v3715_v15, %v2104_v56  ;;  %v2113_v59 = vadd.f32 %v4744_v57, %v4486_v5  ;;  %v4756_v5 = vpack.c.bf16 %v2270_v18, %v2267_v29 }
 0x944   : > { %v2114_v60 = vadd.f32 %v4746_v58, %v4488_v6  ;;  %v2372_v6 = vsel %vm1079_vm2, %v2367_v12, 0 }
 0x945   : > { %4010 = vmatpush3.bf16.xpose.msra.mxu0 %v2372_v6 }
 0x946   : > { %v2119_v61 = vpack.c.bf16 %v2114_v60, %v2113_v59  ;;  %4021 = vmatprep.subr.bf16.mxu0 %v4291_v1 }
 0x948   : > { %3990 = vmatmul.mubr.msk.bf16.vlgmr.msra.gmra.mrb[40].mxu1 %vm954_vm1, %v2119_v61 }
 0x949   : > { %4002 = vmatpush3.bf16.msra.mxu1 %v4195_v13  ;;  %4005 = vmatprep.mubr.msk.bf16.mxu1 %vm954_vm1, %v4197_v39 }
 0x94a   : > { %4003 = vmatprep.subr.bf16.mxu1 %v4196_v14 }
 0x94d   : > { %4004 = vmatpush3.bf16.msra.mxu1 %v4196_v14 }
 0x94e   : > { %4015 = vmatprep.subr.bf16.mxu1 %v4291_v1 }
 0x950   : > { %4006 = vmatmul.mubr.msk.bf16.vlgmr.msra.gmra.mrb[44].mxu1 %vm954_vm1, %v4198_v16 }
 0x951   : > { %4017 = vmatprep.mubr.msk.bf16.mxu1 %vm4292_vm0, %v4291_v1 }
 0x95f   : > { %v2419_v17 = vpop.permute.xlu0 %2418  ;;  %v2469_v28 = vpop.permute.xlu1 %2468 }
 0x960   : > { %v2424_v19 = vsel %vm1079_vm2, %v2419_v17, 0  ;;  %v2474_v8 = vsel %vm1079_vm2, %v2469_v28, 0 }
 0x961   : > { %4016 = vmatpush3.bf16.xpose.msra.mxu1 %v2424_v19 }
 0x962   : > { %4027 = vmatprep.subr.bf16.mxu1 %v4291_v1 }
 0x963   : > { %v2519_v40 = vpop.permute.xlu0 %2518 }
 0x964   : > { %v2524_v42 = vsel %vm1079_vm2, %v2519_v40, 0 }
 0xa1b   : > { %v2176_v11 = vpop.f32.mrb[40].mxu1 }
 0xa1c   : > { %v2177_v22 = vadd.f32 %v3716_v21, %v2176_v11  ;;  %v3991_v23 = vpop.f32.mrb[41].mxu1 }
 0xa1d   : > { %v2179_v24 = vpop.f32.mrb[42].mxu1 }
 0xa1e   : > { %v2183_v25 = vmul.f32 0.35355338, %v2177_v22  ;;  %v4784_v26 = vadd.f32 %v3716_v21, %v2179_v24  ;;  %v3992_v27 = vpop.f32.mrb[43].mxu1 }
 0xa20   : > { %v2366_v30 = vpack.c.bf16 %v2183_v25, %v2183_v25  ;;  %v2184_v28 = vmul.f32 0.35355338, %v4784_v26 }
 0xa22   : > { %2516 = vrot.lane.b32.xlu0 %v2366_v30, %s5092_s9  ;;  %2415 = vrot.lane.b32.xlu1 %v2366_v30, %s5090_s6 }
 0xa23   : > { %4012 = vmatmul.mubr.msk.bf16.vlgmr.msra.gmra.mrb[40].mxu0 %vm1079_vm2, %v2366_v30  ;;  %v4007_v32 = vpop.f32.mrb[44].mxu1 }
 0xa24   : > { %4022 = vmatpush3.bf16.xpose.msra.mxu0 %v2474_v8  ;;  %4023 = vmatprep.mubr.msk.bf16.mxu0 %vm4292_vm0, %v4291_v1  ;;  %v2355_v33 = vadd.f32 %v4007_v32, %v3727_v31  ;;  %v2346_v20 = vpop.f32.mrb[45].mxu1  ;;  %v2817_v8 = vpack.c.bf16 %v2184_v28, %v2184_v28 }
 0xa25   : > { %4033 = vmatprep.subr.bf16.mxu0 %v4291_v1  ;;  %v2347_v34 = vadd.f32 %v3727_v31, %v2346_v20  ;;  %v4008_v35 = vpop.f32.mrb[46].mxu1 }
 0xa26   : > { %2466 = vrot.lane.b32.xlu1 %v2366_v30, %s5091_s29  ;;  %v2358_v36 = vadd.f32 %v4008_v35, %v3727_v31  ;;  %v2349_v3 = vpop.f32.mrb[47].mxu1 }
 0xa27   : > { %v2350_v4 = vadd.f32 %v3727_v31, %v2349_v3 }
 0xa28   : > { %v4797_v37 = vpack.c.bf16 %v2358_v36, %v2355_v33 }
 0xa29   : > { %v4799_v38 = vpack.c.bf16 %v2350_v4, %v2347_v34 }
 0xa94   : > { %v2416_v41 = vpop.permute.xlu1 %2415  ;;  %v2517_v45 = vpop.permute.xlu0 %2516 }
 0xa95   : > { %4018 = vmatmul.mubr.msk.bf16.vlgmr.msra.gmra.mrb[48].mxu1 %vm1079_vm2, %v2416_v41 }
 0xa96   : > { %4028 = vmatpush3.bf16.xpose.msra.mxu1 %v2524_v42  ;;  %4029 = vmatprep.mubr.msk.bf16.mxu1 %vm4292_vm0, %v4291_v1 }
 0xa97   : > { %4039 = vmatprep.subr.bf16.mxu1 %v4291_v1 }
 0xa98   : > { %v2467_v43 = vpop.permute.xlu1 %2466 }
 0xa99   : > { %4024 = vmatmul.mubr.msk.bf16.vlgmr.msra.gmra.mrb[44].mxu0 %vm1079_vm2, %v2467_v43 }
 0xa9a   : > { %4034 = vmatpush3.bf16.msra.mxu0 %v4799_v38  ;;  %4035 = vmatprep.mubr.msk.bf16.mxu0 %vm4292_vm0, %v4291_v1 }
 0xa9b   : > { %4045 = vmatprep.subr.bf16.mxu0 %v4291_v1 }
 0xa9d   : > { %4030 = vmatmul.mubr.msk.bf16.vlgmr.msra.gmra.mrb[52].mxu1 %vm1079_vm2, %v2517_v45 }
 0xa9e   : > { %4041 = vmatprep.mubr.msk.bf16.mxu1 %vm4292_vm0, %v4291_v1 }
 0xaf6   : > { %v2408_v46 = vpop.f32.mrb[40].mxu0 }
 0xaf7   : > { %v2567_v47 = vsel %vm2566_vm7, %v2408_v46, -1e+30  ;;  %v4013_v48 = vpop.f32.mrb[41].mxu0 }
 0xaf8   : > { %v2411_v49 = vpop.f32.mrb[42].mxu0  ;;  %v2571_v50 = vsel %vm1538_vm5, %v2567_v47, -inf }
 0xaf9   : > { %2572 = vmax.xlane.f32.xlu1 %v2571_v50  ;;  %v4014_v51 = vpop.f32.mrb[43].mxu0  ;;  %v2823_v49 = vsel %vm1079_vm2, %v4756_v5, 0 }
 0xb68   : > { %v2460_v52 = vpop.f32.mrb[48].mxu1 }
 0xb69   : > { %v2568_v53 = vsel %vm2566_vm7, %v2460_v52, -1e+30  ;;  %v4019_v15 = vpop.f32.mrb[49].mxu1 }
 0xb6a   : > { %v2463_v54 = vpop.f32.mrb[50].mxu1  ;;  %v2574_v55 = vsel %vm1538_vm5, %v2568_v53, -inf }
 0xb6b   : > { %2575 = vmax.xlane.f32.xlu0 %v2574_v55  ;;  %v4020_v56 = vpop.f32.mrb[51].mxu1 }
 0xb6c   : > { %v2510_v59 = vpop.f32.mrb[44].mxu0 }
 0xb6d   : > { %v2569_v60 = vsel %vm2566_vm7, %v2510_v59, -1e+30  ;;  %v4025_v61 = vpop.f32.mrb[45].mxu0 }
 0xb6e   : > { %v2513_v62 = vpop.f32.mrb[46].mxu0  ;;  %v2577_v63 = vsel %vm1538_vm5, %v2569_v60, -inf }
 0xb6f   : > { %v4026_v29 = vpop.f32.mrb[47].mxu0  ;;  %2578 = vmax.xlane.f32.xlu0 %v2577_v63 }
 0xb70   : > { %v2560_v0 = vpop.f32.mrb[52].mxu1 }
 0xb71   : > { %v2570_v2 = vsel %vm2566_vm7, %v2560_v0, -1e+30  ;;  %v4031_v7 = vpop.f32.mrb[53].mxu1 }
 0xb72   : > { %v2563_v18 = vpop.f32.mrb[54].mxu1  ;;  %v2580_v9 = vsel %vm1538_vm5, %v2570_v2, -inf }
 0xb73   : > { %2581 = vmax.xlane.f32.xlu1 %v2580_v9  ;;  %v4032_v10 = vpop.f32.mrb[55].mxu1 }
 0xb84   : > { %2709 = vrot.lane.b32.xlu1 %v4799_v38, %s5091_s29 }
 0xb86   : > { %v2573_v12 = vpop.xlane.xlu1 %2572 }
 0xb87   : > { %v2583_v6 = vsub.f32 %v2567_v47, %v2573_v12 }
 0xb89   : > { %v2587_v13 = vmul.f32 1.442695, %v2583_v6 }
 0xb8b   : > { %4243 = vpow2.f32 %v2587_v13 }
 0xb95   : > { %v4244_v14 = vpop.eup %4243 }
 0xb96   : > { %v2595_v39 = vsel %vm1538_vm5, %v4244_v14, 0.0 }
 0xb97   : > { %2596 = vadd.xlane.f32.xlu0 %v2595_v39 }
 0xbad   : > { %2662 = vrot.lane.b32.xlu0 %v4799_v38, %s5090_s6 }
 0xbf8   : > { %v2576_v16 = vpop.xlane.xlu0 %2575 }
 0xbf9   : > { %v2584_v17 = vsub.f32 %v2568_v53, %v2576_v16 }
 0xbfb   : > { %v2589_v19 = vmul.f32 1.442695, %v2584_v17 }
 0xbfc   : > { %v2579_v21 = vpop.xlane.xlu0 %2578 }
 0xbfd   : > { %4245 = vpow2.f32 %v2589_v19  ;;  %v2585_v11 = vsub.f32 %v2569_v60, %v2579_v21 }
 0xbff   : > { %v2591_v22 = vmul.f32 1.442695, %v2585_v11 }
 0xc00   : > { %v2582_v31 = vpop.xlane.xlu1 %2581 }
 0xc01   : > { %4247 = vpow2.f32 %v2591_v22  ;;  %v2586_v32 = vsub.f32 %v2570_v2, %v2582_v31 }
 0xc03   : > { %v2593_v20 = vmul.f32 1.442695, %v2586_v32 }
 0xc04   : > { %v2710_v36 = vpop.permute.xlu1 %2709 }
 0xc07   : > { %v4246_v23 = vpop.eup %4245 }
 0xc08   : > { %v2598_v24 = vsel %vm1538_vm5, %v4246_v23, 0.0 }
 0xc09   : > { %2599 = vadd.xlane.f32.xlu1 %v2598_v24 }
 0xc0b   : > { %v4248_v25 = vpop.eup %4247 }
 0xc0c   : > { %v2601_v27 = vsel %vm1538_vm5, %v4248_v25, 0.0 }
 0xc0d   : > { %2602 = vadd.xlane.f32.xlu0 %v2601_v27 }
 0xc1a   : > { %2756 = vrot.lane.b32.xlu1 %v4799_v38, %s5092_s9 }
 0xc23   : > { %2869 = vrot.lane.b32.xlu0 %v4756_v5, %s5090_s6 }
 0xc24   : > { %v2597_v30 = vpop.xlane.xlu0 %2596 }
 0xc25   : > { %4249 = vrcp.f32 %v2597_v30 }
 0xc26   : > { %4251 = vpow2.f32 %v2593_v20 }
 0xc27   : > { %2866 = vrot.lane.b32.xlu0 %v2817_v8, %s5090_s6 }
 0xc28   : > { %v2663_v33 = vpop.permute.xlu0 %2662 }
 0xc29   : > { %4040 = vmatpush3.bf16.msra.mxu1 %v2663_v33 }
 0xc2a   : > { %4051 = vmatprep.subr.bf16.mxu1 %v4291_v1 }
 0xc2b   : > { %2917 = vrot.lane.b32.xlu0 %v2817_v8, %s5091_s29 }
 0xc2f   : > { %v4250_v34 = vpop.eup %4249 }
 0xc30   : > { %v2611_v26 = vmul.f32 %v4250_v34, %v4244_v14  ;;  %v4252_v3 = vpop.eup %4251 }
 0xc31   : > { %v2604_v4 = vsel %vm1538_vm5, %v4252_v3, 0.0 }
 0xc32   : > { %v2615_v35 = vpack.c.bf16 %v2611_v26, %v2611_v26 }
 0xc34   : > { %4036 = vmatmul.mubr.msk.bf16.vlgmr.msra.gmra.mrb[48].mxu0 %vm1538_vm5, %v2615_v35 }
 0xc35   : > { %4046 = vmatpush3.bf16.msra.mxu0 %v2710_v36  ;;  %4047 = vmatprep.mubr.msk.bf16.mxu0 %vm4292_vm0, %v4291_v1 }
 0xc36   : > { %4057 = vmatprep.subr.bf16.mxu0 %v4291_v1 }
 0xc3e   : > { %2605 = vadd.xlane.f32.xlu1 %v2604_v4 }
 0xc4f   : > { %2919 = vrot.lane.b32.xlu1 %v4756_v5, %s5091_s29 }
 0xc53   : > { %2969 = vrot.lane.b32.xlu1 %v4756_v5, %s5092_s9 }
 0xc57   : > { %2967 = vrot.lane.b32.xlu1 %v2817_v8, %s5092_s9 }
 0xc96   : > { %v2600_v38 = vpop.xlane.xlu1 %2599 }
 0xc97   : > { %4253 = vrcp.f32 %v2600_v38 }
 0xc9a   : > { %v2603_v40 = vpop.xlane.xlu0 %2602  ;;  %v2757_v46 = vpop.permute.xlu1 %2756 }
 0xc9b   : > { %4255 = vrcp.f32 %v2603_v40 }
 0xc9e   : > { %v2870_v50 = vpop.permute.xlu0 %2869 }
 0xc9f   : > { %v2875_v59 = vsel %vm1079_vm2, %v2870_v50, 0 }
 0xca1   : > { %v4254_v41 = vpop.eup %4253 }
 0xca2   : > { %v2612_v42 = vmul.f32 %v4254_v41, %v4246_v23  ;;  %v2867_v15 = vpop.permute.xlu0 %2866 }
 0xca4   : > { %v2660_v43 = vpack.c.bf16 %v2612_v42, %v2612_v42 }
 0xca5   : > { %v4256_v45 = vpop.eup %4255 }
 0xca6   : > { %v2613_v47 = vmul.f32 %v4256_v45, %v4248_v25  ;;  %4042 = vmatmul.mubr.msk.bf16.vlgmr.msra.gmra.mrb[56].mxu1 %vm1538_vm5, %v2660_v43  ;;  %v2918_v54 = vpop.permute.xlu0 %2917 }
 0xca7   : > { %4052 = vmatpush3.bf16.msra.mxu1 %v2757_v46  ;;  %4053 = vmatprep.mubr.msk.bf16.mxu1 %vm4292_vm0, %v4291_v1 }
 0xca8   : > { %v2708_v48 = vpack.c.bf16 %v2613_v47, %v2613_v47  ;;  %4063 = vmatprep.subr.bf16.mxu1 %v4291_v1 }
 0xcaa   : > { %4048 = vmatmul.mubr.msk.bf16.vlgmr.msra.gmra.mrb[52].mxu0 %vm1538_vm5, %v2708_v48 }
 0xcab   : > { %4058 = vmatpush3.bf16.xpose.msra.mxu0 %v2823_v49  ;;  %4059 = vmatprep.mubr.msk.bf16.mxu0 %vm4292_vm0, %v4291_v1 }
 0xcac   : > { %4069 = vmatprep.subr.bf16.mxu0 %v4291_v1 }
 0xcb2   : > { %4060 = vmatmul.mubr.msk.bf16.vlgmr.msra.gmra.mrb[56].mxu0 %vm1079_vm2, %v2817_v8 }
 0xcb3   : > { %4071 = vmatprep.mubr.msk.bf16.mxu0 %vm4292_vm0, %v4291_v1 }
 0xccb   : > { %v2606_v51 = vpop.xlane.xlu1 %2605 }
 0xccc   : > { %4257 = vrcp.f32 %v2606_v51 }
 0xccf   : > { %v2920_v52 = vpop.permute.xlu1 %2919 }
 0xcd0   : > { %v2925_v53 = vsel %vm1079_vm2, %v2920_v52, 0 }
 0xcd1   : > { %4070 = vmatpush3.bf16.xpose.msra.mxu0 %v2925_v53 }
 0xcd2   : > { %4081 = vmatprep.subr.bf16.mxu0 %v4291_v1 }
 0xcd3   : > { %v2970_v60 = vpop.permute.xlu1 %2969 }
 0xcd4   : > { %v2975_v61 = vsel %vm1079_vm2, %v2970_v60, 0 }
 0xcd6   : > { %v4258_v5 = vpop.eup %4257 }
 0xcd7   : > { %v2614_v55 = vmul.f32 %v4258_v5, %v4252_v3  ;;  %v2968_v62 = vpop.permute.xlu1 %2967 }
 0xcd8   : > { %4072 = vmatmul.mubr.msk.bf16.vlgmr.msra.gmra.mrb[60].mxu0 %vm1079_vm2, %v2918_v54 }
 0xcd9   : > { %4082 = vmatpush3.bf16.msra.mxu0 %v4797_v37  ;;  %v2755_v56 = vpack.c.bf16 %v2614_v55, %v2614_v55  ;;  %4083 = vmatprep.mubr.msk.bf16.mxu0 %vm4292_vm0, %v4291_v1 }
 0xcda   : > { %4093 = vmatprep.subr.bf16.mxu0 %v4291_v1 }
 0xcdb   : > { %4054 = vmatmul.mubr.msk.bf16.vlgmr.msra.gmra.mrb[60].mxu1 %vm1538_vm5, %v2755_v56 }
 0xcdc   : > { %4064 = vmatpush3.bf16.xpose.msra.mxu1 %v2875_v59  ;;  %4065 = vmatprep.mubr.msk.bf16.mxu1 %vm4292_vm0, %v4291_v1 }
 0xcdd   : > { %4075 = vmatprep.subr.bf16.mxu1 %v4291_v1 }
 0xce3   : > { %4066 = vmatmul.mubr.msk.bf16.vlgmr.msra.gmra.mrb[64].mxu1 %vm1079_vm2, %v2867_v15 }
 0xce4   : > { %4076 = vmatpush3.bf16.xpose.msra.mxu1 %v2975_v61  ;;  %4077 = vmatprep.mubr.msk.bf16.mxu1 %vm4292_vm0, %v4291_v1 }
 0xce5   : > { %4087 = vmatprep.subr.bf16.mxu1 %v4291_v1 }
 0xceb   : > { %4078 = vmatmul.mubr.msk.bf16.vlgmr.msra.gmra.mrb[68].mxu1 %vm1079_vm2, %v2968_v62 }
 0xcec   : > { %4089 = vmatprep.mubr.msk.bf16.mxu1 %vm4292_vm0, %v4291_v1 }
 0xd07   : > { %v4885_v63 = vpop.f32.mrb[48].mxu0 }
 0xd08   : > { %v4037_v29 = vpop.f32.mrb[49].mxu0 }
 0xd09   : > { %v2657_v0 = vpop.f32.mrb[50].mxu0 }
 0xd0a   : > { %v4038_v2 = vpop.f32.mrb[51].mxu0 }
 0xd79   : > { %v4887_v7 = vpop.f32.mrb[56].mxu1 }
 0xd7a   : > { %v4043_v18 = vpop.f32.mrb[57].mxu1 }
 0xd7b   : > { %v2705_v9 = vpop.f32.mrb[58].mxu1 }
 0xd7c   : > { %v4044_v10 = vpop.f32.mrb[59].mxu1 }
 0xd7d   : > { %v4889_v12 = vpop.f32.mrb[52].mxu0 }
 0xd7e   : > { %v4049_v6 = vpop.f32.mrb[53].mxu0 }
 0xd7f   : > { %v2752_v13 = vpop.f32.mrb[54].mxu0 }
 0xd80   : > { %v4050_v14 = vpop.f32.mrb[55].mxu0 }
 0xd85   : > { %v2859_v39 = vpop.f32.mrb[56].mxu0 }
 0xd86   : > { %v3017_v16 = vsel %vm2566_vm7, %v2859_v39, -1e+30  ;;  %v4061_v17 = vpop.f32.mrb[57].mxu0 }
 0xd87   : > { %v2862_v19 = vpop.f32.mrb[58].mxu0  ;;  %v3021_v21 = vsel %vm1538_vm5, %v3017_v16, -inf }
 0xd88   : > { %3022 = vmax.xlane.f32.xlu0 %v3021_v21  ;;  %v4062_v11 = vpop.f32.mrb[59].mxu0 }
 0xdab   : > { %v2961_v22 = vpop.f32.mrb[60].mxu0 }
 0xdac   : > { %v3019_v23 = vsel %vm2566_vm7, %v2961_v22, -1e+30  ;;  %v4073_v24 = vpop.f32.mrb[61].mxu0 }
 0xdad   : > { %v2964_v25 = vpop.f32.mrb[62].mxu0  ;;  %v3027_v27 = vsel %vm1538_vm5, %v3019_v23, -inf }
 0xdae   : > { %v4897_v28 = vpop.f32.mrb[60].mxu1  ;;  %3028 = vmax.xlane.f32.xlu0 %v3027_v27  ;;  %v4074_v30 = vpop.f32.mrb[63].mxu0 }
 0xdaf   : > { %v4055_v8 = vpop.f32.mrb[61].mxu1 }
 0xdb0   : > { %v2799_v31 = vpop.f32.mrb[62].mxu1 }
 0xdb1   : > { %v4056_v32 = vpop.f32.mrb[63].mxu1  ;;  %v4199_v31 = vld [vmem:[%s5033_s16] sm:$0xff]  }
 0xdb6   : > { %v2911_v33 = vpop.f32.mrb[64].mxu1 }
 0xdb7   : > { %v3018_v20 = vsel %vm2566_vm7, %v2911_v33, -1e+30  ;;  %v4067_v34 = vpop.f32.mrb[65].mxu1 }
 0xdb8   : > { %v2914_v26 = vpop.f32.mrb[66].mxu1  ;;  %v3024_v35 = vsel %vm1538_vm5, %v3018_v20, -inf }
 0xdb9   : > { %3025 = vmax.xlane.f32.xlu1 %v3024_v35  ;;  %v4068_v36 = vpop.f32.mrb[67].mxu1 }
 0xdbe   : > { %v3011_v3 = vpop.f32.mrb[68].mxu1 }
 0xdbf   : > { %v3020_v4 = vsel %vm2566_vm7, %v3011_v3, -1e+30  ;;  %v4079_v38 = vpop.f32.mrb[69].mxu1 }
 0xdc0   : > { %v3014_v40 = vpop.f32.mrb[70].mxu1  ;;  %v3030_v41 = vsel %vm1538_vm5, %v3020_v4, -inf }
 0xdc1   : > { %v4080_v42 = vpop.f32.mrb[71].mxu1  ;;  %3031 = vmax.xlane.f32.xlu0 %v3030_v41 }
 0xdca   : > { %3112 = vrot.lane.b32.xlu1 %v4797_v37, %s5090_s6 }
 0xe15   : > { %v3023_v43 = vpop.xlane.xlu0 %3022 }
 0xe16   : > { %v3033_v45 = vsub.f32 %v3017_v16, %v3023_v43 }
 0xe18   : > { %v3037_v46 = vmul.f32 1.442695, %v3033_v45 }
 0xe1a   : > { %4259 = vpow2.f32 %v3037_v46 }
 0xe24   : > { %v4260_v47 = vpop.eup %4259 }
 0xe25   : > { %v3045_v48 = vsel %vm1538_vm5, %v4260_v47, 0.0 }
 0xe26   : > { %3046 = vadd.xlane.f32.xlu1 %v3045_v48 }
 0xe3b   : > { %v3029_v49 = vpop.xlane.xlu0 %3028 }
 0xe3c   : > { %v3035_v44 = vsub.f32 %v3019_v23, %v3029_v49 }
 0xe3e   : > { %v3041_v50 = vmul.f32 1.442695, %v3035_v44 }
 0xe40   : > { %4261 = vpow2.f32 %v3041_v50 }
 0xe46   : > { %v3026_v51 = vpop.xlane.xlu1 %3025 }
 0xe47   : > { %v3034_v52 = vsub.f32 %v3018_v20, %v3026_v51  ;;  %v4200_v20 = vld [vmem:[%s5033_s16 + $0x8] sm:$0xff]  }
 0xe49   : > { %v3039_v53 = vmul.f32 1.442695, %v3034_v52 }
 0xe4a   : > { %v4262_v15 = vpop.eup %4261  ;;  %v3113_v5 = vpop.permute.xlu1 %3112 }
 0xe4b   : > { %4263 = vpow2.f32 %v3039_v53  ;;  %4088 = vmatpush3.bf16.msra.mxu1 %v3113_v5  ;;  %v3051_v54 = vsel %vm1538_vm5, %v4262_v15, 0.0 }
 0xe4c   : > { %3052 = vadd.xlane.f32.xlu1 %v3051_v54  ;;  %4099 = vmatprep.subr.bf16.mxu1 %v4291_v1 }
 0xe4e   : > { %v3032_v55 = vpop.xlane.xlu0 %3031 }
 0xe4f   : > { %v3036_v56 = vsub.f32 %v3020_v4, %v3032_v55 }
 0xe51   : > { %v3043_v59 = vmul.f32 1.442695, %v3036_v56 }
 0xe53   : > { %4265 = vpow2.f32 %v3043_v59 }
 0xe55   : > { %v4264_v60 = vpop.eup %4263 }
 0xe56   : > { %v3048_v61 = vsel %vm1538_vm5, %v4264_v60, 0.0 }
 0xe57   : > { %3049 = vadd.xlane.f32.xlu0 %v3048_v61 }
 0xe5d   : > { %v4266_v62 = vpop.eup %4265  ;;  %3206 = vrot.lane.b32.xlu1 %v4797_v37, %s5092_s9 }
 0xe5e   : > { %v3054_v29 = vsel %vm1538_vm5, %v4266_v62, 0.0 }
 0xe5f   : > { %3055 = vadd.xlane.f32.xlu0 %v3054_v29 }
 0xe75   : > { %3159 = vrot.lane.b32.xlu0 %v4797_v37, %s5091_s29 }
 0xeb3   : > { %v3047_v0 = vpop.xlane.xlu1 %3046 }
 0xeb4   : > { %4267 = vrcp.f32 %v3047_v0 }
 0xebe   : > { %v4268_v2 = vpop.eup %4267 }
 0xebf   : > { %v3061_v18 = vmul.f32 %v4268_v2, %v4260_v47 }
 0xec1   : > { %v3065_v9 = vpack.c.bf16 %v3061_v18, %v3061_v18 }
 0xec3   : > { %4084 = vmatmul.mubr.msk.bf16.vlgmr.msra.gmra.mrb[64].mxu0 %vm1538_vm5, %v3065_v9 }
 0xec4   : > { %4095 = vmatprep.mubr.msk.bf16.mxu0 %vm4292_vm0, %v4291_v1 }
 0xed9   : > { %v3053_v10 = vpop.xlane.xlu1 %3052 }
 0xeda   : > { %4269 = vrcp.f32 %v3053_v10 }
 0xedd   : > { %v3207_v11 = vpop.permute.xlu1 %3206 }
 0xee4   : > { %v3050_v6 = vpop.xlane.xlu0 %3049  ;;  %v4270_v13 = vpop.eup %4269 }
 0xee5   : > { %4271 = vrcp.f32 %v3050_v6  ;;  %v3063_v39 = vmul.f32 %v4270_v13, %v4262_v15 }
 0xee7   : > { %v3158_v21 = vpack.c.bf16 %v3063_v39, %v3063_v39 }
 0xeec   : > { %v3056_v14 = vpop.xlane.xlu0 %3055 }
 0xeed   : > { %4273 = vrcp.f32 %v3056_v14 }
 0xeef   : > { %v4272_v16 = vpop.eup %4271 }
 0xef0   : > { %v3062_v37 = vmul.f32 %v4272_v16, %v4264_v60  ;;  %v3160_v17 = vpop.permute.xlu0 %3159 }
 0xef1   : > { %4094 = vmatpush3.bf16.msra.mxu0 %v3160_v17 }
 0xef2   : > { %v3110_v19 = vpack.c.bf16 %v3062_v37, %v3062_v37  ;;  %4105 = vmatprep.subr.bf16.mxu0 %v4291_v1 }
 0xef4   : > { %4090 = vmatmul.mubr.msk.bf16.vlgmr.msra.gmra.mrb[72].mxu1 %vm1538_vm5, %v3110_v19  ;;  %4096 = vmatmul.mubr.msk.bf16.vlgmr.msra.gmra.mrb[68].mxu0 %vm1538_vm5, %v3158_v21 }
 0xef5   : > { %4100 = vmatpush3.bf16.msra.mxu1 %v3207_v11  ;;  %4101 = vmatprep.mubr.msk.bf16.mxu1 %vm4292_vm0, %v4291_v1  ;;  %v4202_v11 = vld [vmem:[%s5035_s18 + $0x8] sm:$0xff]  }
 0xef6   : > { %4109 = vmatprep.mubr.msk.bf16.mxu0 %vm4292_vm0, %v4291_v1  ;;  %4113 = vmatprep.subr.bf16.mxu1 %v4291_v1 }
 0xef7   : > { %v4274_v22 = vpop.eup %4273  ;;  %4106 = vmatpush3.bf16.msra.mxu0 %v4199_v31 }
 0xef8   : > { %v3064_v23 = vmul.f32 %v4274_v22, %v4266_v62  ;;  %4107 = vmatprep.subr.bf16.mxu0 %v4291_v1  ;;  %v4203_v22 = vld [vmem:[%s5037_s20] sm:$0xff]  }
 0xefa   : > { %v3205_v24 = vpack.c.bf16 %v3064_v23, %v3064_v23  ;;  %v4204_v23 = vld [vmem:[%s5037_s20 + $0x8] sm:$0xff]  }
 0xefb   : > { %4108 = vmatpush3.bf16.msra.mxu0 %v4200_v20  ;;  %v3754_v20 = vld [vmem:[%s5041_s24] ss:$0 sm:$0xff] }
 0xefc   : > { %4102 = vmatmul.mubr.msk.bf16.vlgmr.msra.gmra.mrb[76].mxu1 %vm1538_vm5, %v3205_v24  ;;  %4121 = vmatprep.subr.bf16.mxu0 %v4291_v1 }
 0xefd   : > { %4117 = vmatprep.mubr.msk.bf16.mxu1 %vm4292_vm0, %v4291_v1 }
 0xf96   : > { %v3104_v25 = vpop.f32.mrb[64].mxu0 }
 0xf97   : > { %v4085_v27 = vpop.f32.mrb[65].mxu0 }
 0xf98   : > { %v3107_v30 = vpop.f32.mrb[66].mxu0 }
 0xf99   : > { %v4086_v8 = vpop.f32.mrb[67].mxu0 }
 0xfc7   : > { %v3152_v32 = vpop.f32.mrb[72].mxu1  ;;  %v3199_v33 = vpop.f32.mrb[68].mxu0 }
 0xfc8   : > { %v4168_v34 = vpack.i.bf16 %v3152_v32, %v4887_v7  ;;  %v4173_v26 = vpack.i.bf16 %v3199_v33, %v4889_v12  ;;  %v4091_v35 = vpop.f32.mrb[73].mxu1  ;;  %v4097_v36 = vpop.f32.mrb[69].mxu0 }
 0xfc9   : > { %v3155_v3 = vpop.f32.mrb[74].mxu1  ;;  %v3202_v4 = vpop.f32.mrb[70].mxu0  ;;  %v3755_v36 = vld [vmem:[%s5042_s25] ss:$0 sm:$0xff] }
 0xfca   : > { %4169 = vrot.lane.b32.xlu1 %v4168_v34, %s5095_s0  ;;  %v4092_v38 = vpop.f32.mrb[75].mxu1  ;;  %4174 = vrot.lane.b32.xlu0 %v4173_v26, %s5096_s10  ;;  %v4098_v40 = vpop.f32.mrb[71].mxu0 }
 0xfcf   : > { %v3246_v41 = vpop.f32.mrb[76].mxu1 }
 0xfd0   : > { %v4178_v42 = vpack.i.bf16 %v3246_v41, %v4897_v28  ;;  %v4103_v43 = vpop.f32.mrb[77].mxu1  ;;  %v4205_v41 = vld [vmem:[%s5037_s20 + $0x10] sm:$0xff]  }
 0xfd1   : > { %v3249_v7 = vpop.f32.mrb[78].mxu1  ;;  %v3756_v43 = vld [vmem:[%s5036_s19] ss:$0 sm:$0xff] }
 0xfd2   : > { %4179 = vrot.lane.b32.xlu1 %v4178_v42, %s5097_s5  ;;  %v4104_v12 = vpop.f32.mrb[79].mxu1  ;;  %v4206_v42 = vld [vmem:[%s5037_s20 + $0x18] sm:$0xff]  }
0x103c   : > { %v4170_v45 = vpop.permute.xlu1 %4169  ;;  %v4175_v48 = vpop.permute.xlu0 %4174 }
0x103d   : > { %v4172_v46 = vunpack.i.h.bf16 %v4170_v45  ;;  %v4171_v47 = vunpack.i.l.bf16 %v4170_v45  ;;  %v4177_v49 = vunpack.i.h.bf16 %v4175_v48  ;;  %v4176_v44 = vunpack.i.l.bf16 %v4175_v48 }
0x103f   : > { %v2814_v50 = vsel %vm1079_vm2, %v4885_v63, %v4171_v47  ;;  %v3264_v51 = vsel %vm1079_vm2, %v3104_v25, %v4172_v46  ;;  %v3750_v63 = vld [vmem:[%s5034_s17] ss:$0 sm:$0xff] }
0x1040   : > { %v3265_v28 = vsel %vm1538_vm5, %v3264_v51, %v4177_v49  ;;  %v2815_v5 = vsel %vm1538_vm5, %v2814_v50, %v4176_v44 }
0x1044   : > { %v4180_v52 = vpop.permute.xlu1 %4179 }
0x1045   : > { %v4182_v53 = vunpack.i.h.bf16 %v4180_v52  ;;  %v4181_v15 = vunpack.i.l.bf16 %v4180_v52 }
0x1047   : > { %v2816_v54 = vsel %vm1540_vm6, %v2815_v5, %v4181_v15  ;;  %v3266_v55 = vsel %vm1540_vm6, %v3265_v28, %v4182_v53 }
0x1048   : > { %v3267_v56 = vpack.c.bf16 %v3266_v55, %v2816_v54 }
0x104a   : > { %4110 = vmatmul.mubr.msk.bf16.vlgmr.msra.gmra.mrb[72].mxu0 %vm954_vm1, %v3267_v56 }
0x104b   : > { %4129 = vmatprep.mubr.msk.bf16.mxu0 %vm4292_vm0, %v4291_v1  ;;  %4122 = vmatpush3.bf16.msra.mxu0 %v4203_v22 }
0x104c   : > { %4123 = vmatprep.subr.bf16.mxu0 %v4291_v1 }
0x104f   : > { %4124 = vmatpush3.bf16.msra.mxu0 %v4204_v23 }
0x1050   : > { %4125 = vmatprep.subr.bf16.mxu0 %v4291_v1 }
0x1053   : > { %4126 = vmatpush3.bf16.msra.mxu0 %v4205_v41 }
0x1054   : > { %4127 = vmatprep.subr.bf16.mxu0 %v4291_v1 }
0x1057   : > { %4128 = vmatpush3.bf16.msra.mxu0 %v4206_v42 }
0x111d   : > { %v3323_v59 = vpop.f32.mrb[72].mxu0 }
0x111e   : > { %v3324_v60 = vadd.f32 %v3750_v63, %v3323_v59  ;;  %v4111_v61 = vpop.f32.mrb[73].mxu0 }
0x111f   : > { %v3326_v62 = vpop.f32.mrb[74].mxu0 }
0x1120   : > { %v3327_v29 = vadd.f32 %v3750_v63, %v3326_v62  ;;  %v4112_v0 = vpop.f32.mrb[75].mxu0  ;;  %v3330_v2 = vadd.f32 %v3324_v60, %v4744_v57 }
0x1122   : > { %v3334_v18 = vsel %vm954_vm1, %v3330_v2, 0.0  ;;  %v3331_v9 = vadd.f32 %v3327_v29, %v4746_v58  ;;  %v4201_v58 = vld [vmem:[%s5035_s18] sm:$0xff]  }
0x1123   : > { %3335 = vadd.xlane.f32.xlu0 %v3334_v18  ;;  %4114 = vmatpush3.bf16.msra.mxu1 %v4201_v58  ;;  %v3767_v58 = vld [vmem:[%s5044_s27] ss:$0 sm:$0xff] }
0x1124   : > { %v3337_v10 = vsel %vm954_vm1, %v3331_v9, 0.0  ;;  %4115 = vmatprep.subr.bf16.mxu1 %v4291_v1  ;;  %v3760_v1 = vld [vmem:[%s5038_s21] ss:$0 sm:$0xff] }
0x1125   : > { %3338 = vadd.xlane.f32.xlu1 %v3337_v10 }
0x1127   : > { %4116 = vmatpush3.bf16.msra.mxu1 %v4202_v11 }
0x11b0   : > { %v3336_v6 = vpop.xlane.xlu0 %3335 }
0x11b1   : > { %v3340_v13 = vmul.f32 0.03125, %v3336_v6 }
0x11b2   : > { %v3339_v14 = vpop.xlane.xlu1 %3338 }
0x11b3   : > { %v3342_v39 = vsub.f32 %v3330_v2, %v3340_v13  ;;  %v3341_v16 = vmul.f32 0.03125, %v3339_v14 }
0x11b5   : > { %v3343_v37 = vsub.f32 %v3331_v9, %v3341_v16  ;;  %v3344_v17 = vmul.f32 %v3342_v39, %v3342_v39 }
0x11b7   : > { %v3346_v19 = vsel %vm954_vm1, %v3344_v17, 0.0  ;;  %v3345_v21 = vmul.f32 %v3343_v37, %v3343_v37 }
0x11b8   : > { %3347 = vadd.xlane.f32.xlu0 %v3346_v19  ;;  %v3766_v19 = vld [vmem:[%s5043_s26] ss:$0 sm:$0xff] }
0x11b9   : > { %v3349_v57 = vsel %vm954_vm1, %v3345_v21, 0.0 }
0x11bc   : > { %3350 = vadd.xlane.f32.xlu0 %v3349_v57 }
0x1245   : > { %v3348_v24 = vpop.xlane.xlu0 %3347 }
0x1246   : > { %v3352_v25 = vmul.f32 0.03125, %v3348_v24 }
0x1248   : > { %v3354_v27 = vadd.f32 1e-05, %v3352_v25 }
0x1249   : > { %v3351_v30 = vpop.xlane.xlu0 %3350 }
0x124a   : > { %4275 = vrsqrt.f32 %v3354_v27  ;;  %v3353_v8 = vmul.f32 0.03125, %v3351_v30 }
0x124c   : > { %v3355_v31 = vadd.f32 1e-05, %v3353_v8 }
0x124e   : > { %4277 = vrsqrt.f32 %v3355_v31 }
0x1254   : > { %v4276_v32 = vpop.eup %4275 }
0x1255   : > { %v3358_v33 = vmul.f32 %v4276_v32, %v3342_v39 }
0x1257   : > { %v3366_v26 = vmul.f32 %v3754_v20, %v3358_v33 }
0x1258   : > { %v4278_v34 = vpop.eup %4277 }
0x1259   : > { %v3359_v35 = vmul.f32 %v4278_v34, %v3343_v37  ;;  %v3374_v4 = vadd.f32 %v3755_v36, %v3366_v26 }
0x125b   : > { %v3367_v3 = vmul.f32 %v3754_v20, %v3359_v35 }
0x125d   : > { %v3375_v38 = vadd.f32 %v3755_v36, %v3367_v3 }
0x125f   : > { %v3380_v40 = vpack.c.bf16 %v3375_v38, %v3374_v4 }
0x1261   : > { %4118 = vmatmul.mubr.msk.bf16.vlgmr.msra.gmra.mrb[80].mxu1 %vm954_vm1, %v3380_v40 }
0x1334   : > { %v3437_v7 = vpop.f32.mrb[80].mxu1 }
0x1335   : > { %v3438_v12 = vadd.f32 %v3756_v43, %v3437_v7  ;;  %v4119_v45 = vpop.f32.mrb[81].mxu1 }
0x1336   : > { %v3440_v46 = vpop.f32.mrb[82].mxu1 }
0x1337   : > { %v3441_v47 = vadd.f32 %v3756_v43, %v3440_v46  ;;  %v4120_v48 = vpop.f32.mrb[83].mxu1  ;;  %v3444_v49 = vmax.f32 %v3438_v12, 0.0 }
0x1339   : > { %v3445_v44 = vmax.f32 %v3441_v47, 0.0 }
0x133b   : > { %v3454_v50 = vpack.c.bf16 %v3445_v44, %v3444_v49 }
0x133d   : > { %4130 = vmatmul.mubr.msk.bf16.vlgmr.msra.gmra.mrb[76].mxu0 %vm3486_vm8, %v3454_v50 }
0x1410   : > { %v3524_v51 = vpop.f32.mrb[76].mxu0 }
0x1411   : > { %v3525_v52 = vadd.f32 %v3760_v1, %v3524_v51  ;;  %v4131_v53 = vpop.f32.mrb[77].mxu0 }
0x1412   : > { %v3527_v15 = vpop.f32.mrb[78].mxu0 }
0x1413   : > { %v3528_v28 = vadd.f32 %v3760_v1, %v3527_v15  ;;  %v4132_v5 = vpop.f32.mrb[79].mxu0  ;;  %v3531_v54 = vadd.f32 %v3525_v52, %v3374_v4 }
0x1415   : > { %v3535_v55 = vsel %vm954_vm1, %v3531_v54, 0.0  ;;  %v3532_v56 = vadd.f32 %v3528_v28, %v3375_v38 }
0x1416   : > { %3536 = vadd.xlane.f32.xlu1 %v3535_v55 }
0x1417   : > { %v3538_v63 = vsel %vm954_vm1, %v3532_v56, 0.0 }
0x1418   : > { %3539 = vadd.xlane.f32.xlu0 %v3538_v63 }
0x14a3   : > { %v3537_v59 = vpop.xlane.xlu1 %3536 }
0x14a4   : > { %v3541_v60 = vmul.f32 0.03125, %v3537_v59 }
0x14a5   : > { %v3540_v61 = vpop.xlane.xlu0 %3539 }
0x14a6   : > { %v3543_v62 = vsub.f32 %v3531_v54, %v3541_v60  ;;  %v3542_v29 = vmul.f32 0.03125, %v3540_v61 }
0x14a8   : > { %v3544_v0 = vsub.f32 %v3532_v56, %v3542_v29  ;;  %v3545_v2 = vmul.f32 %v3543_v62, %v3543_v62 }
0x14aa   : > { %v3547_v18 = vsel %vm954_vm1, %v3545_v2, 0.0  ;;  %v3546_v9 = vmul.f32 %v3544_v0, %v3544_v0 }
0x14ab   : > { %3548 = vadd.xlane.f32.xlu1 %v3547_v18 }
0x14ac   : > { %v3550_v10 = vsel %vm954_vm1, %v3546_v9, 0.0 }
0x14ad   : > { %3551 = vadd.xlane.f32.xlu0 %v3550_v10 }
0x1538   : > { %v3549_v6 = vpop.xlane.xlu1 %3548 }
0x1539   : > { %v3553_v13 = vmul.f32 0.03125, %v3549_v6 }
0x153a   : > { %v3552_v14 = vpop.xlane.xlu0 %3551 }
0x153b   : > { %v3555_v39 = vadd.f32 1e-05, %v3553_v13  ;;  %v3554_v16 = vmul.f32 0.03125, %v3552_v14 }
0x153d   : > { %4279 = vrsqrt.f32 %v3555_v39  ;;  %v3556_v37 = vadd.f32 1e-05, %v3554_v16 }
0x153f   : > { %4281 = vrsqrt.f32 %v3556_v37 }
0x1547   : > { %v4280_v17 = vpop.eup %4279 }
0x1548   : > { %v3559_v21 = vmul.f32 %v4280_v17, %v3543_v62 }
0x1549   : > { %v4282_v57 = vpop.eup %4281 }
0x154a   : > { %v3567_v11 = vmul.f32 %v3766_v19, %v3559_v21  ;;  %v3560_v22 = vmul.f32 %v4282_v57, %v3544_v0 }
0x154c   : > { %v3575_v23 = vadd.f32 %v3767_v58, %v3567_v11  ;;  %v3568_v24 = vmul.f32 %v3766_v19, %v3560_v22 }
0x154e   : > { %3577 = vst.msk [vmem:[%s913_s2] sm:$0xff] %vm954_vm1, %v3575_v23  ;;  %v3576_v25 = vadd.f32 %v3767_v58, %v3568_v24 }
0x1550   : > { %3578 = vst.msk [vmem:[%s913_s2 + $0x8] sm:$0xff] %vm954_vm1, %v3576_v25 }
0x1551 PF: > { %s38_s8 = sadd.s32 1, %s4289_s8  }
0x1552   : > { %p35_p5 = scmp.ge.s32.totalorder %s38_s8, 4  }
0x1554   :  { %37 = sbr.rel (!%p35_p5) target bundleno = 15 (0xf), region = 171 }

// kernel: transformer_decoder.3
= control target key start
LH: loop header
LB: loop body
LE: loop exit
PB: predicated region body
PF: predicated region fallthrough
CT: control target
= control target key end

     0   :  { %s5197_s6 = smov 1   ;;  %s5198_s10 = smov 2   ;;  %s6125_s0 = inlined_call_operand.smem [shape: u32[32], index: -1, kind: input, shape index: {}] }
   0x1   :  { %s5258_s5 = sld [smem:[%s6125_s0]]   ;;  %s5199_s14 = smov 3  }
   0x2   :  { %s5263_s9 = sld [smem:[%s6125_s0 + %s5197_s6]]   ;;  %s5200_s18 = smov 4  }
   0x3   :  { %s5268_s13 = sld [smem:[%s6125_s0 + %s5198_s10]]   ;;  %s5201_s22 = smov 5  }
   0x4   :  { %s5273_s17 = sld [smem:[%s6125_s0 + %s5199_s14]]   ;;  %s5202_s26 = smov 6  }
   0x5   :  { %s5278_s21 = sld [smem:[%s6125_s0 + %s5200_s18]]   ;;  %s5203_s30 = smov 7  }
   0x6   :  { %s5283_s25 = sld [smem:[%s6125_s0 + %s5201_s22]]   ;;  %s5204_s4 = smov 8  }
   0x7   :  { %6151 = sst [smem:[#allocation23_spill]] %s5258_s5  ;;  %s5205_s10 = smov 9  }
   0x8   :  { %s5288_s29 = sld [smem:[%s6125_s0 + %s5202_s26]]   ;;  %s5206_s15 = smov 10  }
   0x9   :  { %6152 = sst [smem:[#allocation24_spill]] %s5268_s13  ;;  %s5207_s20 = smov 11  }
   0xa   :  { %6153 = sst [smem:[#allocation25_spill]] %s5273_s17  ;;  %s5208_s26 = smov 12  }
   0xb   :  { %s5293_s3 = sld [smem:[%s6125_s0 + %s5203_s30]]   ;;  %s5209_s1 = smov 13  }
   0xc   :  { %s5298_s8 = sld [smem:[%s6125_s0 + %s5204_s4]]   ;;  %s5210_s7 = smov 14  }
   0xd   :  { %s5303_s14 = sld [smem:[%s6125_s0 + %s5205_s10]]   ;;  %s5212_s22 = smov 16  }
   0xe   :  { %s5308_s19 = sld [smem:[%s6125_s0 + %s5206_s15]]   ;;  %s5211_s15 = smov 15  }
   0xf   :  { %s5313_s24 = sld [smem:[%s6125_s0 + %s5207_s20]]   ;;  %s5213_s28 = smov 17  }
  0x10   :  { %s5318_s30 = sld [smem:[%s6125_s0 + %s5208_s26]]  }
  0x11   :  { %6154 = sst [smem:[#allocation26_spill]] %s5293_s3 }
  0x12   :  { %s5323_s6 = sld [smem:[%s6125_s0 + %s5209_s1]]  }
  0x13   :  { %s5328_s12 = sld [smem:[%s6125_s0 + %s5210_s7]]   ;;  %s5214_s7 = smov 18  }
  0x14   :  { %6155 = sst [smem:[#allocation27_spill]] %s5308_s19 }
  0x15   :  { %6156 = sst [smem:[#allocation28_spill]] %s5313_s24 }
  0x16   :  { %6157 = sst [smem:[#allocation29_spill]] %s5318_s30 }
  0x17   :  { %s5333_s20 = sld [smem:[%s6125_s0 + %s5211_s15]]   ;;  %s5215_s15 = smov 19  }
  0x18   :  { %6158 = sst [smem:[#allocation30_spill]] %s5323_s6 }
  0x19   :  { %6159 = sst [smem:[#allocation31_spill]] %s5328_s12 }
  0x1a   :  { %s5338_s27 = sld [smem:[%s6125_s0 + %s5212_s22]]   ;;  %s5216_s22 = smov 20  }
  0x1b   :  { %s5343_s4 = sld [smem:[%s6125_s0 + %s5213_s28]]   ;;  %s5217_s28 = smov 21  }
  0x1c   :  { %s5348_s24 = sld [smem:[%s6125_s0 + %s5214_s7]]   ;;  %s5218_s7 = smov 22  }
  0x1d   :  { %6160 = sst [smem:[#allocation32_spill]] %s5333_s20 }
  0x1e   :  { %s5353_s20 = sld [smem:[%s6125_s0 + %s5215_s15]]   ;;  %s5219_s15 = smov 23  }
  0x20   :  { %6161 = sst [smem:[#allocation33_spill]] %s5338_s27 }
  0x21   :  { %6162 = sst [smem:[#allocation34_spill]] %s5343_s4 }
  0x22   :  { %6163 = sst [smem:[#allocation35_spill]] %s5348_s24 }
  0x23   :  { %s5358_s27 = sld [smem:[%s6125_s0 + %s5216_s22]]   ;;  %s5220_s22 = smov 24  }
  0x24   :  { %6164 = sst [smem:[#allocation36_spill]] %s5353_s20 }
  0x25   :  { %s5363_s4 = sld [smem:[%s6125_s0 + %s5217_s28]]   ;;  %s5221_s28 = smov 25  }
  0x26   :  { %s5368_s24 = sld [smem:[%s6125_s0 + %s5218_s7]]   ;;  %s5222_s7 = smov 26  }
  0x27   :  { %s5373_s20 = sld [smem:[%s6125_s0 + %s5219_s15]]   ;;  %s5223_s15 = smov 27  }
  0x28   :  { %s5388_s13 = sld [smem:[%s6125_s0 + %s5222_s7]]   ;;  %s5226_s7 = smov 30  }
  0x29   :  { %6165 = sst [smem:[#allocation37_spill]] %s5358_s27 }
  0x2a   :  { %s5378_s27 = sld [smem:[%s6125_s0 + %s5220_s22]]   ;;  %s5224_s22 = smov 28  }
  0x2b   :  { %6166 = sst [smem:[#allocation38_spill]] %s5363_s4 }
  0x2c   :  { %s5383_s4 = sld [smem:[%s6125_s0 + %s5221_s28]]   ;;  %s5225_s28 = smov 29  }
  0x2d   :  { %6167 = sst [smem:[#allocation39_spill]] %s5373_s20 }
  0x2e   :  { %s5393_s12 = sld [smem:[%s6125_s0 + %s5223_s15]]   ;;  %s5227_s15 = smov 31  }
  0x2f   :  { %s5398_s6 = sld [smem:[%s6125_s0 + %s5224_s22]]  }
  0x30   :  { %s5403_s19 = sld [smem:[%s6125_s0 + %s5225_s28]]  }
  0x31   :  { %s5408_s17 = sld [smem:[%s6125_s0 + %s5226_s7]]  }
  0x32   :  { %6168 = sst [smem:[#allocation40_spill]] %s5383_s4 }
  0x33   :  { %s5413_s30 = sld [smem:[%s6125_s0 + %s5227_s15]]  }
  0x35   :  { %6169 = sst [smem:[#allocation41_spill]] %s5398_s6 }
  0x36   :  { %69 = vsyncpa [#allocation3], 0 }
  0x37   :  { %70 = vsyncpa [#allocation6], 0 }
  0x38   :  { %71 = vsyncpa [#allocation9], 0 }
  0x39   :  { %72 = vsyncpa [#allocation12], 0 }
  0x3a   :  { %73 = vsyncpa [#allocation15], 0 }
  0x3b   :  { %74 = vsyncpa [#allocation4], 0 }
  0x3c   :  { %76 = vsyncpa [#allocation4 + $0x1], 0  ;;  %s5415_s22 = smov 0   ;;  %s5417_s23 = smov 0  }
  0x3d   :  { %s5419_s26 = smov 0   ;;  %s5421_s28 = smov 0  }
  0x3e LB: > { %s6170_s6 = sld [smem:[#allocation41_spill]]  ;;  %s6171_s20 = sld [smem:[#allocation39_spill]]  ;;  %s5191_s26 = sphi %s5419_s26, %s6222_s26   ;;  %s5187_s23 = sphi %s5417_s23, %s6224_s23   ;;  %s5183_s22 = sphi %s5415_s22, %s6223_s22   ;;  %s5195_s28 = sphi %s5421_s28, %s6220_s28  }
  0x3f   : > { %s6172_s4 = sld [smem:[#allocation40_spill]]  ;;  %6173 = sst [smem:[#allocation42_spill]] %s5183_s22 }
  0x40   : > { %6174 = sst [smem:[#allocation43_spill]] %s5191_s26  ;;  %s5436_s0 = sadd.s32 4294967295, %s5195_s28  }
  0x41   : > { %s4107_s1 = sadd.s32 4294967294, %s5195_s28   ;;  %s5440_s2 = sadd.s32 1, %s5195_s28  }
  0x42   : > { %6175 = sst [smem:[#allocation44_spill]] %s5440_s2  ;;  %s739_s7 = sadd.s32 1, %s5191_s26 }
  0x43   : > { %s736_s10 = ssub.s32 %s5195_s28, %s5440_s2  ;;  %p749_p0 = scmp.ne.s32.totalorder %s5191_s26, %s5187_s23 }
  0x44   : > { %p737_p1 = scmp.eq.s32.totalorder %s736_s10, 0  ;;  %p750_p2 = scmp.eq.s32.totalorder %s5436_s0, 1 }
  0x45   : > { %p755_p3 = scmp.ne.s32.totalorder %s5187_s23, %s5183_s22  ;;  %p756_p4 = scmp.eq.s32.totalorder %s4107_s1, 1 }
  0x46   : > { %s5451_s11 = scalar_select %p737_p1, %s5191_s26, %s739_s7  }
  0x47   : > { %p5453_p5 = por %p750_p2, %p749_p0  ;;  %p5457_p6 = por %p756_p4, %p755_p3 }
  0x48   : > { %6176 = sst [smem:[#allocation45_spill]] %s5451_s11  ;;  %p4108_p7 = scmp.ge.s32.totalorder %s5195_s28, 1 }
  0x49   : > { %s6177_s15 = scalar_select %p5453_p5, 1, 0 }
  0x4a   : > { %s6178_s16 = scalar_select %p5457_p6, 1, 0 }
  0x4b   : > { %p789_p8 = scmp.lt.s32.totalorder %s5195_s28, 3  ;;  %p6137_p9 = scmp.eq.s32.totalorder %s5436_s0, 0 }
  0x4c   : > { %6179 = sst [smem:[#allocation46_spill]] %s6178_s16  ;;  %s5228_s1 = smov [#allocation5]  }
  0x4d   : > { %p5464_p10 = pnand %p4108_p7, %p789_p8  ;;  %s867_s7 = sshll.u32 %s5228_s1, 4  ;;  %s868_s7 = int_to_ptr.vmem [resolvable:$true] %s867_s7 }
  0x4e   : > { %s5229_s10 = smov [#allocation8]   ;;  %s5230_s2 = smov [#allocation11]  }
  0x4f   : > { %s6180_s18 = scalar_select %p5464_p10, 1, 0 }
  0x50   : > { %p4625_p11 = pneg %p5464_p10  ;;  %s889_s11 = sshll.u32 %s5229_s10, 4  ;;  %s5476_s11 = int_to_ptr.vmem [resolvable:$true] %s889_s11 }
  0x51   : > { %s911_s16 = sshll.u32 %s5230_s2, 4  ;;  %s4889_s22 = scalar_lea.hbm %s6171_s20, 16  ;;  %s5478_s16 = int_to_ptr.vmem [resolvable:$true] %s911_s16 }
  0x52   : > { %p5472_p12 = pnand %p6137_p9, %p4625_p11  ;;  %p4890_p13 = scmp.ne.s32.totalorder %s6171_s20, %s4889_s22 }
  0x53   : > { %p4896_p3 = scmp.lt.u32.totalorder %s4889_s22, %s6171_s20 }
  0x54   : > { %p5484_p0 = pneg %p5472_p12 }
  0x56   : > { %p4892_p1 = pnand %p5484_p0, %p4890_p13 }
  0x58   : > { %p4893_p2 = pneg %p4892_p1 }
  0x5a   : > { %p4898_p4 = pnand %p4896_p3, %p4893_p2 }
  0x5c   : > { %4901 = shalt.err (!%p4898_p4)
}
  0x5d   : > { %s4902_s10 = scalar_lea.vmem %s868_s7, 16  ;;  %s4909_s2 = scalar_lea.vmem %s868_s7, 32 }
  0x5e   : > { %p4903_p7 = scmp.ne.s32.totalorder %s868_s7, %s4902_s10  ;;  %p4910_p9 = scmp.lt.s32.totalorder %s868_s7, %s868_s7 }
  0x5f   : > { %p4911_p6 = scmp.lt.s32.totalorder %s4909_s2, %s4902_s10 }
  0x60   : > { %p4905_p8 = pnand %p4903_p7, %p5484_p0 }
  0x61   : > { %p4912_p5 = por %p4911_p6, %p4910_p9 }
  0x62   : > { %p4906_p11 = pneg %p4905_p8 }
  0x64   : > { %p4913_p10 = pnand %p4912_p5, %p4906_p11 }
  0x66   : > { %4916 = shalt.err (!%p4913_p10)
}
  0x67   : > { %4631 = dma.hbm_to_vmem [thread:$0]  (!%p5472_p12), %s6171_s20, 16, %s868_s7, [#allocation6]  }
  0x68   : > { %s4917_s22 = scalar_lea.hbm %s6172_s4, 16 }
  0x69   : > { %p4918_p13 = scmp.ne.s32.totalorder %s6172_s4, %s4917_s22  ;;  %p4924_p3 = scmp.lt.u32.totalorder %s4917_s22, %s6172_s4 }
  0x6b   : > { %p4920_p1 = pnand %p4918_p13, %p5484_p0 }
  0x6d   : > { %p4921_p2 = pneg %p4920_p1 }
  0x6f   : > { %p4926_p4 = pnand %p4924_p3, %p4921_p2 }
  0x71   : > { %4929 = shalt.err (!%p4926_p4)
}
  0x72   : > { %s4930_s10 = scalar_lea.vmem %s5476_s11, 16  ;;  %s4937_s2 = scalar_lea.vmem %s5476_s11, 32 }
  0x73   : > { %p4931_p5 = scmp.ne.s32.totalorder %s5476_s11, %s4930_s10  ;;  %p4938_p10 = scmp.lt.s32.totalorder %s5476_s11, %s5476_s11 }
  0x74   : > { %p4939_p7 = scmp.lt.s32.totalorder %s4937_s2, %s4930_s10 }
  0x75   : > { %p4933_p6 = pnand %p4931_p5, %p5484_p0 }
  0x76   : > { %p4940_p8 = por %p4939_p7, %p4938_p10 }
  0x77   : > { %p4934_p9 = pneg %p4933_p6 }
  0x79   : > { %p4941_p11 = pnand %p4940_p8, %p4934_p9 }
  0x7b   : > { %4944 = shalt.err (!%p4941_p11)
}
  0x7c   : > { %4637 = dma.hbm_to_vmem [thread:$0]  (!%p5472_p12), %s6172_s4, 16, %s5476_s11, [#allocation9]  }
  0x7d   : > { %s4945_s7 = scalar_lea.hbm %s5393_s12, 16 }
  0x7e   : > { %p4946_p13 = scmp.ne.s32.totalorder %s5393_s12, %s4945_s7  ;;  %p4952_p3 = scmp.lt.u32.totalorder %s4945_s7, %s5393_s12 }
  0x80   : > { %p4948_p1 = pnand %p4946_p13, %p5484_p0 }
  0x82   : > { %p4949_p2 = pneg %p4948_p1 }
  0x84   : > { %p4954_p4 = pnand %p4952_p3, %p4949_p2 }
  0x86   : > { %4957 = shalt.err (!%p4954_p4)
}
  0x87   : > { %s4958_s22 = scalar_lea.vmem %s5478_s16, 16  ;;  %s4965_s10 = scalar_lea.vmem %s5478_s16, 32 }
  0x88   : > { %p4959_p5 = scmp.ne.s32.totalorder %s5478_s16, %s4958_s22  ;;  %p4966_p10 = scmp.lt.s32.totalorder %s5478_s16, %s5478_s16 }
  0x89   : > { %p4967_p7 = scmp.lt.s32.totalorder %s4965_s10, %s4958_s22 }
  0x8a   : > { %p4961_p6 = pnand %p4959_p5, %p5484_p0 }
  0x8b   : > { %p4968_p8 = por %p4967_p7, %p4966_p10 }
  0x8c   : > { %p4962_p9 = pneg %p4961_p6 }
  0x8e   : > { %p4969_p11 = pnand %p4968_p8, %p4962_p9 }
  0x90   : > { %4972 = shalt.err (!%p4969_p11)
}
  0x91   : > { %4643 = dma.hbm_to_vmem [thread:$0]  (!%p5472_p12), %s5393_s12, 16, %s5478_s16, [#allocation12]  }
  0x92   : > { %s5231_s11 = smov [#allocation2]   ;;  %s5232_s7 = smov [#allocation7]  }
  0x93   : > { %s856_s2 = sshll.u32 %s5231_s11, 4  ;;  %s878_s4 = sshll.u32 %s5232_s7, 4  ;;  %s857_s2 = int_to_ptr.vmem [resolvable:$true] %s856_s2  ;;  %s879_s4 = int_to_ptr.vmem [resolvable:$true] %s878_s4 }
  0x94   : > { %s4973_s20 = scalar_lea.hbm %s5368_s24, 16 }
  0x95   : > { %p4974_p13 = scmp.ne.s32.totalorder %s5368_s24, %s4973_s20  ;;  %p4980_p3 = scmp.lt.u32.totalorder %s4973_s20, %s5368_s24 }
  0x97   : > { %p4976_p1 = pnand %p4974_p13, %p5484_p0 }
  0x99   : > { %p4977_p2 = pneg %p4976_p1 }
  0x9b   : > { %p4982_p4 = pnand %p4980_p3, %p4977_p2 }
  0x9d   : > { %4985 = shalt.err (!%p4982_p4)
}
  0x9e   : > { %s4986_s22 = scalar_lea.vmem %s857_s2, 16  ;;  %s4993_s16 = scalar_lea.vmem %s857_s2, 32 }
  0x9f   : > { %p4987_p5 = scmp.ne.s32.totalorder %s857_s2, %s4986_s22  ;;  %p4994_p10 = scmp.lt.s32.totalorder %s857_s2, %s857_s2 }
  0xa0   : > { %p4995_p7 = scmp.lt.s32.totalorder %s4993_s16, %s4986_s22 }
  0xa1   : > { %p4989_p6 = pnand %p4987_p5, %p5484_p0 }
  0xa2   : > { %p4996_p8 = por %p4995_p7, %p4994_p10 }
  0xa3   : > { %p4990_p9 = pneg %p4989_p6 }
  0xa5   : > { %p4997_p11 = pnand %p4996_p8, %p4990_p9 }
  0xa7   : > { %5000 = shalt.err (!%p4997_p11)
}
  0xa8   : > { %4628 = dma.hbm_to_vmem [thread:$0]  (!%p5472_p12), %s5368_s24, 16, %s857_s2, [#allocation3]  }
  0xa9   : > { %s5001_s20 = scalar_lea.hbm %s5378_s27, 16 }
  0xaa   : > { %p5002_p13 = scmp.ne.s32.totalorder %s5378_s27, %s5001_s20  ;;  %p5008_p3 = scmp.lt.u32.totalorder %s5001_s20, %s5378_s27 }
  0xac   : > { %p5004_p1 = pnand %p5002_p13, %p5484_p0 }
  0xae   : > { %p5005_p2 = pneg %p5004_p1 }
  0xb0   : > { %p5010_p4 = pnand %p5008_p3, %p5005_p2 }
  0xb2   : > { %5013 = shalt.err (!%p5010_p4)
}
  0xb3   : > { %s5014_s10 = scalar_lea.vmem %s879_s4, 16  ;;  %s5021_s11 = scalar_lea.vmem %s879_s4, 32 }
  0xb4   : > { %p5015_p5 = scmp.ne.s32.totalorder %s879_s4, %s5014_s10  ;;  %p5022_p10 = scmp.lt.s32.totalorder %s879_s4, %s879_s4 }
  0xb5   : > { %p5023_p7 = scmp.lt.s32.totalorder %s5021_s11, %s5014_s10 }
  0xb6   : > { %p5017_p6 = pnand %p5015_p5, %p5484_p0 }
  0xb7   : > { %p5024_p8 = por %p5023_p7, %p5022_p10 }
  0xb8   : > { %p5018_p9 = pneg %p5017_p6 }
  0xba   : > { %p5025_p11 = pnand %p5024_p8, %p5018_p9 }
  0xbc   : > { %5028 = shalt.err (!%p5025_p11)
}
  0xbd   : > { %4634 = dma.hbm_to_vmem [thread:$0]  (!%p5472_p12), %s5378_s27, 16, %s879_s4, [#allocation6]  }
  0xbe   : > { %s5233_s2 = smov [#allocation10]   ;;  %s5234_s22 = smov [#allocation13]  }
  0xbf   : > { %s900_s7 = sshll.u32 %s5233_s2, 4  ;;  %s922_s16 = sshll.u32 %s5234_s22, 4  ;;  %s901_s7 = int_to_ptr.vmem [resolvable:$true] %s900_s7  ;;  %s923_s16 = int_to_ptr.vmem [resolvable:$true] %s922_s16 }
  0xc0   : > { %s5029_s20 = scalar_lea.hbm %s5388_s13, 16 }
  0xc1   : > { %p5030_p13 = scmp.ne.s32.totalorder %s5388_s13, %s5029_s20  ;;  %p5036_p3 = scmp.lt.u32.totalorder %s5029_s20, %s5388_s13 }
  0xc3   : > { %p5032_p1 = pnand %p5030_p13, %p5484_p0 }
  0xc5   : > { %p5033_p2 = pneg %p5032_p1 }
  0xc7   : > { %p5038_p4 = pnand %p5036_p3, %p5033_p2 }
  0xc9   : > { %5041 = shalt.err (!%p5038_p4)
}
  0xca   : > { %s5042_s10 = scalar_lea.vmem %s901_s7, 16  ;;  %s5049_s4 = scalar_lea.vmem %s901_s7, 32 }
  0xcb   : > { %p5043_p5 = scmp.ne.s32.totalorder %s901_s7, %s5042_s10  ;;  %p5050_p10 = scmp.lt.s32.totalorder %s901_s7, %s901_s7 }
  0xcc   : > { %p5051_p7 = scmp.lt.s32.totalorder %s5049_s4, %s5042_s10 }
  0xcd   : > { %p5045_p6 = pnand %p5043_p5, %p5484_p0 }
  0xce   : > { %p5052_p8 = por %p5051_p7, %p5050_p10 }
  0xcf   : > { %p5046_p9 = pneg %p5045_p6 }
  0xd1   : > { %p5053_p11 = pnand %p5052_p8, %p5046_p9 }
  0xd3   : > { %5056 = shalt.err (!%p5053_p11)
}
  0xd4   : > { %4640 = dma.hbm_to_vmem [thread:$0]  (!%p5472_p12), %s5388_s13, 16, %s901_s7, [#allocation9]  }
  0xd5   : > { %s5057_s11 = scalar_lea.hbm %s6170_s6, 16 }
  0xd6   : > { %p5058_p13 = scmp.ne.s32.totalorder %s6170_s6, %s5057_s11  ;;  %p5064_p3 = scmp.lt.u32.totalorder %s5057_s11, %s6170_s6 }
  0xd8   : > { %p5060_p1 = pnand %p5058_p13, %p5484_p0 }
  0xda   : > { %p5061_p2 = pneg %p5060_p1 }
  0xdc   : > { %p5066_p4 = pnand %p5064_p3, %p5061_p2 }
  0xde   : > { %5069 = shalt.err (!%p5066_p4)
}
  0xdf   : > { %s5070_s2 = scalar_lea.vmem %s923_s16, 16  ;;  %s5077_s22 = scalar_lea.vmem %s923_s16, 32 }
  0xe0   : > { %p5071_p5 = scmp.ne.s32.totalorder %s923_s16, %s5070_s2  ;;  %p5078_p10 = scmp.lt.s32.totalorder %s923_s16, %s923_s16 }
  0xe1   : > { %p5079_p7 = scmp.lt.s32.totalorder %s5077_s22, %s5070_s2 }
  0xe2   : > { %p5073_p6 = pnand %p5071_p5, %p5484_p0 }
  0xe3   : > { %p5080_p8 = por %p5079_p7, %p5078_p10 }
  0xe4   : > { %p5074_p9 = pneg %p5073_p6 }
  0xe6   : > { %p5081_p11 = pnand %p5080_p8, %p5074_p9 }
  0xe8   : > { %5084 = shalt.err (!%p5081_p11)
}
  0xe9   : > { %4646 = dma.hbm_to_vmem [thread:$0]  (!%p5472_p12), %s6170_s6, 16, %s923_s16, [#allocation12]  }
  0xea   : > { %s5235_s7 = smov [#allocation14]   ;;  %s5085_s10 = scalar_lea.hbm %s5403_s19, 16 }
  0xeb   : > { %s933_s20 = sshll.u32 %s5235_s7, 4  ;;  %p5086_p13 = scmp.ne.s32.totalorder %s5403_s19, %s5085_s10  ;;  %s934_s20 = int_to_ptr.vmem [resolvable:$true] %s933_s20 }
  0xec   : > { %p5092_p3 = scmp.lt.u32.totalorder %s5085_s10, %s5403_s19 }
  0xed   : > { %p5088_p1 = pnand %p5086_p13, %p5484_p0 }
  0xef   : > { %p5089_p2 = pneg %p5088_p1 }
  0xf1   : > { %p5094_p4 = pnand %p5092_p3, %p5089_p2 }
  0xf3   : > { %5097 = shalt.err (!%p5094_p4)
}
  0xf4   : > { %s5098_s4 = scalar_lea.vmem %s934_s20, 16  ;;  %s5105_s11 = scalar_lea.vmem %s934_s20, 32 }
  0xf5   : > { %p5099_p5 = scmp.ne.s32.totalorder %s934_s20, %s5098_s4  ;;  %p5106_p10 = scmp.lt.s32.totalorder %s934_s20, %s934_s20 }
  0xf6   : > { %p5107_p7 = scmp.lt.s32.totalorder %s5105_s11, %s5098_s4 }
  0xf7   : > { %p5101_p6 = pnand %p5099_p5, %p5484_p0 }
  0xf8   : > { %p5108_p8 = por %p5107_p7, %p5106_p10 }
  0xf9   : > { %p5102_p9 = pneg %p5101_p6 }
  0xfb   : > { %p5109_p11 = pnand %p5108_p8, %p5102_p9 }
  0xfd   : > { %5112 = shalt.err (!%p5109_p11)
}
  0xfe   : > { %4649 = dma.hbm_to_vmem [thread:$0]  (!%p5472_p12), %s5403_s19, 16, %s934_s20, [#allocation15]  }
  0xff   : > { %p6183_p13 = scmp.ne.s32.totalorder %s6180_s18, 0 }
 0x100   : > { %p6184_p1 = scmp.eq.s32.totalorder (!%p6183_p13), %s5436_s0, 0 }
 0x101   : > { %982 = sbr.rel (%p6183_p13) target bundleno = 6023 (0x1787), region = 140 }
 0x108   : > { %5158 = dma.done.wait (%p6184_p1), [#allocation3], 16   ;;  %p6185_p2 = pmov %p6184_p1 }
 0x109   : > { %p6186_p0 = pmov %p6184_p1 }
 0x10a   : > { %5160 = vsyncadd (%p6185_p2), [#allocation3], 4294967280 }
 0x10b   : > { %5162 = dma.done.wait (%p6186_p0), [#allocation6], 32   ;;  %p6187_p3 = pmov %p6186_p0 }
 0x10c   : > { %p6188_p4 = pmov %p6186_p0 }
 0x10d   : > { %5164 = vsyncadd (%p6187_p3), [#allocation6], 4294967264 }
 0x10e   : > { %5166 = dma.done.wait (%p6188_p4), [#allocation9], 32   ;;  %p6189_p12 = pmov %p6186_p0 }
 0x10f   : > { %p6190_p5 = pmov %p6186_p0 }
 0x110   : > { %5168 = vsyncadd (%p6189_p12), [#allocation9], 4294967264 }
 0x111   : > { %5170 = dma.done.wait (%p6190_p5), [#allocation12], 32   ;;  %p6191_p6 = pmov %p6186_p0 }
 0x112   : > { %p6192_p9 = pmov %p6186_p0 }
 0x113   : > { %5172 = vsyncadd (%p6191_p6), [#allocation12], 4294967264 }
 0x114   : > { %5174 = dma.done.wait (%p6192_p9), [#allocation15], 16   ;;  %p6193_p10 = pmov %p6186_p0 }
 0x115   : > { %s6194_s5 = sld [smem:[#allocation23_spill]]  ;;  %s4128_s26 = sshll.u32 %s5436_s0, 1  ;;  %v5236_v0 = vmov 0.0   ;;  %vm5237_vm0 = vmmov 0   ;;  %v4785_v1 = vld [vmem:[%s5278_s21] sm:$0xff]   ;;  %v4786_v2 = vld [vmem:[%s5278_s21 + $0x8] sm:$0xff]   ;;  %v1503_v43 = vlaneseq }
 0x116   : > { %5176 = vsyncadd (%p6193_p10), [#allocation15], 4294967280  ;;  %4323 = vmatprep.subr.bf16.mxu1 %v5236_v0  ;;  %4327 = vmatprep.mubr.msk.bf16.mxu1 %vm5237_vm0, %v5236_v0  ;;  %p1111_p7 = scmp.lt.s32.totalorder %s4128_s26, 3  ;;  %vm1180_vm1 = vcmask 261120   ;;  %v4787_v10 = vld [vmem:[%s5288_s29] sm:$0xff]   ;;  %v4788_v11 = vld [vmem:[%s5288_s29 + $0x8] sm:$0xff]  }
 0x117   : > { %4339 = vmatprep.subr.bf16.mxu0 %v5236_v0  ;;  %4341 = vmatprep.mubr.msk.bf16.mxu0 %vm5237_vm0, %v5236_v0  ;;  %v4138_v13 = vld [vmem:[%s5283_s25] ss:$0 sm:$0xff]  ;;  %s5238_s2 = smov 80   ;;  %s5239_s22 = smov 96   ;;  %vm1305_vm2 = vcmask 64512   ;;  %vm1559_vm3 = vcmask 1043456  }
 0x118   : > { %s6226_s26 = smov (!%p1111_p7, %s4128_s26), 3  ;;  %4324 = vmatpush3.bf16.msra.mxu1 %v4785_v1  ;;  %s5240_s7 = smov 88   ;;  %v5676_v44 = vand.u32 127, %v1503_v43  ;;  %vm1764_vm5 = vcmask 130048   ;;  %vm1766_vm6 = vcmask 195584   ;;  %vm3712_vm8 = vcmask 523264  }
 0x119   : > { %s5607_s18 = sshll.u32 %s6226_s26, 3  ;;  %4325 = vmatprep.subr.bf16.mxu1 %v5236_v0  ;;  %s5241_s20 = smov 120  }
 0x11a   : > { %s1120_s16 = scalar_lea.vmem %s5263_s9, %s5607_s18  ;;  %s5242_s10 = smov 72   ;;  %vm1505_vm4 = vcmp.lt.s32.totalorder %v5676_v44, 7  ;;  %vm2792_vm7 = vcmp.lt.s32.totalorder %v5676_v44, 13 }
 0x11b   : > { %s1114_s1 = scalar_lea.vmem %s6194_s5, %s5607_s18  ;;  %v5619_v5 = vld [vmem:[%s1120_s16] sm:$0xff]  ;;  %v5622_v6 = vld [vmem:[%s1120_s16 + $0x8] sm:$0xff]  ;;  %s5243_s4 = smov 112  }
 0x11c   : > { %v5615_v3 = vld [vmem:[%s1114_s1] sm:$0xff]  ;;  %v5617_v4 = vld [vmem:[%s1114_s1 + $0x8] sm:$0xff]  ;;  %4326 = vmatpush3.bf16.msra.mxu1 %v4786_v2  ;;  %s5244_s11 = smov 104   ;;  %s6195_s3 = sld [smem:[#allocation26_spill]] }
 0x11d   : > { %v1154_v7 = vadd.f32 %v5619_v5, %v5615_v3  ;;  %v1155_v8 = vadd.f32 %v5622_v6, %v5617_v4  ;;  %4331 = vmatprep.subr.bf16.mxu1 %v5236_v0  ;;  %v1231_v12 = vpack.c.bf16 %v5617_v4, %v5615_v3  ;;  %s6145_s26 = smov 8   ;;  %s6143_s1 = smov 16  }
 0x11e   : > { %s6142_s16 = smov 24   ;;  %p6216_p13 = scmp.ne.s32.totalorder %s6177_s15, 0 }
 0x11f   : > { %v1160_v9 = vpack.c.bf16 %v1155_v8, %v1154_v7  ;;  %s5248_s5 = smov [#allocation16]  }
 0x120   : > { %s5117_s6 = sshll.u32 %s5248_s5, 4  ;;  %s5118_s6 = int_to_ptr.vmem [resolvable:$false] %s5117_s6 }
 0x121   : > { %4328 = vmatmul.mubr.msk.bf16.vlgmr.msra.gmra.mrb[0].mxu1 %vm1180_vm1, %v1160_v9 }
 0x122   : > { %4335 = vmatprep.mubr.msk.bf16.mxu1 %vm5237_vm0, %v5236_v0  ;;  %4332 = vmatpush3.bf16.msra.mxu1 %v4787_v10  ;;  %v4142_v34 = vld [vmem:[%s6195_s3] ss:$0 sm:$0xff] }
 0x123   : > { %4333 = vmatprep.subr.bf16.mxu1 %v5236_v0 }
 0x126   : > { %4334 = vmatpush3.bf16.msra.mxu1 %v4788_v11 }
 0x127   : > { %4345 = vmatprep.subr.bf16.mxu1 %v5236_v0 }
 0x129   : > { %4336 = vmatmul.mubr.msk.bf16.vlgmr.msra.gmra.mrb[4].mxu1 %vm1180_vm1, %v1231_v12 }
 0x12a   : > { %4347 = vmatprep.mubr.msk.bf16.mxu1 %vm5237_vm0, %v5236_v0 }
 0x1f4   : > { %v1218_v14 = vpop.f32.mrb[0].mxu1 }
 0x1f5   : > { %v1219_v15 = vadd.f32 %v4138_v13, %v1218_v14  ;;  %v4329_v16 = vpop.f32.mrb[1].mxu1 }
 0x1f6   : > { %v1221_v17 = vpop.f32.mrb[2].mxu1 }
 0x1f7   : > { %v1225_v18 = vmul.f32 0.35355338, %v1219_v15  ;;  %v1301_v19 = vpack.c.bf16 %v1219_v15, %v1219_v15  ;;  %v5642_v20 = vadd.f32 %v4138_v13, %v1221_v17  ;;  %v4330_v21 = vpop.f32.mrb[3].mxu1 }
 0x1f9   : > { %1405 = vrot.lane.b32.xlu1 %v1301_v19, %s5238_s2  ;;  %1303 = vrot.lane.b32.xlu0 %v1301_v19, %s5239_s22  ;;  %v1300_v22 = vpack.c.bf16 %v1225_v18, %v1225_v18 }
 0x1fc   : > { %v1288_v35 = vpop.f32.mrb[4].mxu1 }
 0x1fd   : > { %1355 = vrot.lane.b32.xlu0 %v1301_v19, %s5240_s7  ;;  %1353 = vrot.lane.b32.xlu1 %v1300_v22, %s5241_s20  ;;  %v1289_v36 = vadd.f32 %v4142_v34, %v1288_v35  ;;  %v4337_v37 = vpop.f32.mrb[5].mxu1 }
 0x1fe   : > { %v1291_v38 = vpop.f32.mrb[6].mxu1 }
 0x1ff   : > { %v5672_v39 = vadd.f32 %v4142_v34, %v1291_v38  ;;  %v4338_v40 = vpop.f32.mrb[7].mxu1  ;;  %v1555_v41 = vpack.c.bf16 %v1289_v36, %v1289_v36 }
 0x201   : > { %1455 = vrot.lane.b32.xlu0 %v1301_v19, %s5242_s10  ;;  %1403 = vrot.lane.b32.xlu1 %v1300_v22, %s5243_s4  ;;  %v1561_v42 = vsel %vm1559_vm3, %v1555_v41, 0 }
 0x205   : > { %1453 = vrot.lane.b32.xlu0 %v1300_v22, %s5244_s11 }
 0x26b   : > { %v1304_v23 = vpop.permute.xlu0 %1303  ;;  %v1406_v25 = vpop.permute.xlu1 %1405 }
 0x26c   : > { %v1310_v24 = vsel %vm1305_vm2, %v1304_v23, 0  ;;  %v1411_v28 = vsel %vm1305_vm2, %v1406_v25, 0 }
 0x26d   : > { %4340 = vmatpush3.bf16.xpose.msra.mxu0 %v1310_v24 }
 0x26e   : > { %4351 = vmatprep.subr.bf16.mxu0 %v5236_v0 }
 0x26f   : > { %v1356_v26 = vpop.permute.xlu0 %1355  ;;  %v1354_v29 = vpop.permute.xlu1 %1353 }
 0x270   : > { %v1361_v27 = vsel %vm1305_vm2, %v1356_v26, 0  ;;  %v1226_v26 = vmul.f32 0.35355338, %v5642_v20 }
 0x271   : > { %4346 = vmatpush3.bf16.xpose.msra.mxu1 %v1361_v27  ;;  %v1769_v27 = vpack.c.bf16 %v5642_v20, %v5642_v20 }
 0x272   : > { %4357 = vmatprep.subr.bf16.mxu1 %v5236_v0 }
 0x273   : > { %v1456_v30 = vpop.permute.xlu0 %1455  ;;  %v1404_v32 = vpop.permute.xlu1 %1403 }
 0x274   : > { %4342 = vmatmul.mubr.msk.bf16.vlgmr.msra.gmra.mrb[0].mxu0 %vm1305_vm2, %v1300_v22  ;;  %v1461_v31 = vsel %vm1305_vm2, %v1456_v30, 0 }
 0x275   : > { %4352 = vmatpush3.bf16.xpose.msra.mxu0 %v1411_v28  ;;  %4353 = vmatprep.mubr.msk.bf16.mxu0 %vm5237_vm0, %v5236_v0 }
 0x276   : > { %4363 = vmatprep.subr.bf16.mxu0 %v5236_v0 }
 0x277   : > { %v1454_v33 = vpop.permute.xlu0 %1453 }
 0x278   : > { %4348 = vmatmul.mubr.msk.bf16.vlgmr.msra.gmra.mrb[8].mxu1 %vm1305_vm2, %v1354_v29  ;;  %v5701_v29 = vpack.c.bf16 %v1226_v26, %v1226_v26 }
 0x279   : > { %4358 = vmatpush3.bf16.xpose.msra.mxu1 %v1461_v31  ;;  %4359 = vmatprep.mubr.msk.bf16.mxu1 %vm5237_vm0, %v5236_v0 }
 0x27a   : > { %4369 = vmatprep.subr.bf16.mxu1 %v5236_v0 }
 0x27c   : > { %4354 = vmatmul.mubr.msk.bf16.vlgmr.msra.gmra.mrb[4].mxu0 %vm1305_vm2, %v1404_v32 }
 0x27d   : > { %4365 = vmatprep.mubr.msk.bf16.mxu0 %vm5237_vm0, %v5236_v0  ;;  %4364 = vmatpush3.bf16.msra.mxu0 %v1561_v42 }
 0x27e   : > { %4375 = vmatprep.subr.bf16.mxu0 %v5236_v0 }
 0x280   : > { %4360 = vmatmul.mubr.msk.bf16.vlgmr.msra.gmra.mrb[12].mxu1 %vm1305_vm2, %v1454_v33 }
 0x281   : > { %4371 = vmatprep.mubr.msk.bf16.mxu1 %vm5237_vm0, %v5236_v0 }
 0x347   : > { %v1346_v45 = vpop.f32.mrb[0].mxu0 }
 0x348   : > { %v1506_v46 = vsel %vm1505_vm4, %v1346_v45, -1e+30  ;;  %v4343_v47 = vpop.f32.mrb[1].mxu0 }
 0x349   : > { %v1349_v48 = vpop.f32.mrb[2].mxu0  ;;  %v1510_v49 = vsel %vm1305_vm2, %v1506_v46, -inf }
 0x34a   : > { %1511 = vmax.xlane.f32.xlu1 %v1510_v49  ;;  %v4344_v50 = vpop.f32.mrb[3].mxu0 }
 0x34b   : > { %v1397_v51 = vpop.f32.mrb[8].mxu1 }
 0x34c   : > { %v1507_v52 = vsel %vm1505_vm4, %v1397_v51, -1e+30  ;;  %v4349_v53 = vpop.f32.mrb[9].mxu1 }
 0x34d   : > { %v1400_v54 = vpop.f32.mrb[10].mxu1  ;;  %v1513_v55 = vsel %vm1305_vm2, %v1507_v52, -inf }
 0x34e   : > { %1514 = vmax.xlane.f32.xlu0 %v1513_v55  ;;  %v4350_v56 = vpop.f32.mrb[11].mxu1 }
 0x34f   : > { %v1447_v57 = vpop.f32.mrb[4].mxu0 }
 0x350   : > { %v1508_v58 = vsel %vm1505_vm4, %v1447_v57, -1e+30  ;;  %v4355_v59 = vpop.f32.mrb[5].mxu0 }
 0x351   : > { %v1450_v60 = vpop.f32.mrb[6].mxu0  ;;  %v1516_v61 = vsel %vm1305_vm2, %v1508_v58, -inf }
 0x352   : > { %v4356_v62 = vpop.f32.mrb[7].mxu0  ;;  %1517 = vmax.xlane.f32.xlu0 %v1516_v61 }
 0x353   : > { %v1497_v63 = vpop.f32.mrb[12].mxu1 }
 0x354   : > { %v1509_v1 = vsel %vm1505_vm4, %v1497_v63, -1e+30  ;;  %v4361_v2 = vpop.f32.mrb[13].mxu1 }
 0x355   : > { %v1500_v7 = vpop.f32.mrb[14].mxu1  ;;  %v1519_v8 = vsel %vm1305_vm2, %v1509_v1, -inf }
 0x356   : > { %1520 = vmax.xlane.f32.xlu1 %v1519_v8  ;;  %v4362_v9 = vpop.f32.mrb[15].mxu1  ;;  %v5751_v8 = vpack.c.bf16 %v5672_v39, %v5672_v39 }
 0x367   : > { %1654 = vrot.lane.b32.xlu1 %v1555_v41, %s5243_s4 }
 0x36b   : > { %1703 = vrot.lane.b32.xlu1 %v1555_v41, %s5244_s11 }
 0x3d7   : > { %v1512_v10 = vpop.xlane.xlu1 %1511 }
 0x3d8   : > { %v1522_v11 = vsub.f32 %v1506_v46, %v1512_v10  ;;  %v2024_v10 = vsel %vm1559_vm3, %v5751_v8, 0 }
 0x3da   : > { %v1526_v12 = vmul.f32 1.442695, %v1522_v11 }
 0x3db   : > { %v1515_v13 = vpop.xlane.xlu0 %1514 }
 0x3dc   : > { %4809 = vpow2.f32 %v1526_v12  ;;  %v1523_v14 = vsub.f32 %v1507_v52, %v1515_v13 }
 0x3de   : > { %v1528_v15 = vmul.f32 1.442695, %v1523_v14 }
 0x3df   : > { %v1518_v28 = vpop.xlane.xlu0 %1517 }
 0x3e0   : > { %4811 = vpow2.f32 %v1528_v15  ;;  %v1524_v30 = vsub.f32 %v1508_v58, %v1518_v28 }
 0x3e2   : > { %v1530_v31 = vmul.f32 1.442695, %v1524_v30 }
 0x3e3   : > { %v1521_v16 = vpop.xlane.xlu1 %1520 }
 0x3e4   : > { %v1525_v17 = vsub.f32 %v1509_v1, %v1521_v16 }
 0x3e6   : > { %v4810_v18 = vpop.eup %4809  ;;  %v1532_v19 = vmul.f32 1.442695, %v1525_v17 }
 0x3e7   : > { %v1534_v21 = vsel %vm1305_vm2, %v4810_v18, 0.0  ;;  %v1655_v20 = vpop.permute.xlu1 %1654 }
 0x3e8   : > { %4813 = vpow2.f32 %v1532_v19  ;;  %1535 = vadd.xlane.f32.xlu0 %v1534_v21  ;;  %v1660_v46 = vsel %vm1559_vm3, %v1655_v20, 0 }
 0x3e9   : > { %4815 = vpow2.f32 %v1530_v31 }
 0x3ea   : > { %v4812_v22 = vpop.eup %4811 }
 0x3eb   : > { %v1537_v23 = vsel %vm1305_vm2, %v4812_v22, 0.0  ;;  %v1704_v34 = vpop.permute.xlu1 %1703 }
 0x3ec   : > { %1538 = vadd.xlane.f32.xlu1 %v1537_v23  ;;  %v1709_v49 = vsel %vm1559_vm3, %v1704_v34, 0 }
 0x3f2   : > { %v4814_v24 = vpop.eup %4813 }
 0x3f3   : > { %v1543_v25 = vsel %vm1305_vm2, %v4814_v24, 0.0  ;;  %v4816_v32 = vpop.eup %4815 }
 0x3f4   : > { %1544 = vadd.xlane.f32.xlu1 %v1543_v25  ;;  %v1540_v33 = vsel %vm1305_vm2, %v4816_v32, 0.0 }
 0x3fe   : > { %1605 = vrot.lane.b32.xlu0 %v1555_v41, %s5241_s20 }
 0x405   : > { %1822 = vrot.lane.b32.xlu1 %v1769_v27, %s5240_s7  ;;  %s4132_s7 = sshll.u32 %s5436_s0, 2 }
 0x406   : > { %p1123_p8 = scmp.lt.s32.totalorder %s4132_s7, 7 }
 0x408   : > { %s6228_s7 = smov (!%p1123_p8, %s4132_s7), 7 }
 0x409   : > { %1820 = vrot.lane.b32.xlu1 %v5701_v29, %s5241_s20 }
 0x40d   : > { %1870 = vrot.lane.b32.xlu1 %v5701_v29, %s5243_s4 }
 0x41d   : > { %1541 = vadd.xlane.f32.xlu0 %v1540_v33 }
 0x433   : > { %1771 = vrot.lane.b32.xlu0 %v1769_v27, %s5239_s22  ;;  %s6197_s22 = sld [smem:[#allocation25_spill]] }
 0x437   : > { %1872 = vrot.lane.b32.xlu0 %v1769_v27, %s5238_s2  ;;  %s6196_s2 = sld [smem:[#allocation29_spill]] }
 0x43b   : > { %1922 = vrot.lane.b32.xlu0 %v1769_v27, %s5242_s10  ;;  %s6198_s10 = sld [smem:[#allocation27_spill]] }
 0x43f   : > { %1920 = vrot.lane.b32.xlu0 %v5701_v29, %s5244_s11 }
 0x475   : > { %v1536_v35 = vpop.xlane.xlu0 %1535 }
 0x476   : > { %4817 = vrcp.f32 %v1536_v35 }
 0x479   : > { %v1606_v36 = vpop.permute.xlu0 %1605  ;;  %v1539_v37 = vpop.xlane.xlu1 %1538 }
 0x47a   : > { %v1611_v38 = vsel %vm1559_vm3, %v1606_v36, 0  ;;  %4819 = vrcp.f32 %v1539_v37 }
 0x47b   : > { %4370 = vmatpush3.bf16.msra.mxu1 %v1611_v38 }
 0x47c   : > { %4381 = vmatprep.subr.bf16.mxu1 %v5236_v0 }
 0x480   : > { %v4818_v40 = vpop.eup %4817 }
 0x481   : > { %v1550_v41 = vmul.f32 %v4818_v40, %v4810_v18  ;;  %v1545_v42 = vpop.xlane.xlu1 %1544 }
 0x482   : > { %4821 = vrcp.f32 %v1545_v42 }
 0x483   : > { %v1554_v43 = vpack.c.bf16 %v1550_v41, %v1550_v41 }
 0x484   : > { %v4820_v45 = vpop.eup %4819 }
 0x485   : > { %v1551_v47 = vmul.f32 %v4820_v45, %v4812_v22  ;;  %4366 = vmatmul.mubr.msk.bf16.vlgmr.msra.gmra.mrb[8].mxu0 %vm1305_vm2, %v1554_v43  ;;  %v1823_v52 = vpop.permute.xlu1 %1822 }
 0x486   : > { %4376 = vmatpush3.bf16.msra.mxu0 %v1660_v46  ;;  %4377 = vmatprep.mubr.msk.bf16.mxu0 %vm5237_vm0, %v5236_v0  ;;  %v1828_v54 = vsel %vm1305_vm2, %v1823_v52, 0 }
 0x487   : > { %v1603_v48 = vpack.c.bf16 %v1551_v47, %v1551_v47  ;;  %4387 = vmatprep.subr.bf16.mxu0 %v5236_v0 }
 0x489   : > { %4372 = vmatmul.mubr.msk.bf16.vlgmr.msra.gmra.mrb[16].mxu1 %vm1305_vm2, %v1603_v48  ;;  %v1821_v55 = vpop.permute.xlu1 %1820 }
 0x48a   : > { %4382 = vmatpush3.bf16.msra.mxu1 %v1709_v49  ;;  %4383 = vmatprep.mubr.msk.bf16.mxu1 %vm5237_vm0, %v5236_v0 }
 0x48b   : > { %4393 = vmatprep.subr.bf16.mxu1 %v5236_v0 }
 0x48c   : > { %v4822_v50 = vpop.eup %4821 }
 0x48d   : > { %v1553_v51 = vmul.f32 %v4822_v50, %v4814_v24  ;;  %v1871_v9 = vpop.permute.xlu1 %1870 }
 0x48f   : > { %v1702_v53 = vpack.c.bf16 %v1553_v51, %v1553_v51 }
 0x491   : > { %4384 = vmatmul.mubr.msk.bf16.vlgmr.msra.gmra.mrb[20].mxu1 %vm1305_vm2, %v1702_v53 }
 0x492   : > { %4395 = vmatprep.mubr.msk.bf16.mxu1 %vm5237_vm0, %v5236_v0 }
 0x493   : > { %4394 = vmatpush3.bf16.xpose.msra.mxu1 %v1828_v54 }
 0x494   : > { %4405 = vmatprep.subr.bf16.mxu1 %v5236_v0 }
 0x49a   : > { %4396 = vmatmul.mubr.msk.bf16.vlgmr.msra.gmra.mrb[24].mxu1 %vm1305_vm2, %v1821_v55 }
 0x49b   : > { %4407 = vmatprep.mubr.msk.bf16.mxu1 %vm5237_vm0, %v5236_v0 }
 0x4aa   : > { %v1542_v56 = vpop.xlane.xlu0 %1541 }
 0x4ab   : > { %4823 = vrcp.f32 %v1542_v56 }
 0x4ae   : > { %v1772_v57 = vpop.permute.xlu0 %1771 }
 0x4af   : > { %v1777_v1 = vsel %vm1305_vm2, %v1772_v57, 0 }
 0x4b2   : > { %v1873_v58 = vpop.permute.xlu0 %1872 }
 0x4b3   : > { %v1878_v7 = vsel %vm1305_vm2, %v1873_v58, 0 }
 0x4b5   : > { %v4824_v59 = vpop.eup %4823 }
 0x4b6   : > { %v1552_v60 = vmul.f32 %v4824_v59, %v4816_v32  ;;  %v1923_v61 = vpop.permute.xlu0 %1922 }
 0x4b7   : > { %v1928_v62 = vsel %vm1305_vm2, %v1923_v61, 0 }
 0x4b8   : > { %4406 = vmatpush3.bf16.xpose.msra.mxu1 %v1928_v62  ;;  %v1653_v63 = vpack.c.bf16 %v1552_v60, %v1552_v60 }
 0x4b9   : > { %4417 = vmatprep.subr.bf16.mxu1 %v5236_v0 }
 0x4ba   : > { %4378 = vmatmul.mubr.msk.bf16.vlgmr.msra.gmra.mrb[12].mxu0 %vm1305_vm2, %v1653_v63  ;;  %v1921_v2 = vpop.permute.xlu0 %1920 }
 0x4bb   : > { %4388 = vmatpush3.bf16.xpose.msra.mxu0 %v1777_v1  ;;  %4389 = vmatprep.mubr.msk.bf16.mxu0 %vm5237_vm0, %v5236_v0 }
 0x4bc   : > { %4399 = vmatprep.subr.bf16.mxu0 %v5236_v0 }
 0x4bf   : > { %4408 = vmatmul.mubr.msk.bf16.vlgmr.msra.gmra.mrb[28].mxu1 %vm1305_vm2, %v1921_v2 }
 0x4c0   : > { %4419 = vmatprep.mubr.msk.bf16.mxu1 %vm5237_vm0, %v5236_v0 }
 0x4c2   : > { %4390 = vmatmul.mubr.msk.bf16.vlgmr.msra.gmra.mrb[16].mxu0 %vm1305_vm2, %v5701_v29 }
 0x4c3   : > { %4400 = vmatpush3.bf16.xpose.msra.mxu0 %v1878_v7  ;;  %4401 = vmatprep.mubr.msk.bf16.mxu0 %vm5237_vm0, %v5236_v0 }
 0x4c4   : > { %4411 = vmatprep.subr.bf16.mxu0 %v5236_v0 }
 0x4ca   : > { %4402 = vmatmul.mubr.msk.bf16.vlgmr.msra.gmra.mrb[20].mxu0 %vm1305_vm2, %v1871_v9 }
 0x4cb   : > { %4412 = vmatpush3.bf16.msra.mxu0 %v2024_v10  ;;  %4413 = vmatprep.mubr.msk.bf16.mxu0 %vm5237_vm0, %v5236_v0 }
 0x4cc   : > { %4423 = vmatprep.subr.bf16.mxu0 %v5236_v0 }
 0x558   : > { %v5759_v11 = vpop.f32.mrb[8].mxu0 }
 0x559   : > { %v4367_v12 = vpop.f32.mrb[9].mxu0 }
 0x55a   : > { %v1600_v13 = vpop.f32.mrb[10].mxu0 }
 0x55b   : > { %v4368_v14 = vpop.f32.mrb[11].mxu0 }
 0x55c   : > { %v5761_v15 = vpop.f32.mrb[16].mxu1 }
 0x55d   : > { %v4373_v39 = vpop.f32.mrb[17].mxu1 }
 0x55e   : > { %v1650_v16 = vpop.f32.mrb[18].mxu1 }
 0x55f   : > { %v4374_v17 = vpop.f32.mrb[19].mxu1 }
 0x564   : > { %v5763_v18 = vpop.f32.mrb[20].mxu1 }
 0x565   : > { %v4385_v19 = vpop.f32.mrb[21].mxu1 }
 0x566   : > { %v1748_v21 = vpop.f32.mrb[22].mxu1 }
 0x567   : > { %v4386_v22 = vpop.f32.mrb[23].mxu1 }
 0x56d   : > { %v1864_v23 = vpop.f32.mrb[24].mxu1 }
 0x56e   : > { %v1971_v24 = vsel %vm1505_vm4, %v1864_v23, -1e+30  ;;  %v4397_v25 = vpop.f32.mrb[25].mxu1 }
 0x56f   : > { %v1867_v26 = vpop.f32.mrb[26].mxu1  ;;  %v1977_v27 = vsel %vm1305_vm2, %v1971_v24, -inf }
 0x570   : > { %1978 = vmax.xlane.f32.xlu0 %v1977_v27  ;;  %v4398_v28 = vpop.f32.mrb[27].mxu1 }
 0x58d   : > { %v5768_v29 = vpop.f32.mrb[12].mxu0 }
 0x58e   : > { %v4379_v30 = vpop.f32.mrb[13].mxu0 }
 0x58f   : > { %v1699_v31 = vpop.f32.mrb[14].mxu0 }
 0x590   : > { %v4380_v32 = vpop.f32.mrb[15].mxu0 }
 0x592   : > { %v1964_v33 = vpop.f32.mrb[28].mxu1 }
 0x593   : > { %v4409_v20 = vpop.f32.mrb[29].mxu1  ;;  %v1973_v42 = vsel %vm1505_vm4, %v1964_v33, -1e+30 }
 0x594   : > { %v1967_v34 = vpop.f32.mrb[30].mxu1  ;;  %v1983_v45 = vsel %vm1305_vm2, %v1973_v42, -inf }
 0x595   : > { %v1813_v35 = vpop.f32.mrb[16].mxu0  ;;  %v4410_v36 = vpop.f32.mrb[31].mxu1 }
 0x596   : > { %v1970_v37 = vsel %vm1505_vm4, %v1813_v35, -1e+30  ;;  %v4391_v38 = vpop.f32.mrb[17].mxu0 }
 0x597   : > { %v1816_v40 = vpop.f32.mrb[18].mxu0  ;;  %v1974_v41 = vsel %vm1305_vm2, %v1970_v37, -inf  ;;  %v4789_v38 = vld [vmem:[%s5298_s8] sm:$0xff]  }
 0x598   : > { %1975 = vmax.xlane.f32.xlu1 %v1974_v41  ;;  %v4392_v43 = vpop.f32.mrb[19].mxu0 }
 0x59c   : > { %1984 = vmax.xlane.f32.xlu1 %v1983_v45 }
 0x59d   : > { %v1914_v46 = vpop.f32.mrb[20].mxu0 }
 0x59e   : > { %v1972_v47 = vsel %vm1505_vm4, %v1914_v46, -1e+30  ;;  %v4403_v48 = vpop.f32.mrb[21].mxu0 }
 0x59f   : > { %v1917_v49 = vpop.f32.mrb[22].mxu0  ;;  %v1980_v50 = vsel %vm1305_vm2, %v1972_v47, -inf }
 0x5a0   : > { %v4404_v51 = vpop.f32.mrb[23].mxu0  ;;  %1981 = vmax.xlane.f32.xlu0 %v1980_v50  ;;  %v4790_v49 = vld [vmem:[%s5298_s8 + $0x8] sm:$0xff]  }
 0x5fd   : > { %v1979_v52 = vpop.xlane.xlu0 %1978 }
 0x5fe   : > { %v1987_v53 = vsub.f32 %v1971_v24, %v1979_v52 }
 0x600   : > { %v1992_v54 = vmul.f32 1.442695, %v1987_v53 }
 0x602   : > { %4825 = vpow2.f32 %v1992_v54 }
 0x60c   : > { %v4826_v55 = vpop.eup %4825 }
 0x60d   : > { %v2001_v56 = vsel %vm1305_vm2, %v4826_v55, 0.0 }
 0x60e   : > { %2002 = vadd.xlane.f32.xlu1 %v2001_v56 }
 0x61f   : > { %2117 = vrot.lane.b32.xlu1 %v5751_v8, %s5243_s4 }
 0x625   : > { %v1976_v57 = vpop.xlane.xlu1 %1975 }
 0x626   : > { %v1986_v58 = vsub.f32 %v1970_v37, %v1976_v57 }
 0x628   : > { %v1990_v59 = vmul.f32 1.442695, %v1986_v58 }
 0x629   : > { %v1985_v60 = vpop.xlane.xlu1 %1984 }
 0x62a   : > { %4827 = vpow2.f32 %v1990_v59  ;;  %v1989_v61 = vsub.f32 %v1973_v42, %v1985_v60 }
 0x62c   : > { %v1996_v2 = vmul.f32 1.442695, %v1989_v61 }
 0x62d   : > { %v1982_v62 = vpop.xlane.xlu0 %1981 }
 0x62e   : > { %v1988_v63 = vsub.f32 %v1972_v47, %v1982_v62 }
 0x630   : > { %v1994_v1 = vmul.f32 1.442695, %v1988_v63 }
 0x632   : > { %4829 = vpow2.f32 %v1994_v1 }
 0x633   : > { %4831 = vpow2.f32 %v1996_v2 }
 0x634   : > { %v4828_v7 = vpop.eup %4827 }
 0x635   : > { %v1998_v9 = vsel %vm1305_vm2, %v4828_v7, 0.0 }
 0x636   : > { %1999 = vadd.xlane.f32.xlu0 %v1998_v9 }
 0x63c   : > { %v4830_v10 = vpop.eup %4829 }
 0x63d   : > { %v2004_v12 = vsel %vm1305_vm2, %v4830_v10, 0.0  ;;  %v4832_v13 = vpop.eup %4831 }
 0x63e   : > { %2005 = vadd.xlane.f32.xlu0 %v2004_v12  ;;  %v2007_v14 = vsel %vm1305_vm2, %v4832_v13, 0.0 }
 0x643   : > { %2008 = vadd.xlane.f32.xlu1 %v2007_v14 }
 0x654   : > { %2166 = vrot.lane.b32.xlu1 %v5751_v8, %s5244_s11  ;;  %2068 = vrot.lane.b32.xlu0 %v5751_v8, %s5241_s20 }
 0x69b   : > { %v2003_v39 = vpop.xlane.xlu1 %2002 }
 0x69c   : > { %4833 = vrcp.f32 %v2003_v39 }
 0x69f   : > { %v2118_v21 = vpop.permute.xlu1 %2117 }
 0x6a0   : > { %v2123_v8 = vsel %vm1559_vm3, %v2118_v21, 0 }
 0x6a6   : > { %v4834_v17 = vpop.eup %4833 }
 0x6a7   : > { %v2015_v23 = vmul.f32 %v4834_v17, %v4826_v55  ;;  %v4162_v17 = vld [vmem:[%s5303_s14] ss:$0 sm:$0xff] }
 0x6a9   : > { %v2066_v30 = vpack.c.bf16 %v2015_v23, %v2015_v23 }
 0x6c3   : > { %v2000_v16 = vpop.xlane.xlu0 %1999 }
 0x6c4   : > { %4835 = vrcp.f32 %v2000_v16 }
 0x6cb   : > { %v2006_v19 = vpop.xlane.xlu0 %2005 }
 0x6cc   : > { %4837 = vrcp.f32 %v2006_v19 }
 0x6ce   : > { %v4836_v22 = vpop.eup %4835 }
 0x6cf   : > { %v2014_v24 = vmul.f32 %v4836_v22, %v4828_v7  ;;  %v2069_v25 = vpop.permute.xlu0 %2068 }
 0x6d0   : > { %v2074_v26 = vsel %vm1559_vm3, %v2069_v25, 0  ;;  %v2009_v27 = vpop.xlane.xlu1 %2008 }
 0x6d1   : > { %4839 = vrcp.f32 %v2009_v27  ;;  %4418 = vmatpush3.bf16.msra.mxu1 %v2074_v26  ;;  %v2018_v28 = vpack.c.bf16 %v2014_v24, %v2014_v24 }
 0x6d2   : > { %4429 = vmatprep.subr.bf16.mxu1 %v5236_v0 }
 0x6d3   : > { %4414 = vmatmul.mubr.msk.bf16.vlgmr.msra.gmra.mrb[24].mxu0 %vm1305_vm2, %v2018_v28 }
 0x6d4   : > { %4424 = vmatpush3.bf16.msra.mxu0 %v2123_v8  ;;  %v2167_v31 = vpop.permute.xlu1 %2166  ;;  %4420 = vmatmul.mubr.msk.bf16.vlgmr.msra.gmra.mrb[32].mxu1 %vm1305_vm2, %v2066_v30 }
 0x6d5   : > { %v2172_v32 = vsel %vm1559_vm3, %v2167_v31, 0  ;;  %4425 = vmatprep.mubr.msk.bf16.mxu0 %vm5237_vm0, %v5236_v0  ;;  %4431 = vmatprep.mubr.msk.bf16.mxu1 %vm5237_vm0, %v5236_v0 }
 0x6d6   : > { %v4838_v33 = vpop.eup %4837  ;;  %4430 = vmatpush3.bf16.msra.mxu1 %v2172_v32  ;;  %4435 = vmatprep.subr.bf16.mxu0 %v5236_v0 }
 0x6d7   : > { %v2016_v20 = vmul.f32 %v4838_v33, %v4830_v10  ;;  %4443 = vmatprep.subr.bf16.mxu1 %v5236_v0 }
 0x6d9   : > { %v2116_v34 = vpack.c.bf16 %v2016_v20, %v2016_v20 }
 0x6db   : > { %v4840_v35 = vpop.eup %4839  ;;  %4426 = vmatmul.mubr.msk.bf16.vlgmr.msra.gmra.mrb[28].mxu0 %vm1305_vm2, %v2116_v34 }
 0x6dc   : > { %v2017_v36 = vmul.f32 %v4840_v35, %v4832_v13  ;;  %4439 = vmatprep.mubr.msk.bf16.mxu0 %vm5237_vm0, %v5236_v0  ;;  %4436 = vmatpush3.bf16.msra.mxu0 %v4789_v38 }
 0x6dd   : > { %4437 = vmatprep.subr.bf16.mxu0 %v5236_v0 }
 0x6de   : > { %v2165_v37 = vpack.c.bf16 %v2017_v36, %v2017_v36  ;;  %v4791_v36 = vld [vmem:[%s6196_s2] sm:$0xff]  }
 0x6e0   : > { %4432 = vmatmul.mubr.msk.bf16.vlgmr.msra.gmra.mrb[36].mxu1 %vm1305_vm2, %v2165_v37  ;;  %4438 = vmatpush3.bf16.msra.mxu0 %v4790_v49  ;;  %v4792_v37 = vld [vmem:[%s6196_s2 + $0x8] sm:$0xff]   ;;  %s6204_s2 = sld [smem:[#allocation28_spill]] }
 0x6e1   : > { %4447 = vmatprep.mubr.msk.bf16.mxu1 %vm5237_vm0, %v5236_v0  ;;  %4451 = vmatprep.subr.bf16.mxu0 %v4791_v36 }
 0x7a6   : > { %v2060_v40 = vpop.f32.mrb[24].mxu0 }
 0x7a7   : > { %v4415_v41 = vpop.f32.mrb[25].mxu0  ;;  %v2110_v42 = vpop.f32.mrb[32].mxu1 }
 0x7a8   : > { %v4755_v43 = vpack.i.bf16 %v2110_v42, %v5761_v15  ;;  %v2063_v45 = vpop.f32.mrb[26].mxu0  ;;  %v4421_v46 = vpop.f32.mrb[33].mxu1  ;;  %v4795_v41 = vld [vmem:[%s6198_s10] sm:$0xff]   ;;  %v4796_v42 = vld [vmem:[%s6198_s10 + $0x8] sm:$0xff]  }
 0x7a9   : > { %v4416_v47 = vpop.f32.mrb[27].mxu0  ;;  %v2113_v48 = vpop.f32.mrb[34].mxu1  ;;  %4444 = vmatpush3.bf16.msra.mxu1 %v4795_v41 }
 0x7aa   : > { %4756 = vrot.lane.b32.xlu0 %v4755_v43, %s6145_s26  ;;  %v4422_v50 = vpop.f32.mrb[35].mxu1  ;;  %4445 = vmatprep.subr.bf16.mxu1 %v5236_v0  ;;  %s6202_s26 = sld [smem:[#allocation24_spill]] }
 0x7ad   : > { %4446 = vmatpush3.bf16.msra.mxu1 %v4796_v42 }
 0x7ae   : > { %v2159_v51 = vpop.f32.mrb[28].mxu0 }
 0x7af   : > { %v4760_v52 = vpack.i.bf16 %v2159_v51, %v5768_v29  ;;  %v4427_v53 = vpop.f32.mrb[29].mxu0  ;;  %v4166_v51 = vld [vmem:[#allocation2] ss:$0 sm:$0xff] }
 0x7b0   : > { %v2162_v54 = vpop.f32.mrb[30].mxu0 }
 0x7b1   : > { %4761 = vrot.lane.b32.xlu1 %v4760_v52, %s6143_s1  ;;  %v4428_v15 = vpop.f32.mrb[31].mxu0  ;;  %v4167_v54 = vld [vmem:[#allocation5] ss:$0 sm:$0xff] }
 0x7b3   : > { %v2208_v55 = vpop.f32.mrb[36].mxu1 }
 0x7b4   : > { %v4765_v56 = vpack.i.bf16 %v2208_v55, %v5763_v18  ;;  %v4433_v57 = vpop.f32.mrb[37].mxu1 }
 0x7b5   : > { %v2211_v58 = vpop.f32.mrb[38].mxu1 }
 0x7b6   : > { %4766 = vrot.lane.b32.xlu0 %v4765_v56, %s6142_s16  ;;  %v4434_v59 = vpop.f32.mrb[39].mxu1  ;;  %s6144_s16 = sshll.u32 %s6228_s7, 2 }
 0x7b7   : > { %s1132_s1 = scalar_lea.vmem %s6197_s22, %s6144_s16  ;;  %s6200_s22 = sld [smem:[#allocation31_spill]] }
 0x7b8   : > { %v4793_v38 = vld [vmem:[%s1132_s1] sm:$0xff]  }
 0x7bd   : > { %s6201_s16 = smov %s6200_s22 }
 0x81c   : > { %v4757_v60 = vpop.permute.xlu0 %4756 }
 0x81d   : > { %v4759_v62 = vunpack.i.h.bf16 %v4757_v60  ;;  %v4758_v63 = vunpack.i.l.bf16 %v4757_v60 }
 0x81f   : > { %v2226_v7 = vsel %vm1305_vm2, %v2060_v40, %v4759_v62  ;;  %v1763_v18 = vsel %vm1305_vm2, %v5759_v11, %v4758_v63  ;;  %v4794_v40 = vld [vmem:[%s1132_s1 + $0x8] sm:$0xff]   ;;  %s6199_s1 = sld [smem:[#allocation30_spill]] }
 0x823   : > { %v4762_v61 = vpop.permute.xlu1 %4761 }
 0x824   : > { %v4764_v29 = vunpack.i.h.bf16 %v4762_v61  ;;  %v4763_v1 = vunpack.i.l.bf16 %v4762_v61 }
 0x825   : > { %v4172_v62 = vld [vmem:[%s6199_s1] ss:$0 sm:$0xff]  ;;  %s6203_s1 = sshll.u32 %s6228_s7, 2  ;;  %s6211_s7 = sld [smem:[#allocation35_spill]] }
 0x826   : > { %v1765_v12 = vsel %vm1764_vm5, %v1763_v18, %v4763_v1  ;;  %v2227_v13 = vsel %vm1764_vm5, %v2226_v7, %v4764_v29  ;;  %s1126_s3 = scalar_lea.vmem %s6202_s26, %s6203_s1  ;;  %s6205_s26 = sld [smem:[#allocation32_spill]] }
 0x828   : > { %v4767_v2 = vpop.permute.xlu0 %4766 }
 0x829   : > { %v4769_v9 = vunpack.i.h.bf16 %v4767_v2  ;;  %v4768_v10 = vunpack.i.l.bf16 %v4767_v2 }
 0x82b   : > { %v2228_v14 = vsel %vm1766_vm6, %v2227_v13, %v4769_v9  ;;  %v1767_v39 = vsel %vm1766_vm6, %v1765_v12, %v4768_v10  ;;  %v4797_v13 = vld [vmem:[%s6200_s22] sm:$0xff]   ;;  %s6212_s22 = sld [smem:[#allocation37_spill]] }
 0x82c   : > { %v2229_v16 = vpack.c.bf16 %v2228_v14, %v1767_v39  ;;  %v4798_v14 = vld [vmem:[%s6201_s16 + $0x8] sm:$0xff]   ;;  %v4799_v39 = vld [vmem:[%s1126_s3] sm:$0xff]   ;;  %4459 = vmatprep.subr.bf16.mxu1 %v4797_v13 }
 0x82e   : > { %4440 = vmatmul.mubr.msk.bf16.vlgmr.msra.gmra.mrb[32].mxu0 %vm1180_vm1, %v2229_v16  ;;  %v4800_v16 = vld [vmem:[%s1126_s3 + $0x8] sm:$0xff]   ;;  %s6206_s3 = sld [smem:[#allocation33_spill]] }
 0x82f   : > { %4452 = vmatpush3.bf16.msra.mxu0 %v4791_v36  ;;  %4455 = vmatprep.mubr.msk.bf16.mxu0 %vm1180_vm1, %v4793_v38 }
 0x830   : > { %4453 = vmatprep.subr.bf16.mxu0 %v4792_v37 }
 0x831   : > { %s6213_s1 = smov %s6212_s22 }
 0x833   : > { %4454 = vmatpush3.bf16.msra.mxu0 %v4792_v37 }
 0x834   : > { %4467 = vmatprep.subr.bf16.mxu0 %v5236_v0 }
 0x836   : > { %4456 = vmatmul.mubr.msk.bf16.vlgmr.msra.gmra.mrb[36].mxu0 %vm1180_vm1, %v4794_v40 }
 0x837   : > { %4469 = vmatprep.mubr.msk.bf16.mxu0 %vm5237_vm0, %v5236_v0 }
 0x901   : > { %v2285_v19 = vpop.f32.mrb[32].mxu0 }
 0x902   : > { %v2286_v21 = vadd.f32 %v4162_v17, %v2285_v19  ;;  %v4441_v22 = vpop.f32.mrb[33].mxu0 }
 0x903   : > { %v2288_v23 = vpop.f32.mrb[34].mxu0 }
 0x904   : > { %v2289_v24 = vadd.f32 %v4162_v17, %v2288_v23  ;;  %v4442_v11 = vpop.f32.mrb[35].mxu0  ;;  %v2292_v25 = vadd.f32 %v2286_v21, %v5615_v3  ;;  %v4168_v21 = vld [vmem:[%s6204_s2] ss:$0 sm:$0xff]  ;;  %s6210_s2 = sld [smem:[#allocation34_spill]] }
 0x906   : > { %v2296_v26 = vsel %vm1180_vm1, %v2292_v25, 0.0  ;;  %v2293_v27 = vadd.f32 %v2289_v24, %v5617_v4 }
 0x907   : > { %2297 = vadd.xlane.f32.xlu1 %v2296_v26 }
 0x908   : > { %v2299_v28 = vsel %vm1180_vm1, %v2293_v27, 0.0 }
 0x909   : > { %2300 = vadd.xlane.f32.xlu0 %v2299_v28  ;;  %v4457_v63 = vpop.f32.mrb[36].mxu0 }
 0x90a   : > { %v2493_v29 = vadd.f32 %v4457_v63, %v4172_v62  ;;  %v2484_v1 = vpop.f32.mrb[37].mxu0 }
 0x90b   : > { %v2485_v2 = vadd.f32 %v4172_v62, %v2484_v1  ;;  %v4458_v7 = vpop.f32.mrb[38].mxu0 }
 0x90c   : > { %v2496_v18 = vadd.f32 %v4458_v7, %v4172_v62  ;;  %v2487_v9 = vpop.f32.mrb[39].mxu0 }
 0x90d   : > { %v2488_v10 = vadd.f32 %v4172_v62, %v2487_v9 }
 0x90f   : > { %v2593_v12 = vpack.c.bf16 %v2488_v10, %v2485_v2 }
 0x994   : > { %v2298_v30 = vpop.xlane.xlu1 %2297 }
 0x995   : > { %v2303_v8 = vmul.f32 0.03125, %v2298_v30 }
 0x996   : > { %v2301_v31 = vpop.xlane.xlu0 %2300 }
 0x997   : > { %v2305_v32 = vsub.f32 %v2292_v25, %v2303_v8  ;;  %v2304_v33 = vmul.f32 0.03125, %v2301_v31  ;;  %v4179_v31 = vld [vmem:[%s6205_s26] ss:$0 sm:$0xff]  ;;  %s6214_s26 = sld [smem:[#allocation36_spill]] }
 0x999   : > { %v2306_v20 = vsub.f32 %v2293_v27, %v2304_v33  ;;  %v2307_v34 = vmul.f32 %v2305_v32, %v2305_v32 }
 0x99b   : > { %v2309_v3 = vsel %vm1180_vm1, %v2307_v34, 0.0  ;;  %v2308_v35 = vmul.f32 %v2306_v20, %v2306_v20 }
 0x99c   : > { %2310 = vadd.xlane.f32.xlu0 %v2309_v3 }
 0x99d   : > { %v2312_v4 = vsel %vm1180_vm1, %v2308_v35, 0.0 }
 0x99e   : > { %2313 = vadd.xlane.f32.xlu1 %v2312_v4 }
 0x9af   : > { %2694 = vrot.lane.b32.xlu1 %v2593_v12, %s5243_s4 }
 0x9b2   : > { %2644 = vrot.lane.b32.xlu0 %v2593_v12, %s5241_s20 }
 0x9b6   : > { %2744 = vrot.lane.b32.xlu0 %v2593_v12, %s5244_s11 }
 0xa29   : > { %v2311_v43 = vpop.xlane.xlu0 %2310 }
 0xa2a   : > { %v2315_v45 = vmul.f32 0.03125, %v2311_v43 }
 0xa2b   : > { %v2314_v46 = vpop.xlane.xlu1 %2313 }
 0xa2c   : > { %v2317_v47 = vadd.f32 1e-05, %v2315_v45  ;;  %v2316_v48 = vmul.f32 0.03125, %v2314_v46 }
 0xa2d   : > { %v2645_v17 = vpop.permute.xlu0 %2644 }
 0xa2e   : > { %4841 = vrsqrt.f32 %v2317_v47  ;;  %v2318_v49 = vadd.f32 1e-05, %v2316_v48  ;;  %v2650_v19 = vsel %vm1305_vm2, %v2645_v17, 0 }
 0xa2f   : > { %v2695_v28 = vpop.permute.xlu1 %2694 }
 0xa30   : > { %4843 = vrsqrt.f32 %v2318_v49  ;;  %v2700_v8 = vsel %vm1305_vm2, %v2695_v28, 0 }
 0xa31   : > { %v2745_v40 = vpop.permute.xlu0 %2744 }
 0xa32   : > { %v2750_v42 = vsel %vm1305_vm2, %v2745_v40, 0 }
 0xa38   : > { %v4842_v50 = vpop.eup %4841 }
 0xa39   : > { %v2321_v52 = vmul.f32 %v4842_v50, %v2305_v32 }
 0xa3a   : > { %v4844_v53 = vpop.eup %4843 }
 0xa3b   : > { %v2329_v15 = vmul.f32 %v4166_v51, %v2321_v52  ;;  %v2322_v55 = vmul.f32 %v4844_v53, %v2306_v20 }
 0xa3d   : > { %v2330_v56 = vmul.f32 %v4166_v51, %v2322_v55  ;;  %v5848_v57 = vadd.f32 %v4167_v54, %v2329_v15 }
 0xa3f   : > { %v5850_v58 = vadd.f32 %v4167_v54, %v2330_v56  ;;  %v2339_v59 = vadd.f32 %v5848_v57, %v5619_v5  ;;  %v5858_v5 = vpack.c.bf16 %v2496_v18, %v2493_v29 }
 0xa41   : > { %v2340_v60 = vadd.f32 %v5850_v58, %v5622_v6  ;;  %v2598_v6 = vsel %vm1305_vm2, %v2593_v12, 0 }
 0xa42   : > { %4468 = vmatpush3.bf16.xpose.msra.mxu0 %v2598_v6 }
 0xa43   : > { %v2345_v61 = vpack.c.bf16 %v2340_v60, %v2339_v59  ;;  %4479 = vmatprep.subr.bf16.mxu0 %v5236_v0 }
 0xa45   : > { %4448 = vmatmul.mubr.msk.bf16.vlgmr.msra.gmra.mrb[40].mxu1 %vm1180_vm1, %v2345_v61 }
 0xa46   : > { %4460 = vmatpush3.bf16.msra.mxu1 %v4797_v13  ;;  %4463 = vmatprep.mubr.msk.bf16.mxu1 %vm1180_vm1, %v4799_v39 }
 0xa47   : > { %4461 = vmatprep.subr.bf16.mxu1 %v4798_v14 }
 0xa4a   : > { %4462 = vmatpush3.bf16.msra.mxu1 %v4798_v14 }
 0xa4b   : > { %4473 = vmatprep.subr.bf16.mxu1 %v5236_v0 }
 0xa4d   : > { %4464 = vmatmul.mubr.msk.bf16.vlgmr.msra.gmra.mrb[44].mxu1 %vm1180_vm1, %v4800_v16 }
 0xa4e   : > { %4475 = vmatprep.mubr.msk.bf16.mxu1 %vm5237_vm0, %v5236_v0 }
 0xa53   : > { %4474 = vmatpush3.bf16.xpose.msra.mxu1 %v2650_v19 }
 0xa54   : > { %4485 = vmatprep.subr.bf16.mxu1 %v5236_v0 }
 0xb18   : > { %v2402_v22 = vpop.f32.mrb[40].mxu1 }
 0xb19   : > { %v2403_v23 = vadd.f32 %v4168_v21, %v2402_v22  ;;  %v4449_v24 = vpop.f32.mrb[41].mxu1 }
 0xb1a   : > { %v2405_v11 = vpop.f32.mrb[42].mxu1 }
 0xb1b   : > { %v2409_v25 = vmul.f32 0.35355338, %v2403_v23  ;;  %v5878_v26 = vadd.f32 %v4168_v21, %v2405_v11  ;;  %v4450_v27 = vpop.f32.mrb[43].mxu1 }
 0xb1d   : > { %v2592_v30 = vpack.c.bf16 %v2409_v25, %v2409_v25  ;;  %v2410_v28 = vmul.f32 0.35355338, %v5878_v26 }
 0xb1f   : > { %2742 = vrot.lane.b32.xlu0 %v2592_v30, %s5244_s11  ;;  %2641 = vrot.lane.b32.xlu1 %v2592_v30, %s5241_s20 }
 0xb20   : > { %4470 = vmatmul.mubr.msk.bf16.vlgmr.msra.gmra.mrb[40].mxu0 %vm1305_vm2, %v2592_v30  ;;  %v4465_v32 = vpop.f32.mrb[44].mxu1 }
 0xb21   : > { %4480 = vmatpush3.bf16.xpose.msra.mxu0 %v2700_v8  ;;  %4481 = vmatprep.mubr.msk.bf16.mxu0 %vm5237_vm0, %v5236_v0  ;;  %v2581_v33 = vadd.f32 %v4465_v32, %v4179_v31  ;;  %v2572_v20 = vpop.f32.mrb[45].mxu1  ;;  %v3043_v8 = vpack.c.bf16 %v2410_v28, %v2410_v28 }
 0xb22   : > { %4491 = vmatprep.subr.bf16.mxu0 %v5236_v0  ;;  %v2573_v34 = vadd.f32 %v4179_v31, %v2572_v20  ;;  %v4466_v3 = vpop.f32.mrb[46].mxu1 }
 0xb23   : > { %2692 = vrot.lane.b32.xlu1 %v2592_v30, %s5243_s4  ;;  %v2584_v35 = vadd.f32 %v4466_v3, %v4179_v31  ;;  %v2575_v4 = vpop.f32.mrb[47].mxu1 }
 0xb24   : > { %v2576_v36 = vadd.f32 %v4179_v31, %v2575_v4 }
 0xb25   : > { %v5889_v37 = vpack.c.bf16 %v2584_v35, %v2581_v33 }
 0xb26   : > { %v5891_v38 = vpack.c.bf16 %v2576_v36, %v2573_v34 }
 0xb91   : > { %v2642_v41 = vpop.permute.xlu1 %2641  ;;  %v2743_v45 = vpop.permute.xlu0 %2742 }
 0xb92   : > { %4476 = vmatmul.mubr.msk.bf16.vlgmr.msra.gmra.mrb[48].mxu1 %vm1305_vm2, %v2642_v41 }
 0xb93   : > { %4486 = vmatpush3.bf16.xpose.msra.mxu1 %v2750_v42  ;;  %4487 = vmatprep.mubr.msk.bf16.mxu1 %vm5237_vm0, %v5236_v0 }
 0xb94   : > { %4497 = vmatprep.subr.bf16.mxu1 %v5236_v0 }
 0xb95   : > { %v2693_v43 = vpop.permute.xlu1 %2692 }
 0xb96   : > { %4482 = vmatmul.mubr.msk.bf16.vlgmr.msra.gmra.mrb[44].mxu0 %vm1305_vm2, %v2693_v43 }
 0xb97   : > { %4492 = vmatpush3.bf16.msra.mxu0 %v5891_v38  ;;  %4493 = vmatprep.mubr.msk.bf16.mxu0 %vm5237_vm0, %v5236_v0 }
 0xb98   : > { %4503 = vmatprep.subr.bf16.mxu0 %v5236_v0 }
 0xb9a   : > { %4488 = vmatmul.mubr.msk.bf16.vlgmr.msra.gmra.mrb[52].mxu1 %vm1305_vm2, %v2743_v45 }
 0xb9b   : > { %4499 = vmatprep.mubr.msk.bf16.mxu1 %vm5237_vm0, %v5236_v0 }
 0xbf3   : > { %v2634_v46 = vpop.f32.mrb[40].mxu0 }
 0xbf4   : > { %v2793_v47 = vsel %vm2792_vm7, %v2634_v46, -1e+30  ;;  %v4471_v48 = vpop.f32.mrb[41].mxu0 }
 0xbf5   : > { %v2637_v49 = vpop.f32.mrb[42].mxu0  ;;  %v2797_v50 = vsel %vm1764_vm5, %v2793_v47, -inf }
 0xbf6   : > { %2798 = vmax.xlane.f32.xlu1 %v2797_v50  ;;  %v4472_v51 = vpop.f32.mrb[43].mxu0  ;;  %v3049_v49 = vsel %vm1305_vm2, %v5858_v5, 0 }
 0xc65   : > { %v2686_v52 = vpop.f32.mrb[48].mxu1 }
 0xc66   : > { %v2794_v53 = vsel %vm2792_vm7, %v2686_v52, -1e+30  ;;  %v4477_v54 = vpop.f32.mrb[49].mxu1 }
 0xc67   : > { %v2689_v15 = vpop.f32.mrb[50].mxu1  ;;  %v2800_v55 = vsel %vm1764_vm5, %v2794_v53, -inf }
 0xc68   : > { %2801 = vmax.xlane.f32.xlu0 %v2800_v55  ;;  %v4478_v56 = vpop.f32.mrb[51].mxu1 }
 0xc69   : > { %v2736_v59 = vpop.f32.mrb[44].mxu0 }
 0xc6a   : > { %v2795_v60 = vsel %vm2792_vm7, %v2736_v59, -1e+30  ;;  %v4483_v61 = vpop.f32.mrb[45].mxu0 }
 0xc6b   : > { %v2739_v62 = vpop.f32.mrb[46].mxu0  ;;  %v2803_v63 = vsel %vm1764_vm5, %v2795_v60, -inf }
 0xc6c   : > { %v4484_v29 = vpop.f32.mrb[47].mxu0  ;;  %2804 = vmax.xlane.f32.xlu0 %v2803_v63 }
 0xc6d   : > { %v2786_v1 = vpop.f32.mrb[52].mxu1 }
 0xc6e   : > { %v2796_v2 = vsel %vm2792_vm7, %v2786_v1, -1e+30  ;;  %v4489_v7 = vpop.f32.mrb[53].mxu1 }
 0xc6f   : > { %v2789_v18 = vpop.f32.mrb[54].mxu1  ;;  %v2806_v9 = vsel %vm1764_vm5, %v2796_v2, -inf }
 0xc70   : > { %2807 = vmax.xlane.f32.xlu1 %v2806_v9  ;;  %v4490_v10 = vpop.f32.mrb[55].mxu1 }
 0xc81   : > { %2935 = vrot.lane.b32.xlu1 %v5891_v38, %s5243_s4 }
 0xc83   : > { %v2799_v12 = vpop.xlane.xlu1 %2798 }
 0xc84   : > { %v2809_v6 = vsub.f32 %v2793_v47, %v2799_v12 }
 0xc86   : > { %v2813_v13 = vmul.f32 1.442695, %v2809_v6 }
 0xc88   : > { %4845 = vpow2.f32 %v2813_v13 }
 0xc92   : > { %v4846_v14 = vpop.eup %4845 }
 0xc93   : > { %v2821_v39 = vsel %vm1764_vm5, %v4846_v14, 0.0 }
 0xc94   : > { %2822 = vadd.xlane.f32.xlu0 %v2821_v39 }
 0xcaa   : > { %2888 = vrot.lane.b32.xlu0 %v5891_v38, %s5241_s20 }
 0xcf5   : > { %v2802_v16 = vpop.xlane.xlu0 %2801 }
 0xcf6   : > { %v2810_v17 = vsub.f32 %v2794_v53, %v2802_v16 }
 0xcf8   : > { %v2815_v19 = vmul.f32 1.442695, %v2810_v17 }
 0xcf9   : > { %v2805_v21 = vpop.xlane.xlu0 %2804 }
 0xcfa   : > { %4847 = vpow2.f32 %v2815_v19  ;;  %v2811_v22 = vsub.f32 %v2795_v60, %v2805_v21 }
 0xcfc   : > { %v2817_v23 = vmul.f32 1.442695, %v2811_v22 }
 0xcfd   : > { %v2808_v31 = vpop.xlane.xlu1 %2807 }
 0xcfe   : > { %4849 = vpow2.f32 %v2817_v23  ;;  %v2812_v32 = vsub.f32 %v2796_v2, %v2808_v31 }
 0xd00   : > { %v2819_v20 = vmul.f32 1.442695, %v2812_v32 }
 0xd01   : > { %v2936_v35 = vpop.permute.xlu1 %2935 }
 0xd04   : > { %v4848_v24 = vpop.eup %4847 }
 0xd05   : > { %v2824_v11 = vsel %vm1764_vm5, %v4848_v24, 0.0 }
 0xd06   : > { %2825 = vadd.xlane.f32.xlu1 %v2824_v11 }
 0xd08   : > { %v4850_v25 = vpop.eup %4849 }
 0xd09   : > { %v2827_v27 = vsel %vm1764_vm5, %v4850_v25, 0.0 }
 0xd0a   : > { %2828 = vadd.xlane.f32.xlu0 %v2827_v27 }
 0xd17   : > { %2982 = vrot.lane.b32.xlu1 %v5891_v38, %s5244_s11 }
 0xd20   : > { %3095 = vrot.lane.b32.xlu0 %v5858_v5, %s5241_s20 }
 0xd21   : > { %v2823_v30 = vpop.xlane.xlu0 %2822 }
 0xd22   : > { %4851 = vrcp.f32 %v2823_v30 }
 0xd23   : > { %4853 = vpow2.f32 %v2819_v20 }
 0xd24   : > { %3092 = vrot.lane.b32.xlu0 %v3043_v8, %s5241_s20 }
 0xd25   : > { %v2889_v33 = vpop.permute.xlu0 %2888 }
 0xd26   : > { %4498 = vmatpush3.bf16.msra.mxu1 %v2889_v33 }
 0xd27   : > { %4509 = vmatprep.subr.bf16.mxu1 %v5236_v0 }
 0xd28   : > { %3143 = vrot.lane.b32.xlu0 %v3043_v8, %s5243_s4 }
 0xd2c   : > { %v4852_v34 = vpop.eup %4851 }
 0xd2d   : > { %v2837_v26 = vmul.f32 %v4852_v34, %v4846_v14  ;;  %v4854_v4 = vpop.eup %4853 }
 0xd2e   : > { %v2830_v36 = vsel %vm1764_vm5, %v4854_v4, 0.0 }
 0xd2f   : > { %v2841_v3 = vpack.c.bf16 %v2837_v26, %v2837_v26 }
 0xd31   : > { %4494 = vmatmul.mubr.msk.bf16.vlgmr.msra.gmra.mrb[48].mxu0 %vm1764_vm5, %v2841_v3 }
 0xd32   : > { %4504 = vmatpush3.bf16.msra.mxu0 %v2936_v35  ;;  %4505 = vmatprep.mubr.msk.bf16.mxu0 %vm5237_vm0, %v5236_v0 }
 0xd33   : > { %4515 = vmatprep.subr.bf16.mxu0 %v5236_v0 }
 0xd3b   : > { %2831 = vadd.xlane.f32.xlu1 %v2830_v36 }
 0xd4c   : > { %3145 = vrot.lane.b32.xlu1 %v5858_v5, %s5243_s4 }
 0xd50   : > { %3195 = vrot.lane.b32.xlu1 %v5858_v5, %s5244_s11 }
 0xd54   : > { %3193 = vrot.lane.b32.xlu1 %v3043_v8, %s5244_s11 }
 0xd93   : > { %v2826_v38 = vpop.xlane.xlu1 %2825 }
 0xd94   : > { %4855 = vrcp.f32 %v2826_v38 }
 0xd97   : > { %v2829_v40 = vpop.xlane.xlu0 %2828  ;;  %v2983_v46 = vpop.permute.xlu1 %2982 }
 0xd98   : > { %4857 = vrcp.f32 %v2829_v40 }
 0xd9b   : > { %v3096_v50 = vpop.permute.xlu0 %3095 }
 0xd9c   : > { %v3101_v59 = vsel %vm1305_vm2, %v3096_v50, 0 }
 0xd9e   : > { %v4856_v41 = vpop.eup %4855 }
 0xd9f   : > { %v2838_v42 = vmul.f32 %v4856_v41, %v4848_v24  ;;  %v3093_v54 = vpop.permute.xlu0 %3092 }
 0xda1   : > { %v2886_v43 = vpack.c.bf16 %v2838_v42, %v2838_v42 }
 0xda2   : > { %v4858_v45 = vpop.eup %4857 }
 0xda3   : > { %v2839_v47 = vmul.f32 %v4858_v45, %v4850_v25  ;;  %4500 = vmatmul.mubr.msk.bf16.vlgmr.msra.gmra.mrb[56].mxu1 %vm1764_vm5, %v2886_v43  ;;  %v3144_v15 = vpop.permute.xlu0 %3143 }
 0xda4   : > { %4510 = vmatpush3.bf16.msra.mxu1 %v2983_v46  ;;  %4511 = vmatprep.mubr.msk.bf16.mxu1 %vm5237_vm0, %v5236_v0 }
 0xda5   : > { %v2934_v48 = vpack.c.bf16 %v2839_v47, %v2839_v47  ;;  %4521 = vmatprep.subr.bf16.mxu1 %v5236_v0 }
 0xda7   : > { %4506 = vmatmul.mubr.msk.bf16.vlgmr.msra.gmra.mrb[52].mxu0 %vm1764_vm5, %v2934_v48 }
 0xda8   : > { %4516 = vmatpush3.bf16.xpose.msra.mxu0 %v3049_v49  ;;  %4517 = vmatprep.mubr.msk.bf16.mxu0 %vm5237_vm0, %v5236_v0 }
 0xda9   : > { %4527 = vmatprep.subr.bf16.mxu0 %v5236_v0 }
 0xdaf   : > { %4518 = vmatmul.mubr.msk.bf16.vlgmr.msra.gmra.mrb[56].mxu0 %vm1305_vm2, %v3043_v8 }
 0xdb0   : > { %4529 = vmatprep.mubr.msk.bf16.mxu0 %vm5237_vm0, %v5236_v0 }
 0xdc8   : > { %v2832_v51 = vpop.xlane.xlu1 %2831 }
 0xdc9   : > { %4859 = vrcp.f32 %v2832_v51 }
 0xdcc   : > { %v3146_v52 = vpop.permute.xlu1 %3145 }
 0xdcd   : > { %v3151_v53 = vsel %vm1305_vm2, %v3146_v52, 0 }
 0xdce   : > { %4528 = vmatpush3.bf16.xpose.msra.mxu0 %v3151_v53 }
 0xdcf   : > { %4539 = vmatprep.subr.bf16.mxu0 %v5236_v0 }
 0xdd0   : > { %v3196_v60 = vpop.permute.xlu1 %3195 }
 0xdd1   : > { %v3201_v61 = vsel %vm1305_vm2, %v3196_v60, 0 }
 0xdd3   : > { %v4860_v5 = vpop.eup %4859 }
 0xdd4   : > { %v2840_v55 = vmul.f32 %v4860_v5, %v4854_v4  ;;  %v3194_v62 = vpop.permute.xlu1 %3193 }
 0xdd5   : > { %4530 = vmatmul.mubr.msk.bf16.vlgmr.msra.gmra.mrb[60].mxu0 %vm1305_vm2, %v3144_v15 }
 0xdd6   : > { %4540 = vmatpush3.bf16.msra.mxu0 %v5889_v37  ;;  %v2981_v56 = vpack.c.bf16 %v2840_v55, %v2840_v55  ;;  %4541 = vmatprep.mubr.msk.bf16.mxu0 %vm5237_vm0, %v5236_v0 }
 0xdd7   : > { %4551 = vmatprep.subr.bf16.mxu0 %v5236_v0 }
 0xdd8   : > { %4512 = vmatmul.mubr.msk.bf16.vlgmr.msra.gmra.mrb[60].mxu1 %vm1764_vm5, %v2981_v56 }
 0xdd9   : > { %4522 = vmatpush3.bf16.xpose.msra.mxu1 %v3101_v59  ;;  %4523 = vmatprep.mubr.msk.bf16.mxu1 %vm5237_vm0, %v5236_v0 }
 0xdda   : > { %4533 = vmatprep.subr.bf16.mxu1 %v5236_v0 }
 0xde0   : > { %4524 = vmatmul.mubr.msk.bf16.vlgmr.msra.gmra.mrb[64].mxu1 %vm1305_vm2, %v3093_v54 }
 0xde1   : > { %4534 = vmatpush3.bf16.xpose.msra.mxu1 %v3201_v61  ;;  %4535 = vmatprep.mubr.msk.bf16.mxu1 %vm5237_vm0, %v5236_v0 }
 0xde2   : > { %4545 = vmatprep.subr.bf16.mxu1 %v5236_v0 }
 0xde8   : > { %4536 = vmatmul.mubr.msk.bf16.vlgmr.msra.gmra.mrb[68].mxu1 %vm1305_vm2, %v3194_v62 }
 0xde9   : > { %4547 = vmatprep.mubr.msk.bf16.mxu1 %vm5237_vm0, %v5236_v0 }
 0xe04   : > { %v5977_v63 = vpop.f32.mrb[48].mxu0 }
 0xe05   : > { %v4495_v29 = vpop.f32.mrb[49].mxu0 }
 0xe06   : > { %v2883_v1 = vpop.f32.mrb[50].mxu0 }
 0xe07   : > { %v4496_v2 = vpop.f32.mrb[51].mxu0 }
 0xe76   : > { %v5979_v7 = vpop.f32.mrb[56].mxu1 }
 0xe77   : > { %v4501_v18 = vpop.f32.mrb[57].mxu1 }
 0xe78   : > { %v2931_v9 = vpop.f32.mrb[58].mxu1 }
 0xe79   : > { %v4502_v10 = vpop.f32.mrb[59].mxu1 }
 0xe7a   : > { %v5981_v12 = vpop.f32.mrb[52].mxu0 }
 0xe7b   : > { %v4507_v6 = vpop.f32.mrb[53].mxu0 }
 0xe7c   : > { %v2978_v13 = vpop.f32.mrb[54].mxu0 }
 0xe7d   : > { %v4508_v14 = vpop.f32.mrb[55].mxu0 }
 0xe82   : > { %v3085_v39 = vpop.f32.mrb[56].mxu0 }
 0xe83   : > { %v3243_v16 = vsel %vm2792_vm7, %v3085_v39, -1e+30  ;;  %v4519_v17 = vpop.f32.mrb[57].mxu0 }
 0xe84   : > { %v3088_v19 = vpop.f32.mrb[58].mxu0  ;;  %v3247_v21 = vsel %vm1764_vm5, %v3243_v16, -inf }
 0xe85   : > { %3248 = vmax.xlane.f32.xlu0 %v3247_v21  ;;  %v4520_v22 = vpop.f32.mrb[59].mxu0 }
 0xea8   : > { %v3187_v23 = vpop.f32.mrb[60].mxu0 }
 0xea9   : > { %v3245_v24 = vsel %vm2792_vm7, %v3187_v23, -1e+30  ;;  %v4531_v11 = vpop.f32.mrb[61].mxu0 }
 0xeaa   : > { %v3190_v25 = vpop.f32.mrb[62].mxu0  ;;  %v3253_v27 = vsel %vm1764_vm5, %v3245_v24, -inf }
 0xeab   : > { %v5989_v28 = vpop.f32.mrb[60].mxu1  ;;  %3254 = vmax.xlane.f32.xlu0 %v3253_v27  ;;  %v4532_v30 = vpop.f32.mrb[63].mxu0 }
 0xeac   : > { %v4513_v8 = vpop.f32.mrb[61].mxu1 }
 0xead   : > { %v3025_v31 = vpop.f32.mrb[62].mxu1 }
 0xeae   : > { %v4514_v32 = vpop.f32.mrb[63].mxu1  ;;  %v4801_v31 = vld [vmem:[%s6206_s3] sm:$0xff]  }
 0xeb3   : > { %v3137_v33 = vpop.f32.mrb[64].mxu1 }
 0xeb4   : > { %v3244_v20 = vsel %vm2792_vm7, %v3137_v33, -1e+30  ;;  %v4525_v34 = vpop.f32.mrb[65].mxu1 }
 0xeb5   : > { %v3140_v26 = vpop.f32.mrb[66].mxu1  ;;  %v3250_v3 = vsel %vm1764_vm5, %v3244_v20, -inf }
 0xeb6   : > { %3251 = vmax.xlane.f32.xlu1 %v3250_v3  ;;  %v4526_v35 = vpop.f32.mrb[67].mxu1 }
 0xebb   : > { %v3237_v4 = vpop.f32.mrb[68].mxu1 }
 0xebc   : > { %v3246_v36 = vsel %vm2792_vm7, %v3237_v4, -1e+30  ;;  %v4537_v38 = vpop.f32.mrb[69].mxu1 }
 0xebd   : > { %v3240_v40 = vpop.f32.mrb[70].mxu1  ;;  %v3256_v41 = vsel %vm1764_vm5, %v3246_v36, -inf }
 0xebe   : > { %v4538_v42 = vpop.f32.mrb[71].mxu1  ;;  %3257 = vmax.xlane.f32.xlu0 %v3256_v41 }
 0xec7   : > { %3338 = vrot.lane.b32.xlu1 %v5889_v37, %s5241_s20  ;;  %s6207_s20 = smov 8  }
 0xf12   : > { %v3249_v43 = vpop.xlane.xlu0 %3248 }
 0xf13   : > { %v3259_v45 = vsub.f32 %v3243_v16, %v3249_v43 }
 0xf15   : > { %v3263_v46 = vmul.f32 1.442695, %v3259_v45 }
 0xf17   : > { %4861 = vpow2.f32 %v3263_v46 }
 0xf21   : > { %v4862_v47 = vpop.eup %4861 }
 0xf22   : > { %v3271_v48 = vsel %vm1764_vm5, %v4862_v47, 0.0 }
 0xf23   : > { %3272 = vadd.xlane.f32.xlu1 %v3271_v48 }
 0xf38   : > { %v3255_v49 = vpop.xlane.xlu0 %3254 }
 0xf39   : > { %v3261_v44 = vsub.f32 %v3245_v24, %v3255_v49 }
 0xf3b   : > { %v3267_v50 = vmul.f32 1.442695, %v3261_v44 }
 0xf3d   : > { %4863 = vpow2.f32 %v3267_v50 }
 0xf43   : > { %v3252_v51 = vpop.xlane.xlu1 %3251 }
 0xf44   : > { %v3260_v52 = vsub.f32 %v3244_v20, %v3252_v51  ;;  %v4802_v20 = vld [vmem:[%s6206_s3 + $0x8] sm:$0xff]  }
 0xf46   : > { %v3265_v53 = vmul.f32 1.442695, %v3260_v52 }
 0xf47   : > { %v4864_v54 = vpop.eup %4863  ;;  %v3339_v5 = vpop.permute.xlu1 %3338 }
 0xf48   : > { %4865 = vpow2.f32 %v3265_v53  ;;  %4546 = vmatpush3.bf16.msra.mxu1 %v3339_v5  ;;  %v3277_v15 = vsel %vm1764_vm5, %v4864_v54, 0.0 }
 0xf49   : > { %3278 = vadd.xlane.f32.xlu1 %v3277_v15  ;;  %4557 = vmatprep.subr.bf16.mxu1 %v5236_v0 }
 0xf4b   : > { %v3258_v55 = vpop.xlane.xlu0 %3257 }
 0xf4c   : > { %v3262_v56 = vsub.f32 %v3246_v36, %v3258_v55 }
 0xf4e   : > { %v3269_v59 = vmul.f32 1.442695, %v3262_v56 }
 0xf50   : > { %4867 = vpow2.f32 %v3269_v59 }
 0xf52   : > { %v4866_v60 = vpop.eup %4865 }
 0xf53   : > { %v3274_v61 = vsel %vm1764_vm5, %v4866_v60, 0.0 }
 0xf54   : > { %3275 = vadd.xlane.f32.xlu0 %v3274_v61 }
 0xf5a   : > { %v4868_v62 = vpop.eup %4867  ;;  %3432 = vrot.lane.b32.xlu1 %v5889_v37, %s5244_s11  ;;  %s6209_s11 = smov 24  }
 0xf5b   : > { %v3280_v29 = vsel %vm1764_vm5, %v4868_v62, 0.0 }
 0xf5c   : > { %3281 = vadd.xlane.f32.xlu0 %v3280_v29 }
 0xf72   : > { %3385 = vrot.lane.b32.xlu0 %v5889_v37, %s5243_s4  ;;  %s6208_s4 = smov 16  }
 0xfb0   : > { %v3273_v1 = vpop.xlane.xlu1 %3272 }
 0xfb1   : > { %4869 = vrcp.f32 %v3273_v1 }
 0xfbb   : > { %v4870_v2 = vpop.eup %4869 }
 0xfbc   : > { %v3287_v18 = vmul.f32 %v4870_v2, %v4862_v47 }
 0xfbe   : > { %v3291_v9 = vpack.c.bf16 %v3287_v18, %v3287_v18 }
 0xfc0   : > { %4542 = vmatmul.mubr.msk.bf16.vlgmr.msra.gmra.mrb[64].mxu0 %vm1764_vm5, %v3291_v9 }
 0xfc1   : > { %4553 = vmatprep.mubr.msk.bf16.mxu0 %vm5237_vm0, %v5236_v0 }
 0xfd6   : > { %v3279_v10 = vpop.xlane.xlu1 %3278 }
 0xfd7   : > { %4871 = vrcp.f32 %v3279_v10 }
 0xfda   : > { %v3433_v22 = vpop.permute.xlu1 %3432 }
 0xfe1   : > { %v3276_v6 = vpop.xlane.xlu0 %3275  ;;  %v4872_v13 = vpop.eup %4871 }
 0xfe2   : > { %4873 = vrcp.f32 %v3276_v6  ;;  %v3289_v39 = vmul.f32 %v4872_v13, %v4864_v54 }
 0xfe4   : > { %v3384_v21 = vpack.c.bf16 %v3289_v39, %v3289_v39 }
 0xfe9   : > { %v3282_v14 = vpop.xlane.xlu0 %3281 }
 0xfea   : > { %4875 = vrcp.f32 %v3282_v14 }
 0xfec   : > { %v4874_v16 = vpop.eup %4873 }
 0xfed   : > { %v3288_v37 = vmul.f32 %v4874_v16, %v4866_v60  ;;  %v3386_v17 = vpop.permute.xlu0 %3385 }
 0xfee   : > { %4552 = vmatpush3.bf16.msra.mxu0 %v3386_v17 }
 0xfef   : > { %v3336_v19 = vpack.c.bf16 %v3288_v37, %v3288_v37  ;;  %4563 = vmatprep.subr.bf16.mxu0 %v5236_v0 }
 0xff1   : > { %4548 = vmatmul.mubr.msk.bf16.vlgmr.msra.gmra.mrb[72].mxu1 %vm1764_vm5, %v3336_v19  ;;  %4554 = vmatmul.mubr.msk.bf16.vlgmr.msra.gmra.mrb[68].mxu0 %vm1764_vm5, %v3384_v21  ;;  %v4803_v21 = vld [vmem:[%s6211_s7] sm:$0xff]  }
 0xff2   : > { %4558 = vmatpush3.bf16.msra.mxu1 %v3433_v22  ;;  %4559 = vmatprep.mubr.msk.bf16.mxu1 %vm5237_vm0, %v5236_v0  ;;  %v4804_v22 = vld [vmem:[%s6211_s7 + $0x8] sm:$0xff]  }
 0xff3   : > { %4567 = vmatprep.mubr.msk.bf16.mxu0 %vm5237_vm0, %v5236_v0  ;;  %4571 = vmatprep.subr.bf16.mxu1 %v5236_v0 }
 0xff4   : > { %v4876_v23 = vpop.eup %4875  ;;  %4564 = vmatpush3.bf16.msra.mxu0 %v4801_v31 }
 0xff5   : > { %v3290_v24 = vmul.f32 %v4876_v23, %v4868_v62  ;;  %4565 = vmatprep.subr.bf16.mxu0 %v5236_v0  ;;  %v4805_v23 = vld [vmem:[%s6212_s22] sm:$0xff]  }
 0xff7   : > { %v3431_v11 = vpack.c.bf16 %v3290_v24, %v3290_v24  ;;  %v4806_v24 = vld [vmem:[%s6213_s1 + $0x8] sm:$0xff]  }
 0xff8   : > { %4566 = vmatpush3.bf16.msra.mxu0 %v4802_v20  ;;  %v4206_v20 = vld [vmem:[#allocation7] ss:$0 sm:$0xff] }
 0xff9   : > { %4560 = vmatmul.mubr.msk.bf16.vlgmr.msra.gmra.mrb[76].mxu1 %vm1764_vm5, %v3431_v11  ;;  %4579 = vmatprep.subr.bf16.mxu0 %v5236_v0 }
 0xffa   : > { %4575 = vmatprep.mubr.msk.bf16.mxu1 %vm5237_vm0, %v5236_v0  ;;  %4572 = vmatpush3.bf16.msra.mxu1 %v4803_v21  ;;  %v4219_v21 = vld [vmem:[#allocation11] ss:$0 sm:$0xff] }
 0xffb   : > { %4573 = vmatprep.subr.bf16.mxu1 %v5236_v0 }
 0xffe   : > { %4574 = vmatpush3.bf16.msra.mxu1 %v4804_v22 }
0x1093   : > { %v3330_v25 = vpop.f32.mrb[64].mxu0 }
0x1094   : > { %v4543_v27 = vpop.f32.mrb[65].mxu0 }
0x1095   : > { %v3333_v30 = vpop.f32.mrb[66].mxu0 }
0x1096   : > { %v4544_v8 = vpop.f32.mrb[67].mxu0 }
0x10c4   : > { %v3378_v32 = vpop.f32.mrb[72].mxu1  ;;  %v3425_v33 = vpop.f32.mrb[68].mxu0 }
0x10c5   : > { %v4770_v34 = vpack.i.bf16 %v3378_v32, %v5979_v7  ;;  %v4775_v26 = vpack.i.bf16 %v3425_v33, %v5981_v12  ;;  %v4549_v3 = vpop.f32.mrb[73].mxu1  ;;  %v4555_v35 = vpop.f32.mrb[69].mxu0 }
0x10c6   : > { %v3381_v4 = vpop.f32.mrb[74].mxu1  ;;  %v3428_v36 = vpop.f32.mrb[70].mxu0  ;;  %v4207_v35 = vld [vmem:[#allocation8] ss:$0 sm:$0xff] }
0x10c7   : > { %4771 = vrot.lane.b32.xlu1 %v4770_v34, %s6207_s20  ;;  %v4550_v38 = vpop.f32.mrb[75].mxu1  ;;  %4776 = vrot.lane.b32.xlu0 %v4775_v26, %s6208_s4  ;;  %v4556_v40 = vpop.f32.mrb[71].mxu0  ;;  %s6215_s4 = sld [smem:[#allocation38_spill]] }
0x10cc   : > { %v3472_v41 = vpop.f32.mrb[76].mxu1 }
0x10cd   : > { %v4780_v42 = vpack.i.bf16 %v3472_v41, %v5989_v28  ;;  %v4561_v43 = vpop.f32.mrb[77].mxu1  ;;  %v4807_v41 = vld [vmem:[%s6213_s1 + $0x10] sm:$0xff]  }
0x10ce   : > { %v3475_v7 = vpop.f32.mrb[78].mxu1  ;;  %v4208_v43 = vld [vmem:[%s6214_s26] ss:$0 sm:$0xff]  ;;  %s4227_s26 = sshll.u32 %s5436_s0, 8  ;;  %s5119_s0 = scalar_lea.vmem %s5118_s6, 512 }
0x10cf   : > { %4781 = vrot.lane.b32.xlu1 %v4780_v42, %s6209_s11  ;;  %v4562_v12 = vpop.f32.mrb[79].mxu1  ;;  %v4808_v42 = vld [vmem:[%s6213_s1 + $0x18] sm:$0xff]   ;;  %s1100_s11 = sand.u32 1, %s5187_s23  }
0x10d0   : > { %s6083_s1 = scalar_lea.sflag [#allocation4], %s1100_s11 }
0x1139   : > { %v4772_v45 = vpop.permute.xlu1 %4771  ;;  %v4777_v48 = vpop.permute.xlu0 %4776 }
0x113a   : > { %v4774_v46 = vunpack.i.h.bf16 %v4772_v45  ;;  %v4773_v47 = vunpack.i.l.bf16 %v4772_v45  ;;  %v4779_v49 = vunpack.i.h.bf16 %v4777_v48  ;;  %v4778_v44 = vunpack.i.l.bf16 %v4777_v48 }
0x113c   : > { %v3040_v50 = vsel %vm1305_vm2, %v5977_v63, %v4773_v47  ;;  %v3490_v51 = vsel %vm1305_vm2, %v3330_v25, %v4774_v46  ;;  %v4202_v63 = vld [vmem:[%s6210_s2] ss:$0 sm:$0xff]  ;;  %s4127_s2 = sshll.u32 %s1100_s11, 4 }
0x113d   : > { %v3491_v54 = vsel %vm1764_vm5, %v3490_v51, %v4779_v49  ;;  %v3041_v5 = vsel %vm1764_vm5, %v3040_v50, %v4778_v44  ;;  %v4212_v51 = vld [vmem:[%s6215_s4] ss:$0 sm:$0xff]  ;;  %s1102_s22 = scalar_lea.vmem [#allocation16], %s4127_s2  ;;  %s6077_s4 = scalar_lea.hbm %s5408_s17, %s4227_s26 }
0x113e   : > { %s3870_s2 = sshll.u32 %s1102_s22, 4  ;;  %s6079_s2 = int_to_ptr.vmem [resolvable:$true] %s3870_s2 }
0x113f   : > { %s5113_s3 = scalar_lea.vmem %s6079_s2, 256  ;;  %p5120_p0 = scmp.lt.s32.totalorder %s6079_s2, %s5118_s6 }
0x1140   : > { %p5114_p11 = scmp.ne.s32.totalorder %s6079_s2, %s5113_s3  ;;  %p5121_p3 = scmp.lt.s32.totalorder %s5119_s0, %s5113_s3 }
0x1141   : > { %v4782_v52 = vpop.permute.xlu1 %4781 }
0x1142   : > { %v4784_v53 = vunpack.i.h.bf16 %v4782_v52  ;;  %v4783_v28 = vunpack.i.l.bf16 %v4782_v52  ;;  %p5115_p1 = pnand %p5114_p11, %p6216_p13  ;;  %p5122_p4 = por %p5121_p3, %p5120_p0 }
0x1144   : > { %v3042_v15 = vsel %vm1766_vm6, %v3041_v5, %v4783_v28  ;;  %v3492_v55 = vsel %vm1766_vm6, %v3491_v54, %v4784_v53  ;;  %p5116_p2 = pneg %p5115_p1 }
0x1145   : > { %v3493_v56 = vpack.c.bf16 %v3492_v55, %v3042_v15 }
0x1146   : > { %p5123_p12 = pnand %p5122_p4, %p5116_p2 }
0x1147   : > { %4568 = vmatmul.mubr.msk.bf16.vlgmr.msra.gmra.mrb[72].mxu0 %vm1180_vm1, %v3493_v56 }
0x1148   : > { %4587 = vmatprep.mubr.msk.bf16.mxu0 %vm5237_vm0, %v5236_v0  ;;  %4580 = vmatpush3.bf16.msra.mxu0 %v4805_v23 }
0x1149   : > { %4581 = vmatprep.subr.bf16.mxu0 %v5236_v0 }
0x114c   : > { %4582 = vmatpush3.bf16.msra.mxu0 %v4806_v24 }
0x114d   : > { %4583 = vmatprep.subr.bf16.mxu0 %v5236_v0 }
0x1150   : > { %4584 = vmatpush3.bf16.msra.mxu0 %v4807_v41 }
0x1151   : > { %4585 = vmatprep.subr.bf16.mxu0 %v5236_v0 }
0x1154   : > { %4586 = vmatpush3.bf16.msra.mxu0 %v4808_v42 }
0x121a   : > { %v3549_v59 = vpop.f32.mrb[72].mxu0 }
0x121b   : > { %v3550_v60 = vadd.f32 %v4202_v63, %v3549_v59  ;;  %v4569_v61 = vpop.f32.mrb[73].mxu0 }
0x121c   : > { %v3552_v62 = vpop.f32.mrb[74].mxu0 }
0x121d   : > { %v3553_v29 = vadd.f32 %v4202_v63, %v3552_v62  ;;  %v4570_v1 = vpop.f32.mrb[75].mxu0  ;;  %v3556_v2 = vadd.f32 %v3550_v60, %v5848_v57 }
0x121f   : > { %v3560_v18 = vsel %vm1180_vm1, %v3556_v2, 0.0  ;;  %v3557_v9 = vadd.f32 %v3553_v29, %v5850_v58 }
0x1220   : > { %3561 = vadd.xlane.f32.xlu0 %v3560_v18 }
0x1221   : > { %v3563_v10 = vsel %vm1180_vm1, %v3557_v9, 0.0 }
0x1222   : > { %3564 = vadd.xlane.f32.xlu1 %v3563_v10 }
0x12ad   : > { %v3562_v6 = vpop.xlane.xlu0 %3561 }
0x12ae   : > { %v3566_v13 = vmul.f32 0.03125, %v3562_v6 }
0x12af   : > { %v3565_v14 = vpop.xlane.xlu1 %3564 }
0x12b0   : > { %v3568_v39 = vsub.f32 %v3556_v2, %v3566_v13  ;;  %v3567_v16 = vmul.f32 0.03125, %v3565_v14 }
0x12b2   : > { %v3569_v37 = vsub.f32 %v3557_v9, %v3567_v16  ;;  %v3570_v17 = vmul.f32 %v3568_v39, %v3568_v39 }
0x12b4   : > { %v3572_v57 = vsel %vm1180_vm1, %v3570_v17, 0.0  ;;  %v3571_v19 = vmul.f32 %v3569_v37, %v3569_v37 }
0x12b5   : > { %3573 = vadd.xlane.f32.xlu0 %v3572_v57  ;;  %v4218_v57 = vld [vmem:[#allocation10] ss:$0 sm:$0xff] }
0x12b6   : > { %v3575_v58 = vsel %vm1180_vm1, %v3571_v19, 0.0 }
0x12b9   : > { %3576 = vadd.xlane.f32.xlu0 %v3575_v58 }
0x1342   : > { %v3574_v11 = vpop.xlane.xlu0 %3573 }
0x1343   : > { %v3578_v25 = vmul.f32 0.03125, %v3574_v11 }
0x1345   : > { %v3580_v27 = vadd.f32 1e-05, %v3578_v25 }
0x1346   : > { %v3577_v30 = vpop.xlane.xlu0 %3576 }
0x1347   : > { %4877 = vrsqrt.f32 %v3580_v27  ;;  %v3579_v8 = vmul.f32 0.03125, %v3577_v30 }
0x1349   : > { %v3581_v31 = vadd.f32 1e-05, %v3579_v8 }
0x134b   : > { %4879 = vrsqrt.f32 %v3581_v31 }
0x1351   : > { %v4878_v32 = vpop.eup %4877 }
0x1352   : > { %v3584_v33 = vmul.f32 %v4878_v32, %v3568_v39 }
0x1354   : > { %v3592_v26 = vmul.f32 %v4206_v20, %v3584_v33 }
0x1355   : > { %v4880_v34 = vpop.eup %4879 }
0x1356   : > { %v3585_v3 = vmul.f32 %v4880_v34, %v3569_v37  ;;  %v3600_v36 = vadd.f32 %v4207_v35, %v3592_v26 }
0x1358   : > { %v3593_v4 = vmul.f32 %v4206_v20, %v3585_v3 }
0x135a   : > { %v3601_v38 = vadd.f32 %v4207_v35, %v3593_v4 }
0x135c   : > { %v3606_v40 = vpack.c.bf16 %v3601_v38, %v3600_v36 }
0x135e   : > { %4576 = vmatmul.mubr.msk.bf16.vlgmr.msra.gmra.mrb[80].mxu1 %vm1180_vm1, %v3606_v40 }
0x1431   : > { %v3663_v7 = vpop.f32.mrb[80].mxu1 }
0x1432   : > { %v3664_v12 = vadd.f32 %v4208_v43, %v3663_v7  ;;  %v4577_v45 = vpop.f32.mrb[81].mxu1 }
0x1433   : > { %v3666_v46 = vpop.f32.mrb[82].mxu1 }
0x1434   : > { %v3667_v47 = vadd.f32 %v4208_v43, %v3666_v46  ;;  %v4578_v48 = vpop.f32.mrb[83].mxu1  ;;  %v3670_v49 = vmax.f32 %v3664_v12, 0.0 }
0x1436   : > { %v3671_v44 = vmax.f32 %v3667_v47, 0.0 }
0x1438   : > { %v3680_v50 = vpack.c.bf16 %v3671_v44, %v3670_v49 }
0x143a   : > { %4588 = vmatmul.mubr.msk.bf16.vlgmr.msra.gmra.mrb[76].mxu0 %vm3712_vm8, %v3680_v50 }
0x150d   : > { %v3750_v52 = vpop.f32.mrb[76].mxu0 }
0x150e   : > { %v3751_v53 = vadd.f32 %v4212_v51, %v3750_v52  ;;  %v4589_v28 = vpop.f32.mrb[77].mxu0 }
0x150f   : > { %v3753_v54 = vpop.f32.mrb[78].mxu0 }
0x1510   : > { %v3754_v0 = vadd.f32 %v4212_v51, %v3753_v54  ;;  %v4590_v5 = vpop.f32.mrb[79].mxu0  ;;  %v3757_v15 = vadd.f32 %v3751_v53, %v3600_v36 }
0x1512   : > { %v3761_v55 = vsel %vm1180_vm1, %v3757_v15, 0.0  ;;  %v3758_v56 = vadd.f32 %v3754_v0, %v3601_v38 }
0x1513   : > { %3762 = vadd.xlane.f32.xlu1 %v3761_v55 }
0x1514   : > { %v3764_v63 = vsel %vm1180_vm1, %v3758_v56, 0.0 }
0x1515   : > { %3765 = vadd.xlane.f32.xlu0 %v3764_v63 }
0x15a0   : > { %v3763_v59 = vpop.xlane.xlu1 %3762 }
0x15a1   : > { %v3767_v60 = vmul.f32 0.03125, %v3763_v59 }
0x15a2   : > { %v3766_v61 = vpop.xlane.xlu0 %3765 }
0x15a3   : > { %v3769_v62 = vsub.f32 %v3757_v15, %v3767_v60  ;;  %v3768_v29 = vmul.f32 0.03125, %v3766_v61 }
0x15a5   : > { %v3770_v1 = vsub.f32 %v3758_v56, %v3768_v29  ;;  %v3771_v2 = vmul.f32 %v3769_v62, %v3769_v62 }
0x15a7   : > { %v3773_v18 = vsel %vm1180_vm1, %v3771_v2, 0.0  ;;  %v3772_v9 = vmul.f32 %v3770_v1, %v3770_v1 }
0x15a8   : > { %3774 = vadd.xlane.f32.xlu1 %v3773_v18 }
0x15a9   : > { %v3776_v10 = vsel %vm1180_vm1, %v3772_v9, 0.0 }
0x15aa   : > { %3777 = vadd.xlane.f32.xlu0 %v3776_v10 }
0x1635   : > { %v3775_v6 = vpop.xlane.xlu1 %3774 }
0x1636   : > { %v3779_v13 = vmul.f32 0.03125, %v3775_v6 }
0x1637   : > { %v3778_v14 = vpop.xlane.xlu0 %3777 }
0x1638   : > { %v3781_v39 = vadd.f32 1e-05, %v3779_v13  ;;  %v3780_v16 = vmul.f32 0.03125, %v3778_v14 }
0x163a   : > { %4881 = vrsqrt.f32 %v3781_v39  ;;  %v3782_v37 = vadd.f32 1e-05, %v3780_v16 }
0x163c   : > { %4883 = vrsqrt.f32 %v3782_v37 }
0x1644   : > { %v4882_v17 = vpop.eup %4881 }
0x1645   : > { %v3785_v19 = vmul.f32 %v4882_v17, %v3769_v62 }
0x1646   : > { %v4884_v58 = vpop.eup %4883 }
0x1647   : > { %v3793_v22 = vmul.f32 %v4218_v57, %v3785_v19  ;;  %v3786_v23 = vmul.f32 %v4884_v58, %v3770_v1 }
0x1649   : > { %v3801_v24 = vadd.f32 %v4219_v21, %v3793_v22  ;;  %v3794_v11 = vmul.f32 %v4218_v57, %v3786_v23 }
0x164b   : > { %v3807_v25 = vsel %vm1180_vm1, %v3801_v24, 0.0  ;;  %3803 = vst.msk [vmem:[%s1102_s22] sm:$0xff] %vm1180_vm1, %v3801_v24  ;;  %v3802_v27 = vadd.f32 %v4219_v21, %v3794_v11 }
0x164c   : > { %3808 = vadd.xlane.f32.xlu1 %v3807_v25 }
0x164d   : > { %v3810_v30 = vsel %vm1180_vm1, %v3802_v27, 0.0  ;;  %3804 = vst.msk [vmem:[%s1102_s22 + $0x8] sm:$0xff] %vm1180_vm1, %v3802_v27 }
0x164e   : > { %3811 = vadd.xlane.f32.xlu0 %v3810_v30 }
0x16d9   : > { %v3809_v8 = vpop.xlane.xlu1 %3808 }
0x16da   : > { %v3813_v31 = vmul.f32 0.03125, %v3809_v8 }
0x16db   : > { %v3812_v32 = vpop.xlane.xlu0 %3811 }
0x16dc   : > { %v3815_v33 = vsub.f32 %v3801_v24, %v3813_v31  ;;  %v3814_v20 = vmul.f32 0.03125, %v3812_v32 }
0x16de   : > { %v3816_v34 = vsub.f32 %v3802_v27, %v3814_v20  ;;  %v3817_v26 = vmul.f32 %v3815_v33, %v3815_v33 }
0x16e0   : > { %v3819_v3 = vsel %vm1180_vm1, %v3817_v26, 0.0  ;;  %v3818_v35 = vmul.f32 %v3816_v34, %v3816_v34 }
0x16e1   : > { %3820 = vadd.xlane.f32.xlu1 %v3819_v3 }
0x16e2   : > { %v3822_v4 = vsel %vm1180_vm1, %v3818_v35, 0.0 }
0x16e3   : > { %3823 = vadd.xlane.f32.xlu0 %v3822_v4 }
0x16e4   : > { %5126 = shalt.err (!%p5123_p12)
}
0x16e5   : > { %s5127_s11 = scalar_lea.hbm %s6077_s4, 256  ;;  %s5131_s5 = scalar_lea.hbm %s5408_s17, 512 }
0x16e6   : > { %p5128_p5 = scmp.ne.s32.totalorder %s6077_s4, %s5127_s11  ;;  %p5132_p10 = scmp.lt.u32.totalorder %s6077_s4, %s5408_s17 }
0x16e7   : > { %p5133_p7 = scmp.lt.u32.totalorder %s5131_s5, %s5127_s11  ;;  %p5135_p11 = scmp.lt.u32.totalorder %s5127_s11, %s6077_s4 }
0x16e8   : > { %p5129_p6 = pnand %p5128_p5, %p6216_p13 }
0x16e9   : > { %p5134_p8 = por %p5133_p7, %p5132_p10 }
0x16ea   : > { %p5130_p9 = pneg %p5129_p6 }
0x16eb   : > { %p5136_p1 = por %p5135_p11, %p5134_p8 }
0x16ed   : > { %p5137_p2 = pnand %p5136_p1, %p5130_p9 }
0x16ef   : > { %5140 = shalt.err (!%p5137_p2)
}
0x16f0   : > { %s5249_s6 = smov 128   ;;  %v4220_v12 = vld [vmem:[#allocation13] ss:$0 sm:$0xff]  ;;  %v4221_v47 = vld [vmem:[#allocation14] ss:$0 sm:$0xff]  ;;  %s1139_s15 = scalar_lea.vmem %s5413_s30, %s5607_s18 }
0x16f1   : > { %4623 = dma.vmem_to_hbm [thread:$0]  (%p6216_p13), %s6079_s2, 256, %s6077_s4, %s6083_s1, %s5249_s6, %s5249_s6, %s6207_s20  }
0x176e   : > { %v3821_v36 = vpop.xlane.xlu1 %3820 }
0x176f   : > { %v3825_v38 = vmul.f32 0.03125, %v3821_v36 }
0x1770   : > { %v3824_v40 = vpop.xlane.xlu0 %3823 }
0x1771   : > { %v3827_v41 = vadd.f32 1e-05, %v3825_v38  ;;  %v3826_v42 = vmul.f32 0.03125, %v3824_v40 }
0x1773   : > { %4885 = vrsqrt.f32 %v3827_v41  ;;  %v3828_v43 = vadd.f32 1e-05, %v3826_v42 }
0x1775   : > { %4887 = vrsqrt.f32 %v3828_v43 }
0x177d   : > { %v4886_v7 = vpop.eup %4885 }
0x177e   : > { %v3831_v45 = vmul.f32 %v4886_v7, %v3815_v33 }
0x177f   : > { %v4888_v46 = vpop.eup %4887 }
0x1780   : > { %v3839_v48 = vmul.f32 %v4220_v12, %v3831_v45  ;;  %v3832_v49 = vmul.f32 %v4888_v46, %v3816_v34 }
0x1782   : > { %v3847_v44 = vadd.f32 %v4221_v47, %v3839_v48  ;;  %v3840_v50 = vmul.f32 %v4220_v12, %v3832_v49 }
0x1784   : > { %3849 = vst.msk [vmem:[%s1139_s15] sm:$0xff] %vm1180_vm1, %v3847_v44  ;;  %v3848_v51 = vadd.f32 %v4221_v47, %v3840_v50 }
0x1786   : > { %3850 = vst.msk [vmem:[%s1139_s15 + $0x8] sm:$0xff] %vm1180_vm1, %v3848_v51 }
0x1787 PF: > { %s6217_s3 = sld [smem:[#allocation42_spill]]  ;;  %s6218_s20 = sld [smem:[#allocation46_spill]] }
0x1788   : > { %p4670_p13 = scmp.ge.s32.totalorder %s5195_s28, 2 }
0x178d   : > { %s3889_s1 = sand.u32 1, %s6217_s3   ;;  %p6219_p0 = scmp.ne.s32.totalorder %s6218_s20, 0 }
0x178e   : > { %s3890_s22 = scalar_lea.sflag [#allocation4], %s3889_s1 }
0x178f   : > { %p4651_p3 = pnand %p4670_p13, %p6219_p0 }
0x1791   : > { %5178 = dma.done.wait (!%p4651_p3), %s3890_s22, 256  }
0x1792   : > { %5180 = vsyncadd (!%p4651_p3), %s3890_s22, 4294967040  ;;  %s6220_s28 = sld [smem:[#allocation44_spill]]  ;;  %s6221_s18 = sld [smem:[#allocation43_spill]] }
0x1793   : > { %s6222_s26 = sld [smem:[#allocation45_spill]]  ;;  %s6223_s22 = smov %s5187_s23 }
0x1798   : > { %p79_p4 = scmp.ge.s32.totalorder %s6220_s28, 4   ;;  %s6224_s23 = smov %s6221_s18 }
0x179a   :  { %81 = sbr.rel (!%p79_p4) target bundleno = 62 (0x3e), region = 260 }
0x17a1   :  { %3903 = vsyncpa [#allocation3], 1 }
0x17a2   :  { %3905 = vsyncpa [#allocation3 + $0x1], 1 }
0x17a3   :  { %3906 = vsyncpa [#allocation6], 1 }
0x17a4   :  { %3907 = vsyncpa [#allocation9], 1 }
0x17a5   :  { %3908 = vsyncpa [#allocation12], 1 }
0x17a6   :  { %3909 = vsyncpa [#allocation15], 1 }
0x17a7   :  { %3910 = vsyncpa [#allocation4], 1 }
0x17a8   :  { %3912 = vsyncpa [#allocation4 + $0x1], 1 }

</bundles_post_ra>
